<compile_context>
chip_gen: v5e
topology: v5e:2x2
jax: 0.10.0
libtpu: 0.0.40
codegen_flags: <defaults>
</compile_context>

<pallas_src>
import functools
import math

import jax
import jax.numpy as jnp
import numpy as np
from jax.experimental import pallas as pl
from jax.experimental.pallas import tpu as pltpu

# ----------------------------- fixed geometry --------------------------------
# The module's fc1 (9*9*32) pins the input to (3, 84, 84).
H_IN, C_IN = 84, 3
C1, K1, S1 = 16, 8, 4          # conv1: 3->16, 8x8, stride 4  -> 20x20
C2, K2, S2 = 32, 4, 2          # conv2: 16->32, 4x4, stride 2 -> 9x9
H1 = (H_IN - K1) // S1 + 1     # 20
G1 = H1 // 2                   # 10   (space-to-depth(2) grid feeding conv2)
H2 = (H1 - K2) // S2 + 1       # 9
NPOS = G1 * G1                 # 100 s2d cells (81 valid conv2 outputs + 19 garbage)
Y1L = 4 * C1                   # 64 = (r, s, c) lanes of the s2d'd conv1 output
P1L = 16 * 4 * 4 * C_IN        # 768 conv1 patch lanes = 4 (r,s) blocks x 192
FEAT = 3328                    # 26*128 >= NPOS*32; lane-padded, 128-aligned chunks
NCHUNK = 2                     # fc1 K-chunks (weight streamed across grid steps)
KCHUNK = FEAT // NCHUNK        # 1664 = 13*128
HID = 256

WDTYPE = jnp.bfloat16          # GEMM-operand dtype (f32 accumulation)


# ------------------------------ Pallas kernel --------------------------------

def _fused_kernel(p1_ref, w1c_ref, b1c_ref, w2s_ref, b2_ref, w1f_ref, b1f_ref,
                  wh_ref, bh_ref, probs_ref, value_ref,
                  y1s_ref, feat_ref, h_ref, *, batch, num_actions):
    k = pl.program_id(0)
    n_rows = NPOS * batch

    @pl.when(k == 0)
    def _convs_and_flatten():
        # conv1 as one block-diagonal (200, 768) @ (768, 64) GEMM. Rows are the
        # s2d cells (I, J, b); lanes are (r, s, c), i.e. y1 already lands in
        # space-to-depth(2) layout.
        y1 = jnp.dot(p1_ref[...], w1c_ref[...],
                     preferred_element_type=jnp.float32)
        y1 = jnp.maximum(y1 + b1c_ref[...], 0.0)
        y1s_ref[0:n_rows, :] = y1
        # Zero the pad rows so the shifted conv2 reads below stay finite.
        pad_rows = y1s_ref.shape[0] - n_rows
        y1s_ref[n_rows:, :] = jnp.zeros((pad_rows, Y1L), jnp.float32)

        # conv2 (4x4, stride 2) == 2x2 stride-1 conv on the s2d tensor:
        # 4 accumulating GEMMs over row-shifted contiguous views of y1s.
        acc = jnp.zeros((n_rows, C2), jnp.float32)
        for t in range(4):
            di, dj = t // 2, t % 2
            shift = (di * G1 + dj) * batch
            a = y1s_ref[shift:shift + n_rows, :].astype(WDTYPE)
            acc = acc + jnp.dot(a, w2s_ref[t],
                                preferred_element_type=jnp.float32)
        # Rows with I == 9 or J == 9 are out-of-window garbage (finite); the
        # matching fc1 weight rows are zero, so they contribute nothing.
        y2 = jnp.maximum(acc + b2_ref[...], 0.0)           # (NPOS*batch, 32)

        # Flatten rows (P, b) -> feat lanes: merge 4 spatial positions per
        # 128-lane-aligned, unmasked store (25 stores instead of 81 masked).
        for q in range(NPOS // 4):
            rows = y2[q * 4 * batch:(q + 1) * 4 * batch, :]          # (4B, 32)
            piece = jnp.concatenate(
                [rows[t * batch:(t + 1) * batch, :] for t in range(4)], axis=1)
            cq, lq = divmod(q, KCHUNK // 128)
            feat_ref[cq, :, lq * 128:(lq + 1) * 128] = piece
        # Zero the feat lane padding (its fc1 weight rows are zero as well).
        pad_lanes = FEAT - NPOS * C2
        feat_ref[NCHUNK - 1, :, KCHUNK - pad_lanes:] = jnp.zeros(
            (batch, pad_lanes), jnp.float32)

        h_ref[...] = jnp.zeros_like(h_ref)

    # fc1 partial GEMM for this K-chunk; the (FEAT, 256) weight is streamed in
    # chunks so its HBM->VMEM DMA overlaps the conv/flatten work of step 0.
    h_ref[...] += jnp.dot(feat_ref[k].astype(WDTYPE), w1f_ref[...],
                          preferred_element_type=jnp.float32)

    @pl.when(k == pl.num_programs(0) - 1)
    def _heads():
        h = jnp.maximum(h_ref[...] + b1f_ref[...], 0.0)              # (B, 256)
        # Fused actor + critic head: one (256, A+1) GEMM, then split columns.
        z = jnp.dot(h.astype(WDTYPE), wh_ref[...],
                    preferred_element_type=jnp.float32) + bh_ref[...]
        logits = z[:, :num_actions]
        m = jnp.max(logits, axis=-1, keepdims=True)
        e = jnp.exp(logits - m)
        inv = pl.reciprocal(jnp.sum(e, axis=-1, keepdims=True), approx=True)
        probs_ref[...] = e * inv
        value_ref[...] = z[:, num_actions:]


def fused_forward(p1, gp, *, batch):
    """p1: (NPOS*B, 768) conv1 patches -> (probs (B, A), value (B, 1))."""
    num_actions = gp["head_w"].shape[1] - 1
    n_rows = NPOS * batch
    y1s_rows = -(-(n_rows + (G1 + 1) * batch) // 8) * 8   # + max shift, 8-aligned

    def full(a):
        nd = a.ndim
        return pl.BlockSpec(a.shape, lambda k, nd=nd: (0,) * nd)

    kernel = functools.partial(_fused_kernel, batch=batch,
                               num_actions=num_actions)
    grid_spec = pltpu.PrefetchScalarGridSpec(
        num_scalar_prefetch=0,
        grid=(NCHUNK,),
        in_specs=[full(p1),
                  full(gp["conv1_w"]), full(gp["conv1_b"]),
                  full(gp["conv2_w"]), full(gp["conv2_b"]),
                  pl.BlockSpec((KCHUNK, HID), lambda k: (k, 0)),   # streamed fc1
                  full(gp["fc1_b"]), full(gp["head_w"]), full(gp["head_b"])],
        out_specs=(pl.BlockSpec((batch, num_actions), lambda k: (0, 0)),
                   pl.BlockSpec((batch, 1), lambda k: (0, 0))),
        scratch_shapes=[pltpu.VMEM((y1s_rows, Y1L), jnp.float32),      # y1 (s2d)
                        pltpu.VMEM((NCHUNK, batch, KCHUNK), jnp.float32),  # feat
                        pltpu.VMEM((batch, HID), jnp.float32)])        # h accum
    return pl.pallas_call(
        kernel,
        out_shape=(jax.ShapeDtypeStruct((batch, num_actions), jnp.float32),
                   jax.ShapeDtypeStruct((batch, 1), jnp.float32)),
        grid_spec=grid_spec,
        compiler_params=pltpu.CompilerParams(
            dimension_semantics=("arbitrary",)),
    )(p1, gp["conv1_w"], gp["conv1_b"], gp["conv2_w"], gp["conv2_b"],
      gp["fc1_w"], gp["fc1_b"], gp["head_w"], gp["head_b"])


# ------------------------------- JAX glue ------------------------------------
# TODO(synk): the space-to-depth + 16-slab patch extraction below stays as thin
# host-side XLA glue; expressing this strided spatial gather inside the kernel
# would need strided VMEM reads Mosaic does not express cleanly for this layout.

@jax.jit
def cnn_policy_forward(gp, x_nchw):
    """Equivalent of CNN_policy.forward(x): (softmax(logits).squeeze(), value.squeeze()).

    `gp` must be the output of preprocess_params (GEMM-ready bf16 weights)."""
    B = x_nchw.shape[0]
    x = jnp.transpose(x_nchw, (0, 2, 3, 1)).astype(jnp.float32)      # NHWC
    # space-to-depth(4): conv1 (8x8 stride 4) becomes a 2x2 stride-1 conv over
    # 48 channels on a 21x21 grid.
    xs = x.reshape(B, 21, 4, 21, 4, C_IN).transpose(0, 1, 3, 2, 4, 5)
    xs = xs.reshape(B, 21, 21, 16 * C_IN)
    # 16 thin slabs, one per (r, s, dI, dJ); rows of the patch matrix are the
    # s2d cells (I, J, b) so the conv1 GEMM output is already in the
    # space-to-depth(2) layout the in-kernel conv2 consumes via shifted GEMMs.
    slabs = [xs[:, r + di:r + di + 2 * G1:2, s + dj:s + dj + 2 * G1:2, :]
             for r in (0, 1) for s in (0, 1) for di in (0, 1) for dj in (0, 1)]
    p1 = jnp.stack(slabs, axis=3)                    # (B, 10, 10, 16, 48)
    p1 = p1.transpose(1, 2, 0, 3, 4).reshape(NPOS * B, P1L)
    probs, value = fused_forward(p1.astype(WDTYPE), gp, batch=B)
    return jnp.squeeze(probs), jnp.squeeze(value)


def preprocess_params(params, num_actions):
    """One-time conversion of PyTorch-layout params to kernel-ready layouts.

    Runs once, OUTSIDE the jitted per-call path (no per-forward transposes)."""
    conv1_w = params["conv1_w"]      # (16, 3, 8, 8)  OIHW
    conv2_w = params["conv2_w"]      # (32, 16, 4, 4) OIHW
    fc1_w = params["fc1_w"]          # (256, 2592); torch input idx = c*81+oh*9+ow

    # conv1 slab weight (192, 16): rows (dI, dJ, rr, ss, cin); replicated on the
    # diagonal of a (768, 64) block-diagonal GEMM weight whose 4 column blocks
    # are the (r, s) sub-positions of the s2d(2) output layout.
    w1g = jnp.transpose(conv1_w.reshape(C1, C_IN, 2, 4, 2, 4),
                        (2, 4, 3, 5, 1, 0)).reshape(4 * 4 * 4 * C_IN, C1)
    w1bd = jnp.kron(jnp.eye(4, dtype=conv1_w.dtype), w1g)            # (768, 64)
    b1s = jnp.tile(params["conv1_b"], 4).reshape(1, Y1L)

    # conv2 as 4 shift weights (64, 32): rows (r, s, cin) of the s2d'd y1.
    w2s = jnp.transpose(conv2_w.reshape(C2, C1, 2, 2, 2, 2),
                        (2, 4, 3, 5, 1, 0)).reshape(4, Y1L, C2)
    b2 = params["conv2_b"].reshape(1, C2)

    # fc1: rows permuted from torch's NCHW flatten (c*81 + oh*9 + ow) to the
    # kernel's feat layout (P*32 + c, P = I*10 + J over the padded 10x10 s2d
    # grid). Rows for out-of-window positions and lane padding are zero.
    I = np.arange(NPOS) // G1
    J = np.arange(NPOS) % G1
    valid = (I < H2) & (J < H2)
    src = np.where(valid[:, None],
                   np.arange(C2)[None, :] * (H2 * H2) + (I * H2 + J)[:, None], 0)
    rows = jnp.asarray(fc1_w).T[src.reshape(-1)]                     # (3200, 256)
    rows = rows * jnp.asarray(np.repeat(valid, C2).astype(np.float32))[:, None]
    w1f = jnp.concatenate(
        [rows, jnp.zeros((FEAT - NPOS * C2, HID), fc1_w.dtype)], axis=0)
    b1f = params["fc1_b"].reshape(1, HID)

    # actor + critic heads fused into a single (256, A+1) weight / bias.
    head_w = jnp.concatenate([params["final_w"].T, params["critic_w"].T], axis=1)
    head_b = jnp.concatenate([params["final_b"], params["critic_b"]]
                             ).reshape(1, num_actions + 1)
    return {
        "conv1_w": w1bd.astype(WDTYPE), "conv1_b": b1s.astype(jnp.float32),
        "conv2_w": w2s.astype(WDTYPE), "conv2_b": b2.astype(jnp.float32),
        "fc1_w": w1f.astype(WDTYPE), "fc1_b": b1f.astype(jnp.float32),
        "head_w": head_w.astype(WDTYPE), "head_b": head_b.astype(jnp.float32),
    }


def init_params(key, num_actions):
    """Deterministic PyTorch-style uniform(-1/sqrt(fan_in), 1/sqrt(fan_in)) init."""
    def uni(k, shape, fan_in):
        bound = 1.0 / math.sqrt(fan_in)
        return jax.random.uniform(k, shape, jnp.float32, -bound, bound)

    ks = jax.random.split(key, 10)
    return {
        "conv1_w": uni(ks[0], (16, 3, 8, 8), 3 * 8 * 8),
        "conv1_b": uni(ks[1], (16,), 3 * 8 * 8),
        "conv2_w": uni(ks[2], (32, 16, 4, 4), 16 * 4 * 4),
        "conv2_b": uni(ks[3], (32,), 16 * 4 * 4),
        "fc1_w":   uni(ks[4], (256, 9 * 9 * 32), 9 * 9 * 32),
        "fc1_b":   uni(ks[5], (256,), 9 * 9 * 32),
        "final_w": uni(ks[6], (num_actions, 256), 256),
        "final_b": uni(ks[7], (num_actions,), 256),
        "critic_w": uni(ks[8], (1, 256), 256),
        "critic_b": uni(ks[9], (1,), 256),
    }


# ---------------------------- pure-JAX reference -----------------------------

def reference_forward(params, x_nchw):
    dn = jax.lax.conv_dimension_numbers(x_nchw.shape, params["conv1_w"].shape,
                                        ("NCHW", "OIHW", "NCHW"))
    y = jax.lax.conv_general_dilated(x_nchw, params["conv1_w"], (4, 4), "VALID",
                                     dimension_numbers=dn)
    y = jax.nn.relu(y + params["conv1_b"][None, :, None, None])
    dn2 = jax.lax.conv_dimension_numbers(y.shape, params["conv2_w"].shape,
                                         ("NCHW", "OIHW", "NCHW"))
    y = jax.lax.conv_general_dilated(y, params["conv2_w"], (2, 2), "VALID",
                                     dimension_numbers=dn2)
    y = jax.nn.relu(y + params["conv2_b"][None, :, None, None])
    feat = y.reshape(y.shape[0], -1)
    h = jax.nn.relu(feat @ params["fc1_w"].T + params["fc1_b"])
    logits = h @ params["final_w"].T + params["final_b"]
    value = h @ params["critic_w"].T + params["critic_b"]
    return jnp.squeeze(jax.nn.softmax(logits, -1)), jnp.squeeze(value)


# ----------------------------------- main -------------------------------------

if __name__ == "__main__":
    num_actions = 6
    batch = 2

    key = jax.random.PRNGKey(0)
    k_params, k_x = jax.random.split(key)
    params = init_params(k_params, num_actions)
    # Input is fixed by the module's fc1 (9*9*32) to 84x84 spatial, 3 channels.
    x = jax.random.normal(k_x, (batch, 3, 84, 84), jnp.float32)

    # One-time weight re-layout (outside the jitted per-call path).
    gemm_params = preprocess_params(params, num_actions)

    probs, value = cnn_policy_forward(gemm_params, x)
    jax.block_until_ready((probs, value))

    ref_probs, ref_value = reference_forward(params, x)
    assert probs.shape == (batch, num_actions) and value.shape == (batch,)
    # bf16 GEMM operands with f32 accumulation -> slightly looser tolerances
    # than a pure-f32 pipeline.
    assert jnp.allclose(probs, ref_probs, rtol=2e-2, atol=2e-3)
    assert jnp.allclose(value, ref_value, rtol=2e-2, atol=2e-2)
    assert jnp.allclose(jnp.sum(probs, axis=-1), 1.0, atol=2e-3)

    print("KERNEL_OK")
</pallas_src>

<mosaic_0001>
module attributes {stable_mosaic.version = 11 : i64} {
  func.func @_fused_kernel(%arg0: i32, %arg1: memref<200x768xbf16, #tpu.memory_space<vmem>>, %arg2: memref<768x64xbf16, #tpu.memory_space<vmem>>, %arg3: memref<1x64xf32, #tpu.memory_space<vmem>>, %arg4: memref<4x64x32xbf16, #tpu.memory_space<vmem>>, %arg5: memref<1x32xf32, #tpu.memory_space<vmem>>, %arg6: memref<1664x256xbf16, #tpu.memory_space<vmem>>, %arg7: memref<1x256xf32, #tpu.memory_space<vmem>>, %arg8: memref<256x7xbf16, #tpu.memory_space<vmem>>, %arg9: memref<1x7xf32, #tpu.memory_space<vmem>>, %arg10: memref<2x6xf32, #tpu.memory_space<vmem>>, %arg11: memref<2x1xf32, #tpu.memory_space<vmem>>, %arg12: memref<224x64xf32, #tpu.memory_space<vmem>>, %arg13: memref<2x2x1664xf32, #tpu.memory_space<vmem>>, %arg14: memref<2x256xf32, #tpu.memory_space<vmem>>) attributes {dimension_semantics = [#tpu.dimension_semantics<arbitrary>], iteration_bounds = array<i64: 2>, scalar_prefetch = 0 : i64, scratch_operands = 3 : i64, tpu.core_type = #tpu.core_type<tc>, window_params = [{pipeline_mode = #tpu.pipeline_mode<synchronous>, transform_indices = @transform_0, window_bounds = array<i64: 200, 768>}, {pipeline_mode = #tpu.pipeline_mode<synchronous>, transform_indices = @transform_1, window_bounds = array<i64: 768, 64>}, {pipeline_mode = #tpu.pipeline_mode<synchronous>, transform_indices = @transform_2, window_bounds = array<i64: 1, 64>}, {pipeline_mode = #tpu.pipeline_mode<synchronous>, transform_indices = @transform_3, window_bounds = array<i64: 4, 64, 32>}, {pipeline_mode = #tpu.pipeline_mode<synchronous>, transform_indices = @transform_4, window_bounds = array<i64: 1, 32>}, {transform_indices = @transform_5, window_bounds = array<i64: 1664, 256>}, {pipeline_mode = #tpu.pipeline_mode<synchronous>, transform_indices = @transform_6, window_bounds = array<i64: 1, 256>}, {pipeline_mode = #tpu.pipeline_mode<synchronous>, transform_indices = @transform_7, window_bounds = array<i64: 256, 7>}, {pipeline_mode = #tpu.pipeline_mode<synchronous>, transform_indices = @transform_8, window_bounds = array<i64: 1, 7>}, {pipeline_mode = #tpu.pipeline_mode<synchronous>, transform_indices = @transform_9, window_bounds = array<i64: 2, 6>}, {pipeline_mode = #tpu.pipeline_mode<synchronous>, transform_indices = @transform_10, window_bounds = array<i64: 2, 1>}]} {
    %c0_i32 = arith.constant 0 : i32
    %0 = arith.cmpi eq, %arg0, %c0_i32 : i32
    %1 = arith.extui %0 : i1 to i32
    %c0_i32_0 = arith.constant 0 : i32
    %2 = arith.cmpi ne, %1, %c0_i32_0 : i32
    scf.if %2 {
      %c0_9 = arith.constant 0 : index
      %c0_10 = arith.constant 0 : index
      %15 = vector.load %arg1[%c0_9, %c0_10] : memref<200x768xbf16, #tpu.memory_space<vmem>>, vector<200x768xbf16>
      %c0_11 = arith.constant 0 : index
      %c0_12 = arith.constant 0 : index
      %16 = vector.load %arg2[%c0_11, %c0_12] : memref<768x64xbf16, #tpu.memory_space<vmem>>, vector<768x64xbf16>
      %cst_13 = arith.constant dense<0.000000e+00> : vector<200x64xf32>
      %17 = tpu.matmul %15, %16, %cst_13 {dimension_numbers = #tpu.dot_dimension_numbers<[1], [0], [0], [1], [0, 0, 1, 1], [], []>} : vector<200x768xbf16>, vector<768x64xbf16>, vector<200x64xf32> -> vector<200x64xf32>
      %c0_14 = arith.constant 0 : index
      %c0_15 = arith.constant 0 : index
      %18 = vector.load %arg3[%c0_14, %c0_15] : memref<1x64xf32, #tpu.memory_space<vmem>>, vector<1x64xf32>
      %19 = vector.broadcast %18 : vector<1x64xf32> to vector<200x64xf32>
      %20 = arith.addf %17, %19 : vector<200x64xf32>
      %cst_16 = arith.constant 0.000000e+00 : f32
      %21 = vector.broadcast %cst_16 : f32 to vector<200x64xf32>
      %22 = arith.maximumf %20, %21 : vector<200x64xf32>
      %c0_17 = arith.constant 0 : index
      %c0_18 = arith.constant 0 : index
      %23 = vector.load %arg12[%c0_17, %c0_18] : memref<224x64xf32, #tpu.memory_space<vmem>>, vector<200x64xf32>
      tpu.vector_store %arg12[%c0_17, %c0_18], %22 {strides = array<i32>} : memref<224x64xf32, #tpu.memory_space<vmem>>, vector<200x64xf32>,
      %cst_19 = arith.constant 0.000000e+00 : f32
      %24 = vector.broadcast %cst_19 : f32 to vector<24x64xf32>
      %c200 = arith.constant 200 : index
      %c0_20 = arith.constant 0 : index
      %25 = vector.load %arg12[%c200, %c0_20] : memref<224x64xf32, #tpu.memory_space<vmem>>, vector<24x64xf32>
      tpu.vector_store %arg12[%c200, %c0_20], %24 {strides = array<i32>} : memref<224x64xf32, #tpu.memory_space<vmem>>, vector<24x64xf32>,
      %cst_21 = arith.constant 0.000000e+00 : f32
      %26 = vector.broadcast %cst_21 : f32 to vector<200x32xf32>
      %c0_22 = arith.constant 0 : index
      %c0_23 = arith.constant 0 : index
      %27 = vector.load %arg12[%c0_22, %c0_23] : memref<224x64xf32, #tpu.memory_space<vmem>>, vector<200x64xf32>
      %28 = arith.truncf %27 : vector<200x64xf32> to vector<200x64xbf16>
      %c0_24 = arith.constant 0 : index
      %c0_25 = arith.constant 0 : index
      %c0_26 = arith.constant 0 : index
      %29 = vector.load %arg4[%c0_24, %c0_25, %c0_26] : memref<4x64x32xbf16, #tpu.memory_space<vmem>>, vector<1x64x32xbf16>
      %30 = vector.shape_cast %29 : vector<1x64x32xbf16> to vector<64x32xbf16>
      %cst_27 = arith.constant dense<0.000000e+00> : vector<200x32xf32>
      %31 = tpu.matmul %28, %30, %cst_27 {dimension_numbers = #tpu.dot_dimension_numbers<[1], [0], [0], [1], [0, 0, 1, 1], [], []>} : vector<200x64xbf16>, vector<64x32xbf16>, vector<200x32xf32> -> vector<200x32xf32>
      %32 = arith.addf %26, %31 : vector<200x32xf32>
      %c2 = arith.constant 2 : index
      %c0_28 = arith.constant 0 : index
      %33 = vector.load %arg12[%c2, %c0_28] : memref<224x64xf32, #tpu.memory_space<vmem>>, vector<200x64xf32>
      %34 = arith.truncf %33 : vector<200x64xf32> to vector<200x64xbf16>
      %c1 = arith.constant 1 : index
      %c0_29 = arith.constant 0 : index
      %c0_30 = arith.constant 0 : index
      %35 = vector.load %arg4[%c1, %c0_29, %c0_30] : memref<4x64x32xbf16, #tpu.memory_space<vmem>>, vector<1x64x32xbf16>
      %36 = vector.shape_cast %35 : vector<1x64x32xbf16> to vector<64x32xbf16>
      %cst_31 = arith.constant dense<0.000000e+00> : vector<200x32xf32>
      %37 = tpu.matmul %34, %36, %cst_31 {dimension_numbers = #tpu.dot_dimension_numbers<[1], [0], [0], [1], [0, 0, 1, 1], [], []>} : vector<200x64xbf16>, vector<64x32xbf16>, vector<200x32xf32> -> vector<200x32xf32>
      %38 = arith.addf %32, %37 : vector<200x32xf32>
      %c20 = arith.constant 20 : index
      %c0_32 = arith.constant 0 : index
      %39 = vector.load %arg12[%c20, %c0_32] : memref<224x64xf32, #tpu.memory_space<vmem>>, vector<200x64xf32>
      %40 = arith.truncf %39 : vector<200x64xf32> to vector<200x64xbf16>
      %c2_33 = arith.constant 2 : index
      %c0_34 = arith.constant 0 : index
      %c0_35 = arith.constant 0 : index
      %41 = vector.load %arg4[%c2_33, %c0_34, %c0_35] : memref<4x64x32xbf16, #tpu.memory_space<vmem>>, vector<1x64x32xbf16>
      %42 = vector.shape_cast %41 : vector<1x64x32xbf16> to vector<64x32xbf16>
      %cst_36 = arith.constant dense<0.000000e+00> : vector<200x32xf32>
      %43 = tpu.matmul %40, %42, %cst_36 {dimension_numbers = #tpu.dot_dimension_numbers<[1], [0], [0], [1], [0, 0, 1, 1], [], []>} : vector<200x64xbf16>, vector<64x32xbf16>, vector<200x32xf32> -> vector<200x32xf32>
      %44 = arith.addf %38, %43 : vector<200x32xf32>
      %c22 = arith.constant 22 : index
      %c0_37 = arith.constant 0 : index
      %45 = vector.load %arg12[%c22, %c0_37] : memref<224x64xf32, #tpu.memory_space<vmem>>, vector<200x64xf32>
      %46 = arith.truncf %45 : vector<200x64xf32> to vector<200x64xbf16>
      %c3 = arith.constant 3 : index
      %c0_38 = arith.constant 0 : index
      %c0_39 = arith.constant 0 : index
      %47 = vector.load %arg4[%c3, %c0_38, %c0_39] : memref<4x64x32xbf16, #tpu.memory_space<vmem>>, vector<1x64x32xbf16>
      %48 = vector.shape_cast %47 : vector<1x64x32xbf16> to vector<64x32xbf16>
      %cst_40 = arith.constant dense<0.000000e+00> : vector<200x32xf32>
      %49 = tpu.matmul %46, %48, %cst_40 {dimension_numbers = #tpu.dot_dimension_numbers<[1], [0], [0], [1], [0, 0, 1, 1], [], []>} : vector<200x64xbf16>, vector<64x32xbf16>, vector<200x32xf32> -> vector<200x32xf32>
      %50 = arith.addf %44, %49 : vector<200x32xf32>
      %c0_41 = arith.constant 0 : index
      %c0_42 = arith.constant 0 : index
      %51 = vector.load %arg5[%c0_41, %c0_42] : memref<1x32xf32, #tpu.memory_space<vmem>>, vector<1x32xf32>
      %52 = vector.broadcast %51 : vector<1x32xf32> to vector<200x32xf32>
      %53 = arith.addf %50, %52 : vector<200x32xf32>
      %cst_43 = arith.constant 0.000000e+00 : f32
      %54 = vector.broadcast %cst_43 : f32 to vector<200x32xf32>
      %55 = arith.maximumf %53, %54 : vector<200x32xf32>
      %56 = vector.extract_strided_slice %55 {offsets = [0, 0], sizes = [8, 32], strides = [1, 1]} : vector<200x32xf32> to vector<8x32xf32>
      %57 = vector.extract_strided_slice %56 {offsets = [0, 0], sizes = [2, 32], strides = [1, 1]} : vector<8x32xf32> to vector<2x32xf32>
      %58 = vector.extract_strided_slice %56 {offsets = [2, 0], sizes = [2, 32], strides = [1, 1]} : vector<8x32xf32> to vector<2x32xf32>
      %59 = vector.extract_strided_slice %56 {offsets = [4, 0], sizes = [2, 32], strides = [1, 1]} : vector<8x32xf32> to vector<2x32xf32>
      %60 = vector.extract_strided_slice %56 {offsets = [6, 0], sizes = [2, 32], strides = [1, 1]} : vector<8x32xf32> to vector<2x32xf32>
      %61 = tpu.concatenate %57, %58, %59, %60 in 1 : vector<2x32xf32>, vector<2x32xf32>, vector<2x32xf32>, vector<2x32xf32> -> vector<2x128xf32>
      %c0_44 = arith.constant 0 : index
      %c0_45 = arith.constant 0 : index
      %c0_46 = arith.constant 0 : index
      %62 = vector.load %arg13[%c0_44, %c0_45, %c0_46] : memref<2x2x1664xf32, #tpu.memory_space<vmem>>, vector<1x2x128xf32>
      %63 = vector.shape_cast %62 : vector<1x2x128xf32> to vector<2x128xf32>
      %64 = vector.shape_cast %61 : vector<2x128xf32> to vector<1x2x128xf32>
      tpu.vector_store %arg13[%c0_44, %c0_45, %c0_46], %64 {strides = array<i32>} : memref<2x2x1664xf32, #tpu.memory_space<vmem>>, vector<1x2x128xf32>,
      %65 = vector.extract_strided_slice %55 {offsets = [8, 0], sizes = [8, 32], strides = [1, 1]} : vector<200x32xf32> to vector<8x32xf32>
      %66 = vector.extract_strided_slice %65 {offsets = [0, 0], sizes = [2, 32], strides = [1, 1]} : vector<8x32xf32> to vector<2x32xf32>
      %67 = vector.extract_strided_slice %65 {offsets = [2, 0], sizes = [2, 32], strides = [1, 1]} : vector<8x32xf32> to vector<2x32xf32>
      %68 = vector.extract_strided_slice %65 {offsets = [4, 0], sizes = [2, 32], strides = [1, 1]} : vector<8x32xf32> to vector<2x32xf32>
      %69 = vector.extract_strided_slice %65 {offsets = [6, 0], sizes = [2, 32], strides = [1, 1]} : vector<8x32xf32> to vector<2x32xf32>
      %70 = tpu.concatenate %66, %67, %68, %69 in 1 : vector<2x32xf32>, vector<2x32xf32>, vector<2x32xf32>, vector<2x32xf32> -> vector<2x128xf32>
      %c0_47 = arith.constant 0 : index
      %c0_48 = arith.constant 0 : index
      %c128 = arith.constant 128 : index
      %71 = vector.load %arg13[%c0_47, %c0_48, %c128] : memref<2x2x1664xf32, #tpu.memory_space<vmem>>, vector<1x2x128xf32>
      %72 = vector.shape_cast %71 : vector<1x2x128xf32> to vector<2x128xf32>
      %73 = vector.shape_cast %70 : vector<2x128xf32> to vector<1x2x128xf32>
      tpu.vector_store %arg13[%c0_47, %c0_48, %c128], %73 {strides = array<i32>} : memref<2x2x1664xf32, #tpu.memory_space<vmem>>, vector<1x2x128xf32>,
      %74 = vector.extract_strided_slice %55 {offsets = [16, 0], sizes = [8, 32], strides = [1, 1]} : vector<200x32xf32> to vector<8x32xf32>
      %75 = vector.extract_strided_slice %74 {offsets = [0, 0], sizes = [2, 32], strides = [1, 1]} : vector<8x32xf32> to vector<2x32xf32>
      %76 = vector.extract_strided_slice %74 {offsets = [2, 0], sizes = [2, 32], strides = [1, 1]} : vector<8x32xf32> to vector<2x32xf32>
      %77 = vector.extract_strided_slice %74 {offsets = [4, 0], sizes = [2, 32], strides = [1, 1]} : vector<8x32xf32> to vector<2x32xf32>
      %78 = vector.extract_strided_slice %74 {offsets = [6, 0], sizes = [2, 32], strides = [1, 1]} : vector<8x32xf32> to vector<2x32xf32>
      %79 = tpu.concatenate %75, %76, %77, %78 in 1 : vector<2x32xf32>, vector<2x32xf32>, vector<2x32xf32>, vector<2x32xf32> -> vector<2x128xf32>
      %c0_49 = arith.constant 0 : index
      %c0_50 = arith.constant 0 : index
      %c256 = arith.constant 256 : index
      %80 = vector.load %arg13[%c0_49, %c0_50, %c256] : memref<2x2x1664xf32, #tpu.memory_space<vmem>>, vector<1x2x128xf32>
      %81 = vector.shape_cast %80 : vector<1x2x128xf32> to vector<2x128xf32>
      %82 = vector.shape_cast %79 : vector<2x128xf32> to vector<1x2x128xf32>
      tpu.vector_store %arg13[%c0_49, %c0_50, %c256], %82 {strides = array<i32>} : memref<2x2x1664xf32, #tpu.memory_space<vmem>>, vector<1x2x128xf32>,
      %83 = vector.extract_strided_slice %55 {offsets = [24, 0], sizes = [8, 32], strides = [1, 1]} : vector<200x32xf32> to vector<8x32xf32>
      %84 = vector.extract_strided_slice %83 {offsets = [0, 0], sizes = [2, 32], strides = [1, 1]} : vector<8x32xf32> to vector<2x32xf32>
      %85 = vector.extract_strided_slice %83 {offsets = [2, 0], sizes = [2, 32], strides = [1, 1]} : vector<8x32xf32> to vector<2x32xf32>
      %86 = vector.extract_strided_slice %83 {offsets = [4, 0], sizes = [2, 32], strides = [1, 1]} : vector<8x32xf32> to vector<2x32xf32>
      %87 = vector.extract_strided_slice %83 {offsets = [6, 0], sizes = [2, 32], strides = [1, 1]} : vector<8x32xf32> to vector<2x32xf32>
      %88 = tpu.concatenate %84, %85, %86, %87 in 1 : vector<2x32xf32>, vector<2x32xf32>, vector<2x32xf32>, vector<2x32xf32> -> vector<2x128xf32>
      %c0_51 = arith.constant 0 : index
      %c0_52 = arith.constant 0 : index
      %c384 = arith.constant 384 : index
      %89 = vector.load %arg13[%c0_51, %c0_52, %c384] : memref<2x2x1664xf32, #tpu.memory_space<vmem>>, vector<1x2x128xf32>
      %90 = vector.shape_cast %89 : vector<1x2x128xf32> to vector<2x128xf32>
      %91 = vector.shape_cast %88 : vector<2x128xf32> to vector<1x2x128xf32>
      tpu.vector_store %arg13[%c0_51, %c0_52, %c384], %91 {strides = array<i32>} : memref<2x2x1664xf32, #tpu.memory_space<vmem>>, vector<1x2x128xf32>,
      %92 = vector.extract_strided_slice %55 {offsets = [32, 0], sizes = [8, 32], strides = [1, 1]} : vector<200x32xf32> to vector<8x32xf32>
      %93 = vector.extract_strided_slice %92 {offsets = [0, 0], sizes = [2, 32], strides = [1, 1]} : vector<8x32xf32> to vector<2x32xf32>
      %94 = vector.extract_strided_slice %92 {offsets = [2, 0], sizes = [2, 32], strides = [1, 1]} : vector<8x32xf32> to vector<2x32xf32>
      %95 = vector.extract_strided_slice %92 {offsets = [4, 0], sizes = [2, 32], strides = [1, 1]} : vector<8x32xf32> to vector<2x32xf32>
      %96 = vector.extract_strided_slice %92 {offsets = [6, 0], sizes = [2, 32], strides = [1, 1]} : vector<8x32xf32> to vector<2x32xf32>
      %97 = tpu.concatenate %93, %94, %95, %96 in 1 : vector<2x32xf32>, vector<2x32xf32>, vector<2x32xf32>, vector<2x32xf32> -> vector<2x128xf32>
      %c0_53 = arith.constant 0 : index
      %c0_54 = arith.constant 0 : index
      %c512 = arith.constant 512 : index
      %98 = vector.load %arg13[%c0_53, %c0_54, %c512] : memref<2x2x1664xf32, #tpu.memory_space<vmem>>, vector<1x2x128xf32>
      %99 = vector.shape_cast %98 : vector<1x2x128xf32> to vector<2x128xf32>
      %100 = vector.shape_cast %97 : vector<2x128xf32> to vector<1x2x128xf32>
      tpu.vector_store %arg13[%c0_53, %c0_54, %c512], %100 {strides = array<i32>} : memref<2x2x1664xf32, #tpu.memory_space<vmem>>, vector<1x2x128xf32>,
      %101 = vector.extract_strided_slice %55 {offsets = [40, 0], sizes = [8, 32], strides = [1, 1]} : vector<200x32xf32> to vector<8x32xf32>
      %102 = vector.extract_strided_slice %101 {offsets = [0, 0], sizes = [2, 32], strides = [1, 1]} : vector<8x32xf32> to vector<2x32xf32>
      %103 = vector.extract_strided_slice %101 {offsets = [2, 0], sizes = [2, 32], strides = [1, 1]} : vector<8x32xf32> to vector<2x32xf32>
      %104 = vector.extract_strided_slice %101 {offsets = [4, 0], sizes = [2, 32], strides = [1, 1]} : vector<8x32xf32> to vector<2x32xf32>
      %105 = vector.extract_strided_slice %101 {offsets = [6, 0], sizes = [2, 32], strides = [1, 1]} : vector<8x32xf32> to vector<2x32xf32>
      %106 = tpu.concatenate %102, %103, %104, %105 in 1 : vector<2x32xf32>, vector<2x32xf32>, vector<2x32xf32>, vector<2x32xf32> -> vector<2x128xf32>
      %c0_55 = arith.constant 0 : index
      %c0_56 = arith.constant 0 : index
      %c640 = arith.constant 640 : index
      %107 = vector.load %arg13[%c0_55, %c0_56, %c640] : memref<2x2x1664xf32, #tpu.memory_space<vmem>>, vector<1x2x128xf32>
      %108 = vector.shape_cast %107 : vector<1x2x128xf32> to vector<2x128xf32>
      %109 = vector.shape_cast %106 : vector<2x128xf32> to vector<1x2x128xf32>
      tpu.vector_store %arg13[%c0_55, %c0_56, %c640], %109 {strides = array<i32>} : memref<2x2x1664xf32, #tpu.memory_space<vmem>>, vector<1x2x128xf32>,
      %110 = vector.extract_strided_slice %55 {offsets = [48, 0], sizes = [8, 32], strides = [1, 1]} : vector<200x32xf32> to vector<8x32xf32>
      %111 = vector.extract_strided_slice %110 {offsets = [0, 0], sizes = [2, 32], strides = [1, 1]} : vector<8x32xf32> to vector<2x32xf32>
      %112 = vector.extract_strided_slice %110 {offsets = [2, 0], sizes = [2, 32], strides = [1, 1]} : vector<8x32xf32> to vector<2x32xf32>
      %113 = vector.extract_strided_slice %110 {offsets = [4, 0], sizes = [2, 32], strides = [1, 1]} : vector<8x32xf32> to vector<2x32xf32>
      %114 = vector.extract_strided_slice %110 {offsets = [6, 0], sizes = [2, 32], strides = [1, 1]} : vector<8x32xf32> to vector<2x32xf32>
      %115 = tpu.concatenate %111, %112, %113, %114 in 1 : vector<2x32xf32>, vector<2x32xf32>, vector<2x32xf32>, vector<2x32xf32> -> vector<2x128xf32>
      %c0_57 = arith.constant 0 : index
      %c0_58 = arith.constant 0 : index
      %c768 = arith.constant 768 : index
      %116 = vector.load %arg13[%c0_57, %c0_58, %c768] : memref<2x2x1664xf32, #tpu.memory_space<vmem>>, vector<1x2x128xf32>
      %117 = vector.shape_cast %116 : vector<1x2x128xf32> to vector<2x128xf32>
      %118 = vector.shape_cast %115 : vector<2x128xf32> to vector<1x2x128xf32>
      tpu.vector_store %arg13[%c0_57, %c0_58, %c768], %118 {strides = array<i32>} : memref<2x2x1664xf32, #tpu.memory_space<vmem>>, vector<1x2x128xf32>,
      %119 = vector.extract_strided_slice %55 {offsets = [56, 0], sizes = [8, 32], strides = [1, 1]} : vector<200x32xf32> to vector<8x32xf32>
      %120 = vector.extract_strided_slice %119 {offsets = [0, 0], sizes = [2, 32], strides = [1, 1]} : vector<8x32xf32> to vector<2x32xf32>
      %121 = vector.extract_strided_slice %119 {offsets = [2, 0], sizes = [2, 32], strides = [1, 1]} : vector<8x32xf32> to vector<2x32xf32>
      %122 = vector.extract_strided_slice %119 {offsets = [4, 0], sizes = [2, 32], strides = [1, 1]} : vector<8x32xf32> to vector<2x32xf32>
      %123 = vector.extract_strided_slice %119 {offsets = [6, 0], sizes = [2, 32], strides = [1, 1]} : vector<8x32xf32> to vector<2x32xf32>
      %124 = tpu.concatenate %120, %121, %122, %123 in 1 : vector<2x32xf32>, vector<2x32xf32>, vector<2x32xf32>, vector<2x32xf32> -> vector<2x128xf32>
      %c0_59 = arith.constant 0 : index
      %c0_60 = arith.constant 0 : index
      %c896 = arith.constant 896 : index
      %125 = vector.load %arg13[%c0_59, %c0_60, %c896] : memref<2x2x1664xf32, #tpu.memory_space<vmem>>, vector<1x2x128xf32>
      %126 = vector.shape_cast %125 : vector<1x2x128xf32> to vector<2x128xf32>
      %127 = vector.shape_cast %124 : vector<2x128xf32> to vector<1x2x128xf32>
      tpu.vector_store %arg13[%c0_59, %c0_60, %c896], %127 {strides = array<i32>} : memref<2x2x1664xf32, #tpu.memory_space<vmem>>, vector<1x2x128xf32>,
      %128 = vector.extract_strided_slice %55 {offsets = [64, 0], sizes = [8, 32], strides = [1, 1]} : vector<200x32xf32> to vector<8x32xf32>
      %129 = vector.extract_strided_slice %128 {offsets = [0, 0], sizes = [2, 32], strides = [1, 1]} : vector<8x32xf32> to vector<2x32xf32>
      %130 = vector.extract_strided_slice %128 {offsets = [2, 0], sizes = [2, 32], strides = [1, 1]} : vector<8x32xf32> to vector<2x32xf32>
      %131 = vector.extract_strided_slice %128 {offsets = [4, 0], sizes = [2, 32], strides = [1, 1]} : vector<8x32xf32> to vector<2x32xf32>
      %132 = vector.extract_strided_slice %128 {offsets = [6, 0], sizes = [2, 32], strides = [1, 1]} : vector<8x32xf32> to vector<2x32xf32>
      %133 = tpu.concatenate %129, %130, %131, %132 in 1 : vector<2x32xf32>, vector<2x32xf32>, vector<2x32xf32>, vector<2x32xf32> -> vector<2x128xf32>
      %c0_61 = arith.constant 0 : index
      %c0_62 = arith.constant 0 : index
      %c1024 = arith.constant 1024 : index
      %134 = vector.load %arg13[%c0_61, %c0_62, %c1024] : memref<2x2x1664xf32, #tpu.memory_space<vmem>>, vector<1x2x128xf32>
      %135 = vector.shape_cast %134 : vector<1x2x128xf32> to vector<2x128xf32>
      %136 = vector.shape_cast %133 : vector<2x128xf32> to vector<1x2x128xf32>
      tpu.vector_store %arg13[%c0_61, %c0_62, %c1024], %136 {strides = array<i32>} : memref<2x2x1664xf32, #tpu.memory_space<vmem>>, vector<1x2x128xf32>,
      %137 = vector.extract_strided_slice %55 {offsets = [72, 0], sizes = [8, 32], strides = [1, 1]} : vector<200x32xf32> to vector<8x32xf32>
      %138 = vector.extract_strided_slice %137 {offsets = [0, 0], sizes = [2, 32], strides = [1, 1]} : vector<8x32xf32> to vector<2x32xf32>
      %139 = vector.extract_strided_slice %137 {offsets = [2, 0], sizes = [2, 32], strides = [1, 1]} : vector<8x32xf32> to vector<2x32xf32>
      %140 = vector.extract_strided_slice %137 {offsets = [4, 0], sizes = [2, 32], strides = [1, 1]} : vector<8x32xf32> to vector<2x32xf32>
      %141 = vector.extract_strided_slice %137 {offsets = [6, 0], sizes = [2, 32], strides = [1, 1]} : vector<8x32xf32> to vector<2x32xf32>
      %142 = tpu.concatenate %138, %139, %140, %141 in 1 : vector<2x32xf32>, vector<2x32xf32>, vector<2x32xf32>, vector<2x32xf32> -> vector<2x128xf32>
      %c0_63 = arith.constant 0 : index
      %c0_64 = arith.constant 0 : index
      %c1152 = arith.constant 1152 : index
      %143 = vector.load %arg13[%c0_63, %c0_64, %c1152] : memref<2x2x1664xf32, #tpu.memory_space<vmem>>, vector<1x2x128xf32>
      %144 = vector.shape_cast %143 : vector<1x2x128xf32> to vector<2x128xf32>
      %145 = vector.shape_cast %142 : vector<2x128xf32> to vector<1x2x128xf32>
      tpu.vector_store %arg13[%c0_63, %c0_64, %c1152], %145 {strides = array<i32>} : memref<2x2x1664xf32, #tpu.memory_space<vmem>>, vector<1x2x128xf32>,
      %146 = vector.extract_strided_slice %55 {offsets = [80, 0], sizes = [8, 32], strides = [1, 1]} : vector<200x32xf32> to vector<8x32xf32>
      %147 = vector.extract_strided_slice %146 {offsets = [0, 0], sizes = [2, 32], strides = [1, 1]} : vector<8x32xf32> to vector<2x32xf32>
      %148 = vector.extract_strided_slice %146 {offsets = [2, 0], sizes = [2, 32], strides = [1, 1]} : vector<8x32xf32> to vector<2x32xf32>
      %149 = vector.extract_strided_slice %146 {offsets = [4, 0], sizes = [2, 32], strides = [1, 1]} : vector<8x32xf32> to vector<2x32xf32>
      %150 = vector.extract_strided_slice %146 {offsets = [6, 0], sizes = [2, 32], strides = [1, 1]} : vector<8x32xf32> to vector<2x32xf32>
      %151 = tpu.concatenate %147, %148, %149, %150 in 1 : vector<2x32xf32>, vector<2x32xf32>, vector<2x32xf32>, vector<2x32xf32> -> vector<2x128xf32>
      %c0_65 = arith.constant 0 : index
      %c0_66 = arith.constant 0 : index
      %c1280 = arith.constant 1280 : index
      %152 = vector.load %arg13[%c0_65, %c0_66, %c1280] : memref<2x2x1664xf32, #tpu.memory_space<vmem>>, vector<1x2x128xf32>
      %153 = vector.shape_cast %152 : vector<1x2x128xf32> to vector<2x128xf32>
      %154 = vector.shape_cast %151 : vector<2x128xf32> to vector<1x2x128xf32>
      tpu.vector_store %arg13[%c0_65, %c0_66, %c1280], %154 {strides = array<i32>} : memref<2x2x1664xf32, #tpu.memory_space<vmem>>, vector<1x2x128xf32>,
      %155 = vector.extract_strided_slice %55 {offsets = [88, 0], sizes = [8, 32], strides = [1, 1]} : vector<200x32xf32> to vector<8x32xf32>
      %156 = vector.extract_strided_slice %155 {offsets = [0, 0], sizes = [2, 32], strides = [1, 1]} : vector<8x32xf32> to vector<2x32xf32>
      %157 = vector.extract_strided_slice %155 {offsets = [2, 0], sizes = [2, 32], strides = [1, 1]} : vector<8x32xf32> to vector<2x32xf32>
      %158 = vector.extract_strided_slice %155 {offsets = [4, 0], sizes = [2, 32], strides = [1, 1]} : vector<8x32xf32> to vector<2x32xf32>
      %159 = vector.extract_strided_slice %155 {offsets = [6, 0], sizes = [2, 32], strides = [1, 1]} : vector<8x32xf32> to vector<2x32xf32>
      %160 = tpu.concatenate %156, %157, %158, %159 in 1 : vector<2x32xf32>, vector<2x32xf32>, vector<2x32xf32>, vector<2x32xf32> -> vector<2x128xf32>
      %c0_67 = arith.constant 0 : index
      %c0_68 = arith.constant 0 : index
      %c1408 = arith.constant 1408 : index
      %161 = vector.load %arg13[%c0_67, %c0_68, %c1408] : memref<2x2x1664xf32, #tpu.memory_space<vmem>>, vector<1x2x128xf32>
      %162 = vector.shape_cast %161 : vector<1x2x128xf32> to vector<2x128xf32>
      %163 = vector.shape_cast %160 : vector<2x128xf32> to vector<1x2x128xf32>
      tpu.vector_store %arg13[%c0_67, %c0_68, %c1408], %163 {strides = array<i32>} : memref<2x2x1664xf32, #tpu.memory_space<vmem>>, vector<1x2x128xf32>,
      %164 = vector.extract_strided_slice %55 {offsets = [96, 0], sizes = [8, 32], strides = [1, 1]} : vector<200x32xf32> to vector<8x32xf32>
      %165 = vector.extract_strided_slice %164 {offsets = [0, 0], sizes = [2, 32], strides = [1, 1]} : vector<8x32xf32> to vector<2x32xf32>
      %166 = vector.extract_strided_slice %164 {offsets = [2, 0], sizes = [2, 32], strides = [1, 1]} : vector<8x32xf32> to vector<2x32xf32>
      %167 = vector.extract_strided_slice %164 {offsets = [4, 0], sizes = [2, 32], strides = [1, 1]} : vector<8x32xf32> to vector<2x32xf32>
      %168 = vector.extract_strided_slice %164 {offsets = [6, 0], sizes = [2, 32], strides = [1, 1]} : vector<8x32xf32> to vector<2x32xf32>
      %169 = tpu.concatenate %165, %166, %167, %168 in 1 : vector<2x32xf32>, vector<2x32xf32>, vector<2x32xf32>, vector<2x32xf32> -> vector<2x128xf32>
      %c0_69 = arith.constant 0 : index
      %c0_70 = arith.constant 0 : index
      %c1536 = arith.constant 1536 : index
      %170 = vector.load %arg13[%c0_69, %c0_70, %c1536] : memref<2x2x1664xf32, #tpu.memory_space<vmem>>, vector<1x2x128xf32>
      %171 = vector.shape_cast %170 : vector<1x2x128xf32> to vector<2x128xf32>
      %172 = vector.shape_cast %169 : vector<2x128xf32> to vector<1x2x128xf32>
      tpu.vector_store %arg13[%c0_69, %c0_70, %c1536], %172 {strides = array<i32>} : memref<2x2x1664xf32, #tpu.memory_space<vmem>>, vector<1x2x128xf32>,
      %173 = vector.extract_strided_slice %55 {offsets = [104, 0], sizes = [8, 32], strides = [1, 1]} : vector<200x32xf32> to vector<8x32xf32>
      %174 = vector.extract_strided_slice %173 {offsets = [0, 0], sizes = [2, 32], strides = [1, 1]} : vector<8x32xf32> to vector<2x32xf32>
      %175 = vector.extract_strided_slice %173 {offsets = [2, 0], sizes = [2, 32], strides = [1, 1]} : vector<8x32xf32> to vector<2x32xf32>
      %176 = vector.extract_strided_slice %173 {offsets = [4, 0], sizes = [2, 32], strides = [1, 1]} : vector<8x32xf32> to vector<2x32xf32>
      %177 = vector.extract_strided_slice %173 {offsets = [6, 0], sizes = [2, 32], strides = [1, 1]} : vector<8x32xf32> to vector<2x32xf32>
      %178 = tpu.concatenate %174, %175, %176, %177 in 1 : vector<2x32xf32>, vector<2x32xf32>, vector<2x32xf32>, vector<2x32xf32> -> vector<2x128xf32>
      %c1_71 = arith.constant 1 : index
      %c0_72 = arith.constant 0 : index
      %c0_73 = arith.constant 0 : index
      %179 = vector.load %arg13[%c1_71, %c0_72, %c0_73] : memref<2x2x1664xf32, #tpu.memory_space<vmem>>, vector<1x2x128xf32>
      %180 = vector.shape_cast %179 : vector<1x2x128xf32> to vector<2x128xf32>
      %181 = vector.shape_cast %178 : vector<2x128xf32> to vector<1x2x128xf32>
      tpu.vector_store %arg13[%c1_71, %c0_72, %c0_73], %181 {strides = array<i32>} : memref<2x2x1664xf32, #tpu.memory_space<vmem>>, vector<1x2x128xf32>,
      %182 = vector.extract_strided_slice %55 {offsets = [112, 0], sizes = [8, 32], strides = [1, 1]} : vector<200x32xf32> to vector<8x32xf32>
      %183 = vector.extract_strided_slice %182 {offsets = [0, 0], sizes = [2, 32], strides = [1, 1]} : vector<8x32xf32> to vector<2x32xf32>
      %184 = vector.extract_strided_slice %182 {offsets = [2, 0], sizes = [2, 32], strides = [1, 1]} : vector<8x32xf32> to vector<2x32xf32>
      %185 = vector.extract_strided_slice %182 {offsets = [4, 0], sizes = [2, 32], strides = [1, 1]} : vector<8x32xf32> to vector<2x32xf32>
      %186 = vector.extract_strided_slice %182 {offsets = [6, 0], sizes = [2, 32], strides = [1, 1]} : vector<8x32xf32> to vector<2x32xf32>
      %187 = tpu.concatenate %183, %184, %185, %186 in 1 : vector<2x32xf32>, vector<2x32xf32>, vector<2x32xf32>, vector<2x32xf32> -> vector<2x128xf32>
      %c1_74 = arith.constant 1 : index
      %c0_75 = arith.constant 0 : index
      %c128_76 = arith.constant 128 : index
      %188 = vector.load %arg13[%c1_74, %c0_75, %c128_76] : memref<2x2x1664xf32, #tpu.memory_space<vmem>>, vector<1x2x128xf32>
      %189 = vector.shape_cast %188 : vector<1x2x128xf32> to vector<2x128xf32>
      %190 = vector.shape_cast %187 : vector<2x128xf32> to vector<1x2x128xf32>
      tpu.vector_store %arg13[%c1_74, %c0_75, %c128_76], %190 {strides = array<i32>} : memref<2x2x1664xf32, #tpu.memory_space<vmem>>, vector<1x2x128xf32>,
      %191 = vector.extract_strided_slice %55 {offsets = [120, 0], sizes = [8, 32], strides = [1, 1]} : vector<200x32xf32> to vector<8x32xf32>
      %192 = vector.extract_strided_slice %191 {offsets = [0, 0], sizes = [2, 32], strides = [1, 1]} : vector<8x32xf32> to vector<2x32xf32>
      %193 = vector.extract_strided_slice %191 {offsets = [2, 0], sizes = [2, 32], strides = [1, 1]} : vector<8x32xf32> to vector<2x32xf32>
      %194 = vector.extract_strided_slice %191 {offsets = [4, 0], sizes = [2, 32], strides = [1, 1]} : vector<8x32xf32> to vector<2x32xf32>
      %195 = vector.extract_strided_slice %191 {offsets = [6, 0], sizes = [2, 32], strides = [1, 1]} : vector<8x32xf32> to vector<2x32xf32>
      %196 = tpu.concatenate %192, %193, %194, %195 in 1 : vector<2x32xf32>, vector<2x32xf32>, vector<2x32xf32>, vector<2x32xf32> -> vector<2x128xf32>
      %c1_77 = arith.constant 1 : index
      %c0_78 = arith.constant 0 : index
      %c256_79 = arith.constant 256 : index
      %197 = vector.load %arg13[%c1_77, %c0_78, %c256_79] : memref<2x2x1664xf32, #tpu.memory_space<vmem>>, vector<1x2x128xf32>
      %198 = vector.shape_cast %197 : vector<1x2x128xf32> to vector<2x128xf32>
      %199 = vector.shape_cast %196 : vector<2x128xf32> to vector<1x2x128xf32>
      tpu.vector_store %arg13[%c1_77, %c0_78, %c256_79], %199 {strides = array<i32>} : memref<2x2x1664xf32, #tpu.memory_space<vmem>>, vector<1x2x128xf32>,
      %200 = vector.extract_strided_slice %55 {offsets = [128, 0], sizes = [8, 32], strides = [1, 1]} : vector<200x32xf32> to vector<8x32xf32>
      %201 = vector.extract_strided_slice %200 {offsets = [0, 0], sizes = [2, 32], strides = [1, 1]} : vector<8x32xf32> to vector<2x32xf32>
      %202 = vector.extract_strided_slice %200 {offsets = [2, 0], sizes = [2, 32], strides = [1, 1]} : vector<8x32xf32> to vector<2x32xf32>
      %203 = vector.extract_strided_slice %200 {offsets = [4, 0], sizes = [2, 32], strides = [1, 1]} : vector<8x32xf32> to vector<2x32xf32>
      %204 = vector.extract_strided_slice %200 {offsets = [6, 0], sizes = [2, 32], strides = [1, 1]} : vector<8x32xf32> to vector<2x32xf32>
      %205 = tpu.concatenate %201, %202, %203, %204 in 1 : vector<2x32xf32>, vector<2x32xf32>, vector<2x32xf32>, vector<2x32xf32> -> vector<2x128xf32>
      %c1_80 = arith.constant 1 : index
      %c0_81 = arith.constant 0 : index
      %c384_82 = arith.constant 384 : index
      %206 = vector.load %arg13[%c1_80, %c0_81, %c384_82] : memref<2x2x1664xf32, #tpu.memory_space<vmem>>, vector<1x2x128xf32>
      %207 = vector.shape_cast %206 : vector<1x2x128xf32> to vector<2x128xf32>
      %208 = vector.shape_cast %205 : vector<2x128xf32> to vector<1x2x128xf32>
      tpu.vector_store %arg13[%c1_80, %c0_81, %c384_82], %208 {strides = array<i32>} : memref<2x2x1664xf32, #tpu.memory_space<vmem>>, vector<1x2x128xf32>,
      %209 = vector.extract_strided_slice %55 {offsets = [136, 0], sizes = [8, 32], strides = [1, 1]} : vector<200x32xf32> to vector<8x32xf32>
      %210 = vector.extract_strided_slice %209 {offsets = [0, 0], sizes = [2, 32], strides = [1, 1]} : vector<8x32xf32> to vector<2x32xf32>
      %211 = vector.extract_strided_slice %209 {offsets = [2, 0], sizes = [2, 32], strides = [1, 1]} : vector<8x32xf32> to vector<2x32xf32>
      %212 = vector.extract_strided_slice %209 {offsets = [4, 0], sizes = [2, 32], strides = [1, 1]} : vector<8x32xf32> to vector<2x32xf32>
      %213 = vector.extract_strided_slice %209 {offsets = [6, 0], sizes = [2, 32], strides = [1, 1]} : vector<8x32xf32> to vector<2x32xf32>
      %214 = tpu.concatenate %210, %211, %212, %213 in 1 : vector<2x32xf32>, vector<2x32xf32>, vector<2x32xf32>, vector<2x32xf32> -> vector<2x128xf32>
      %c1_83 = arith.constant 1 : index
      %c0_84 = arith.constant 0 : index
      %c512_85 = arith.constant 512 : index
      %215 = vector.load %arg13[%c1_83, %c0_84, %c512_85] : memref<2x2x1664xf32, #tpu.memory_space<vmem>>, vector<1x2x128xf32>
      %216 = vector.shape_cast %215 : vector<1x2x128xf32> to vector<2x128xf32>
      %217 = vector.shape_cast %214 : vector<2x128xf32> to vector<1x2x128xf32>
      tpu.vector_store %arg13[%c1_83, %c0_84, %c512_85], %217 {strides = array<i32>} : memref<2x2x1664xf32, #tpu.memory_space<vmem>>, vector<1x2x128xf32>,
      %218 = vector.extract_strided_slice %55 {offsets = [144, 0], sizes = [8, 32], strides = [1, 1]} : vector<200x32xf32> to vector<8x32xf32>
      %219 = vector.extract_strided_slice %218 {offsets = [0, 0], sizes = [2, 32], strides = [1, 1]} : vector<8x32xf32> to vector<2x32xf32>
      %220 = vector.extract_strided_slice %218 {offsets = [2, 0], sizes = [2, 32], strides = [1, 1]} : vector<8x32xf32> to vector<2x32xf32>
      %221 = vector.extract_strided_slice %218 {offsets = [4, 0], sizes = [2, 32], strides = [1, 1]} : vector<8x32xf32> to vector<2x32xf32>
      %222 = vector.extract_strided_slice %218 {offsets = [6, 0], sizes = [2, 32], strides = [1, 1]} : vector<8x32xf32> to vector<2x32xf32>
      %223 = tpu.concatenate %219, %220, %221, %222 in 1 : vector<2x32xf32>, vector<2x32xf32>, vector<2x32xf32>, vector<2x32xf32> -> vector<2x128xf32>
      %c1_86 = arith.constant 1 : index
      %c0_87 = arith.constant 0 : index
      %c640_88 = arith.constant 640 : index
      %224 = vector.load %arg13[%c1_86, %c0_87, %c640_88] : memref<2x2x1664xf32, #tpu.memory_space<vmem>>, vector<1x2x128xf32>
      %225 = vector.shape_cast %224 : vector<1x2x128xf32> to vector<2x128xf32>
      %226 = vector.shape_cast %223 : vector<2x128xf32> to vector<1x2x128xf32>
      tpu.vector_store %arg13[%c1_86, %c0_87, %c640_88], %226 {strides = array<i32>} : memref<2x2x1664xf32, #tpu.memory_space<vmem>>, vector<1x2x128xf32>,
      %227 = vector.extract_strided_slice %55 {offsets = [152, 0], sizes = [8, 32], strides = [1, 1]} : vector<200x32xf32> to vector<8x32xf32>
      %228 = vector.extract_strided_slice %227 {offsets = [0, 0], sizes = [2, 32], strides = [1, 1]} : vector<8x32xf32> to vector<2x32xf32>
      %229 = vector.extract_strided_slice %227 {offsets = [2, 0], sizes = [2, 32], strides = [1, 1]} : vector<8x32xf32> to vector<2x32xf32>
      %230 = vector.extract_strided_slice %227 {offsets = [4, 0], sizes = [2, 32], strides = [1, 1]} : vector<8x32xf32> to vector<2x32xf32>
      %231 = vector.extract_strided_slice %227 {offsets = [6, 0], sizes = [2, 32], strides = [1, 1]} : vector<8x32xf32> to vector<2x32xf32>
      %232 = tpu.concatenate %228, %229, %230, %231 in 1 : vector<2x32xf32>, vector<2x32xf32>, vector<2x32xf32>, vector<2x32xf32> -> vector<2x128xf32>
      %c1_89 = arith.constant 1 : index
      %c0_90 = arith.constant 0 : index
      %c768_91 = arith.constant 768 : index
      %233 = vector.load %arg13[%c1_89, %c0_90, %c768_91] : memref<2x2x1664xf32, #tpu.memory_space<vmem>>, vector<1x2x128xf32>
      %234 = vector.shape_cast %233 : vector<1x2x128xf32> to vector<2x128xf32>
      %235 = vector.shape_cast %232 : vector<2x128xf32> to vector<1x2x128xf32>
      tpu.vector_store %arg13[%c1_89, %c0_90, %c768_91], %235 {strides = array<i32>} : memref<2x2x1664xf32, #tpu.memory_space<vmem>>, vector<1x2x128xf32>,
      %236 = vector.extract_strided_slice %55 {offsets = [160, 0], sizes = [8, 32], strides = [1, 1]} : vector<200x32xf32> to vector<8x32xf32>
      %237 = vector.extract_strided_slice %236 {offsets = [0, 0], sizes = [2, 32], strides = [1, 1]} : vector<8x32xf32> to vector<2x32xf32>
      %238 = vector.extract_strided_slice %236 {offsets = [2, 0], sizes = [2, 32], strides = [1, 1]} : vector<8x32xf32> to vector<2x32xf32>
      %239 = vector.extract_strided_slice %236 {offsets = [4, 0], sizes = [2, 32], strides = [1, 1]} : vector<8x32xf32> to vector<2x32xf32>
      %240 = vector.extract_strided_slice %236 {offsets = [6, 0], sizes = [2, 32], strides = [1, 1]} : vector<8x32xf32> to vector<2x32xf32>
      %241 = tpu.concatenate %237, %238, %239, %240 in 1 : vector<2x32xf32>, vector<2x32xf32>, vector<2x32xf32>, vector<2x32xf32> -> vector<2x128xf32>
      %c1_92 = arith.constant 1 : index
      %c0_93 = arith.constant 0 : index
      %c896_94 = arith.constant 896 : index
      %242 = vector.load %arg13[%c1_92, %c0_93, %c896_94] : memref<2x2x1664xf32, #tpu.memory_space<vmem>>, vector<1x2x128xf32>
      %243 = vector.shape_cast %242 : vector<1x2x128xf32> to vector<2x128xf32>
      %244 = vector.shape_cast %241 : vector<2x128xf32> to vector<1x2x128xf32>
      tpu.vector_store %arg13[%c1_92, %c0_93, %c896_94], %244 {strides = array<i32>} : memref<2x2x1664xf32, #tpu.memory_space<vmem>>, vector<1x2x128xf32>,
      %245 = vector.extract_strided_slice %55 {offsets = [168, 0], sizes = [8, 32], strides = [1, 1]} : vector<200x32xf32> to vector<8x32xf32>
      %246 = vector.extract_strided_slice %245 {offsets = [0, 0], sizes = [2, 32], strides = [1, 1]} : vector<8x32xf32> to vector<2x32xf32>
      %247 = vector.extract_strided_slice %245 {offsets = [2, 0], sizes = [2, 32], strides = [1, 1]} : vector<8x32xf32> to vector<2x32xf32>
      %248 = vector.extract_strided_slice %245 {offsets = [4, 0], sizes = [2, 32], strides = [1, 1]} : vector<8x32xf32> to vector<2x32xf32>
      %249 = vector.extract_strided_slice %245 {offsets = [6, 0], sizes = [2, 32], strides = [1, 1]} : vector<8x32xf32> to vector<2x32xf32>
      %250 = tpu.concatenate %246, %247, %248, %249 in 1 : vector<2x32xf32>, vector<2x32xf32>, vector<2x32xf32>, vector<2x32xf32> -> vector<2x128xf32>
      %c1_95 = arith.constant 1 : index
      %c0_96 = arith.constant 0 : index
      %c1024_97 = arith.constant 1024 : index
      %251 = vector.load %arg13[%c1_95, %c0_96, %c1024_97] : memref<2x2x1664xf32, #tpu.memory_space<vmem>>, vector<1x2x128xf32>
      %252 = vector.shape_cast %251 : vector<1x2x128xf32> to vector<2x128xf32>
      %253 = vector.shape_cast %250 : vector<2x128xf32> to vector<1x2x128xf32>
      tpu.vector_store %arg13[%c1_95, %c0_96, %c1024_97], %253 {strides = array<i32>} : memref<2x2x1664xf32, #tpu.memory_space<vmem>>, vector<1x2x128xf32>,
      %254 = vector.extract_strided_slice %55 {offsets = [176, 0], sizes = [8, 32], strides = [1, 1]} : vector<200x32xf32> to vector<8x32xf32>
      %255 = vector.extract_strided_slice %254 {offsets = [0, 0], sizes = [2, 32], strides = [1, 1]} : vector<8x32xf32> to vector<2x32xf32>
      %256 = vector.extract_strided_slice %254 {offsets = [2, 0], sizes = [2, 32], strides = [1, 1]} : vector<8x32xf32> to vector<2x32xf32>
      %257 = vector.extract_strided_slice %254 {offsets = [4, 0], sizes = [2, 32], strides = [1, 1]} : vector<8x32xf32> to vector<2x32xf32>
      %258 = vector.extract_strided_slice %254 {offsets = [6, 0], sizes = [2, 32], strides = [1, 1]} : vector<8x32xf32> to vector<2x32xf32>
      %259 = tpu.concatenate %255, %256, %257, %258 in 1 : vector<2x32xf32>, vector<2x32xf32>, vector<2x32xf32>, vector<2x32xf32> -> vector<2x128xf32>
      %c1_98 = arith.constant 1 : index
      %c0_99 = arith.constant 0 : index
      %c1152_100 = arith.constant 1152 : index
      %260 = vector.load %arg13[%c1_98, %c0_99, %c1152_100] : memref<2x2x1664xf32, #tpu.memory_space<vmem>>, vector<1x2x128xf32>
      %261 = vector.shape_cast %260 : vector<1x2x128xf32> to vector<2x128xf32>
      %262 = vector.shape_cast %259 : vector<2x128xf32> to vector<1x2x128xf32>
      tpu.vector_store %arg13[%c1_98, %c0_99, %c1152_100], %262 {strides = array<i32>} : memref<2x2x1664xf32, #tpu.memory_space<vmem>>, vector<1x2x128xf32>,
      %263 = vector.extract_strided_slice %55 {offsets = [184, 0], sizes = [8, 32], strides = [1, 1]} : vector<200x32xf32> to vector<8x32xf32>
      %264 = vector.extract_strided_slice %263 {offsets = [0, 0], sizes = [2, 32], strides = [1, 1]} : vector<8x32xf32> to vector<2x32xf32>
      %265 = vector.extract_strided_slice %263 {offsets = [2, 0], sizes = [2, 32], strides = [1, 1]} : vector<8x32xf32> to vector<2x32xf32>
      %266 = vector.extract_strided_slice %263 {offsets = [4, 0], sizes = [2, 32], strides = [1, 1]} : vector<8x32xf32> to vector<2x32xf32>
      %267 = vector.extract_strided_slice %263 {offsets = [6, 0], sizes = [2, 32], strides = [1, 1]} : vector<8x32xf32> to vector<2x32xf32>
      %268 = tpu.concatenate %264, %265, %266, %267 in 1 : vector<2x32xf32>, vector<2x32xf32>, vector<2x32xf32>, vector<2x32xf32> -> vector<2x128xf32>
      %c1_101 = arith.constant 1 : index
      %c0_102 = arith.constant 0 : index
      %c1280_103 = arith.constant 1280 : index
      %269 = vector.load %arg13[%c1_101, %c0_102, %c1280_103] : memref<2x2x1664xf32, #tpu.memory_space<vmem>>, vector<1x2x128xf32>
      %270 = vector.shape_cast %269 : vector<1x2x128xf32> to vector<2x128xf32>
      %271 = vector.shape_cast %268 : vector<2x128xf32> to vector<1x2x128xf32>
      tpu.vector_store %arg13[%c1_101, %c0_102, %c1280_103], %271 {strides = array<i32>} : memref<2x2x1664xf32, #tpu.memory_space<vmem>>, vector<1x2x128xf32>,
      %272 = vector.extract_strided_slice %55 {offsets = [192, 0], sizes = [8, 32], strides = [1, 1]} : vector<200x32xf32> to vector<8x32xf32>
      %273 = vector.extract_strided_slice %272 {offsets = [0, 0], sizes = [2, 32], strides = [1, 1]} : vector<8x32xf32> to vector<2x32xf32>
      %274 = vector.extract_strided_slice %272 {offsets = [2, 0], sizes = [2, 32], strides = [1, 1]} : vector<8x32xf32> to vector<2x32xf32>
      %275 = vector.extract_strided_slice %272 {offsets = [4, 0], sizes = [2, 32], strides = [1, 1]} : vector<8x32xf32> to vector<2x32xf32>
      %276 = vector.extract_strided_slice %272 {offsets = [6, 0], sizes = [2, 32], strides = [1, 1]} : vector<8x32xf32> to vector<2x32xf32>
      %277 = tpu.concatenate %273, %274, %275, %276 in 1 : vector<2x32xf32>, vector<2x32xf32>, vector<2x32xf32>, vector<2x32xf32> -> vector<2x128xf32>
      %c1_104 = arith.constant 1 : index
      %c0_105 = arith.constant 0 : index
      %c1408_106 = arith.constant 1408 : index
      %278 = vector.load %arg13[%c1_104, %c0_105, %c1408_106] : memref<2x2x1664xf32, #tpu.memory_space<vmem>>, vector<1x2x128xf32>
      %279 = vector.shape_cast %278 : vector<1x2x128xf32> to vector<2x128xf32>
      %280 = vector.shape_cast %277 : vector<2x128xf32> to vector<1x2x128xf32>
      tpu.vector_store %arg13[%c1_104, %c0_105, %c1408_106], %280 {strides = array<i32>} : memref<2x2x1664xf32, #tpu.memory_space<vmem>>, vector<1x2x128xf32>,
      %cst_107 = arith.constant 0.000000e+00 : f32
      %281 = vector.broadcast %cst_107 : f32 to vector<2x128xf32>
      %c1_108 = arith.constant 1 : index
      %c0_109 = arith.constant 0 : index
      %c1536_110 = arith.constant 1536 : index
      %282 = vector.load %arg13[%c1_108, %c0_109, %c1536_110] : memref<2x2x1664xf32, #tpu.memory_space<vmem>>, vector<1x2x128xf32>
      %283 = vector.shape_cast %282 : vector<1x2x128xf32> to vector<2x128xf32>
      %284 = vector.shape_cast %281 : vector<2x128xf32> to vector<1x2x128xf32>
      tpu.vector_store %arg13[%c1_108, %c0_109, %c1536_110], %284 {strides = array<i32>} : memref<2x2x1664xf32, #tpu.memory_space<vmem>>, vector<1x2x128xf32>,
      %cst_111 = arith.constant 0.000000e+00 : f32
      %285 = vector.broadcast %cst_111 : f32 to vector<2x256xf32>
      %c0_112 = arith.constant 0 : index
      %c0_113 = arith.constant 0 : index
      %286 = vector.load %arg14[%c0_112, %c0_113] : memref<2x256xf32, #tpu.memory_space<vmem>>, vector<2x256xf32>
      tpu.vector_store %arg14[%c0_112, %c0_113], %285 {strides = array<i32>} : memref<2x256xf32, #tpu.memory_space<vmem>>, vector<2x256xf32>,
    } else {
    }
    %c0 = arith.constant 0 : index
    %c0_1 = arith.constant 0 : index
    %3 = vector.load %arg14[%c0, %c0_1] : memref<2x256xf32, #tpu.memory_space<vmem>>, vector<2x256xf32>
    %4 = arith.index_cast %arg0 : i32 to index
    %c0_2 = arith.constant 0 : index
    %c0_3 = arith.constant 0 : index
    %5 = vector.load %arg13[%4, %c0_2, %c0_3] : memref<2x2x1664xf32, #tpu.memory_space<vmem>>, vector<1x2x1664xf32>
    %6 = vector.shape_cast %5 : vector<1x2x1664xf32> to vector<2x1664xf32>
    %7 = arith.truncf %6 : vector<2x1664xf32> to vector<2x1664xbf16>
    %c0_4 = arith.constant 0 : index
    %c0_5 = arith.constant 0 : index
    %8 = vector.load %arg6[%c0_4, %c0_5] : memref<1664x256xbf16, #tpu.memory_space<vmem>>, vector<1664x256xbf16>
    %cst = arith.constant dense<0.000000e+00> : vector<2x256xf32>
    %9 = tpu.matmul %7, %8, %cst {dimension_numbers = #tpu.dot_dimension_numbers<[1], [0], [0], [1], [0, 0, 1, 1], [], []>} : vector<2x1664xbf16>, vector<1664x256xbf16>, vector<2x256xf32> -> vector<2x256xf32>
    %10 = arith.addf %3, %9 : vector<2x256xf32>
    %c0_6 = arith.constant 0 : index
    %c0_7 = arith.constant 0 : index
    %11 = vector.load %arg14[%c0_6, %c0_7] : memref<2x256xf32, #tpu.memory_space<vmem>>, vector<2x256xf32>
    tpu.vector_store %arg14[%c0_6, %c0_7], %10 {strides = array<i32>} : memref<2x256xf32, #tpu.memory_space<vmem>>, vector<2x256xf32>,
    %c1_i32 = arith.constant 1 : i32
    %12 = arith.cmpi eq, %arg0, %c1_i32 : i32
    %13 = arith.extui %12 : i1 to i32
    %c0_i32_8 = arith.constant 0 : i32
    %14 = arith.cmpi ne, %13, %c0_i32_8 : i32
    scf.if %14 {
      %c0_9 = arith.constant 0 : index
      %c0_10 = arith.constant 0 : index
      %15 = vector.load %arg14[%c0_9, %c0_10] : memref<2x256xf32, #tpu.memory_space<vmem>>, vector<2x256xf32>
      %c0_11 = arith.constant 0 : index
      %c0_12 = arith.constant 0 : index
      %16 = vector.load %arg7[%c0_11, %c0_12] : memref<1x256xf32, #tpu.memory_space<vmem>>, vector<1x256xf32>
      %17 = vector.broadcast %16 : vector<1x256xf32> to vector<2x256xf32>
      %18 = arith.addf %15, %17 : vector<2x256xf32>
      %cst_13 = arith.constant 0.000000e+00 : f32
      %19 = vector.broadcast %cst_13 : f32 to vector<2x256xf32>
      %20 = arith.maximumf %18, %19 : vector<2x256xf32>
      %21 = arith.truncf %20 : vector<2x256xf32> to vector<2x256xbf16>
      %c0_14 = arith.constant 0 : index
      %c0_15 = arith.constant 0 : index
      %22 = vector.load %arg8[%c0_14, %c0_15] : memref<256x7xbf16, #tpu.memory_space<vmem>>, vector<256x7xbf16>
      %cst_16 = arith.constant dense<0.000000e+00> : vector<2x7xf32>
      %23 = tpu.matmul %21, %22, %cst_16 {dimension_numbers = #tpu.dot_dimension_numbers<[1], [0], [0], [1], [0, 0, 1, 1], [], []>} : vector<2x256xbf16>, vector<256x7xbf16>, vector<2x7xf32> -> vector<2x7xf32>
      %c0_17 = arith.constant 0 : index
      %c0_18 = arith.constant 0 : index
      %24 = vector.load %arg9[%c0_17, %c0_18] : memref<1x7xf32, #tpu.memory_space<vmem>>, vector<1x7xf32>
      %25 = vector.broadcast %24 : vector<1x7xf32> to vector<2x7xf32>
      %26 = arith.addf %23, %25 : vector<2x7xf32>
      %27 = vector.extract_strided_slice %26 {offsets = [0, 0], sizes = [2, 6], strides = [1, 1]} : vector<2x7xf32> to vector<2x6xf32>
      %cst_19 = arith.constant dense<0xFF800000> : vector<2xf32>
      %28 = vector.multi_reduction <maximumf>, %27, %cst_19 [1] : vector<2x6xf32> to vector<2xf32>
      %29 = vector.shape_cast %28 : vector<2xf32> to vector<2x1xf32>
      %30 = vector.broadcast %29 : vector<2x1xf32> to vector<2x6xf32>
      %31 = arith.subf %27, %30 : vector<2x6xf32>
      %32 = math.exp %31 : vector<2x6xf32>
      %cst_20 = arith.constant dense<0.000000e+00> : vector<2xf32>
      %33 = vector.multi_reduction <add>, %32, %cst_20 [1] : vector<2x6xf32> to vector<2xf32>
      %34 = vector.shape_cast %33 : vector<2xf32> to vector<2x1xf32>
      %35 = tpu.reciprocal %34 {approx = true} : vector<2x1xf32> -> vector<2x1xf32>
      %36 = vector.broadcast %35 : vector<2x1xf32> to vector<2x6xf32>
      %37 = arith.mulf %32, %36 : vector<2x6xf32>
      %c0_21 = arith.constant 0 : index
      %c0_22 = arith.constant 0 : index
      %38 = vector.load %arg10[%c0_21, %c0_22] : memref<2x6xf32, #tpu.memory_space<vmem>>, vector<2x6xf32>
      tpu.vector_store %arg10[%c0_21, %c0_22], %37 {strides = array<i32>} : memref<2x6xf32, #tpu.memory_space<vmem>>, vector<2x6xf32>,
      %39 = vector.extract_strided_slice %26 {offsets = [0, 6], sizes = [2, 1], strides = [1, 1]} : vector<2x7xf32> to vector<2x1xf32>
      %c0_23 = arith.constant 0 : index
      %c0_24 = arith.constant 0 : index
      %40 = vector.load %arg11[%c0_23, %c0_24] : memref<2x1xf32, #tpu.memory_space<vmem>>, vector<2x1xf32>
      tpu.vector_store %arg11[%c0_23, %c0_24], %39 {strides = array<i32>} : memref<2x1xf32, #tpu.memory_space<vmem>>, vector<2x1xf32>,
    } else {
    }
    return
  }
  func.func @transform_0(%arg0: i32) -> (i32, i32) {
    %c0_i32 = arith.constant 0 : i32
    %c0_i32_0 = arith.constant 0 : i32
    %c0_i32_1 = arith.constant 0 : i32
    return %c0_i32, %c0_i32_0 : i32, i32
  }
  func.func @transform_1(%arg0: i32) -> (i32, i32) {
    %c0_i32 = arith.constant 0 : i32
    %c0_i32_0 = arith.constant 0 : i32
    %c0_i32_1 = arith.constant 0 : i32
    return %c0_i32, %c0_i32_0 : i32, i32
  }
  func.func @transform_2(%arg0: i32) -> (i32, i32) {
    %c0_i32 = arith.constant 0 : i32
    %c0_i32_0 = arith.constant 0 : i32
    %c0_i32_1 = arith.constant 0 : i32
    return %c0_i32, %c0_i32_0 : i32, i32
  }
  func.func @transform_3(%arg0: i32) -> (i32, i32, i32) {
    %c0_i32 = arith.constant 0 : i32
    %c0_i32_0 = arith.constant 0 : i32
    %c0_i32_1 = arith.constant 0 : i32
    %c0_i32_2 = arith.constant 0 : i32
    return %c0_i32, %c0_i32_0, %c0_i32_1 : i32, i32, i32
  }
  func.func @transform_4(%arg0: i32) -> (i32, i32) {
    %c0_i32 = arith.constant 0 : i32
    %c0_i32_0 = arith.constant 0 : i32
    %c0_i32_1 = arith.constant 0 : i32
    return %c0_i32, %c0_i32_0 : i32, i32
  }
  func.func @transform_5(%arg0: i32) -> (i32, i32) {
    %c0_i32 = arith.constant 0 : i32
    %c0_i32_0 = arith.constant 0 : i32
    return %arg0, %c0_i32 : i32, i32
  }
  func.func @transform_6(%arg0: i32) -> (i32, i32) {
    %c0_i32 = arith.constant 0 : i32
    %c0_i32_0 = arith.constant 0 : i32
    %c0_i32_1 = arith.constant 0 : i32
    return %c0_i32, %c0_i32_0 : i32, i32
  }
  func.func @transform_7(%arg0: i32) -> (i32, i32) {
    %c0_i32 = arith.constant 0 : i32
    %c0_i32_0 = arith.constant 0 : i32
    %c0_i32_1 = arith.constant 0 : i32
    return %c0_i32, %c0_i32_0 : i32, i32
  }
  func.func @transform_8(%arg0: i32) -> (i32, i32) {
    %c0_i32 = arith.constant 0 : i32
    %c0_i32_0 = arith.constant 0 : i32
    %c0_i32_1 = arith.constant 0 : i32
    return %c0_i32, %c0_i32_0 : i32, i32
  }
  func.func @transform_9(%arg0: i32) -> (i32, i32) {
    %c0_i32 = arith.constant 0 : i32
    %c0_i32_0 = arith.constant 0 : i32
    %c0_i32_1 = arith.constant 0 : i32
    return %c0_i32, %c0_i32_0 : i32, i32
  }
  func.func @transform_10(%arg0: i32) -> (i32, i32) {
    %c0_i32 = arith.constant 0 : i32
    %c0_i32_0 = arith.constant 0 : i32
    %c0_i32_1 = arith.constant 0 : i32
    return %c0_i32, %c0_i32_0 : i32, i32
  }
}

</mosaic_0001>

<bundles_post_ra>
// kernel: cnn_policy_forward.1
= control target key start
LH: loop header
LB: loop body
LE: loop exit
PB: predicated region body
PF: predicated region fallthrough
CT: control target
= control target key end

     0   :  { %16 = vsyncpa [#allocation6], 0  ;;  %s6895_s13 = smov 0   ;;  %s8605_s0 = inlined_call_operand.vmem [shape: bf16[200,768], index: 0, kind: input, shape index: {}]   ;;  %s8606_s1 = inlined_call_operand.vmem [shape: bf16[768,64], index: 1, kind: input, shape index: {}]   ;;  %s8607_s2 = inlined_call_operand.vmem [shape: f32[1,64], index: 2, kind: input, shape index: {}]   ;;  %s8608_s3 = inlined_call_operand.vmem [shape: bf16[4,64,32], index: 3, kind: input, shape index: {}]   ;;  %s8609_s4 = inlined_call_operand.vmem [shape: f32[1,32], index: 4, kind: input, shape index: {}]   ;;  %s8610_s5 = inlined_call_operand.vmem [shape: bf16[3328,256], index: 5, kind: input, shape index: {}]   ;;  %s8611_s6 = inlined_call_operand.vmem [shape: f32[1,256], index: 6, kind: input, shape index: {}]   ;;  %s8612_s7 = inlined_call_operand.vmem [shape: bf16[256,7], index: 7, kind: input, shape index: {}]   ;;  %s8613_s8 = inlined_call_operand.vmem [shape: f32[1,7], index: 8, kind: input, shape index: {}]   ;;  %s8614_s9 = inlined_call_operand.hbm [shape: f32[2,6], index: 9, kind: output, shape index: {0}]   ;;  %s8615_s10 = inlined_call_operand.vmem [shape: f32[2,1], index: 10, kind: output, shape index: {1}]  }
   0x1 LB: > { %s6901_s14 = sadd.s32 4294967295, %s6832_s13   ;;  %p4863_p0 = scmp.ge.s32.totalorder %s6832_s13, 1  ;;  %s6832_s13 = sphi %s6895_s13, %s22_s13  }
   0x2   : > { %p308_p1 = scmp.lt.s32.totalorder %s6832_s13, 3 }
   0x4   : > { %p309_p2 = pnand %p4863_p0, %p308_p1 }
   0x5   : > { %s342_s15 = smul.u32 (!%p309_p2), 208, %s6901_s14  ;;  %p4866_p4 = scmp.ne.s32.totalorder (!%p309_p2), %s6901_s14, 0 }
   0x6   : > { %312 = sbr.rel (%p309_p2) target bundleno = 1607 (0x647), region = 56 }
   0x7   : > { %p343_p3 = scmp.lt.s32.totalorder (!%p309_p2), %s342_s15, 415 }
   0xb   : > { %s8617_s15 = smov (!%p343_p3, %s342_s15), 415  ;;  %353 = sbr.rel (%p4866_p4) target bundleno = 823 (0x337), region = 60 }
   0xc   : > { %s6389_s16 = sshll.u32 %s8617_s15, 3  ;;  %s6835_s21 = smov (!%p4866_p4), 96  }
   0xd   : > { %s6909_s19 = scalar_lea.vmem %s8610_s5, %s6389_s16  ;;  %s6836_s22 = smov (!%p4866_p4), 32  }
   0xe   : > { %s6837_s23 = smov (!%p4866_p4), 64  }
  0x10   : > { %v6469_v0 = vld [vmem:[%s8606_s1 + $0x38] sm:$0xff]  ;;  %v6468_v2 = vld [vmem:[%s8606_s1 + $0x30] sm:$0xff]  ;;  %v6467_v4 = vld [vmem:[%s8606_s1 + $0x28] sm:$0xff]  ;;  %vm1661_vm0 = vcmask 523264   ;;  %vm2538_vm1 = vcmask 261120   ;;  %vm2541_vm2 = vcmask 785408  }
  0x11   : > { %v6477_v1 = vld [vmem:[%s8606_s1 + $0x78] sm:$0xff]  ;;  %1198 = vmatpush.bf16.msra.mxu0 %v6469_v0  ;;  %6751 = vmatpush.bf16.msra.mxu2 %v6469_v0  ;;  %v6476_v3 = vld [vmem:[%s8606_s1 + $0x70] sm:$0xff]  ;;  %v6475_v5 = vld [vmem:[%s8606_s1 + $0x68] sm:$0xff] }
  0x12   : > { %1271 = vmatpush.bf16.msra.mxu1 %v6477_v1  ;;  %6759 = vmatpush.bf16.msra.mxu3 %v6477_v1  ;;  %v6466_v6 = vld [vmem:[%s8606_s1 + $0x20] sm:$0xff]  ;;  %v6465_v8 = vld [vmem:[%s8606_s1 + $0x18] sm:$0xff]  ;;  %v6464_v10 = vld [vmem:[%s8606_s1 + $0x10] sm:$0xff] }
  0x13   : > { %v6474_v7 = vld [vmem:[%s8606_s1 + $0x60] sm:$0xff]  ;;  %v6473_v9 = vld [vmem:[%s8606_s1 + $0x58] sm:$0xff]  ;;  %v6472_v11 = vld [vmem:[%s8606_s1 + $0x50] sm:$0xff] }
  0x14   : > { %v6463_v12 = vld [vmem:[%s8606_s1 + $0x8] sm:$0xff]  ;;  %v6462_v14 = vld [vmem:[%s8606_s1] sm:$0xff]  ;;  %v6393_v17 = vld [vmem:[%s8605_s0 + $0x14] sm:$0xf0] }
  0x15   : > { %1199 = vmatpush.bf16.msra.mxu0 %v6468_v2  ;;  %6752 = vmatpush.bf16.msra.mxu2 %v6468_v2  ;;  %v6471_v13 = vld [vmem:[%s8606_s1 + $0x48] sm:$0xff]  ;;  %v6470_v15 = vld [vmem:[%s8606_s1 + $0x40] sm:$0xff]  ;;  %v5037_v18 = vld [vmem:[%s8605_s0 + $0x150] sm:$0xf] }
  0x16   : > { %1272 = vmatpush.bf16.msra.mxu1 %v6476_v3  ;;  %6760 = vmatpush.bf16.msra.mxu3 %v6476_v3  ;;  %v4869_v16 = vld [vmem:[%s8605_s0] sm:$0xf]  ;;  %v6435_v19 = vld [vmem:[%s8605_s0 + $0x164] sm:$0xf0]  ;;  %v6390_v20 = vld [vmem:[%s8605_s0 + $0x4] sm:$0xf] }
  0x17   : > { %v4871_v21 = vld [vmem:[%s8605_s0 + $0x18] sm:$0xf0]  ;;  %v6432_v22 = vld [vmem:[%s8605_s0 + $0x154] sm:$0xf]  ;;  %v5039_v23 = vld [vmem:[%s8605_s0 + $0x168] sm:$0xf0]  ;;  %v4870_v26 = vor.u32 %v6393_v17, %v4869_v16  ;;  %v5038_v27 = vor.u32 %v6435_v19, %v5037_v18 }
  0x18   : > { %v6501_v24 = vld [vmem:[%s8606_s1 + $0x138] sm:$0xff]  ;;  %v4874_v28 = vor.u32 %v6390_v20, %v4871_v21  ;;  %v5042_v29 = vor.u32 %v6432_v22, %v5039_v23  ;;  %v6500_v32 = vld [vmem:[%s8606_s1 + $0x130] sm:$0xff]  ;;  %v6499_v36 = vld [vmem:[%s8606_s1 + $0x128] sm:$0xff] }
  0x19   : > { %1200 = vmatpush.bf16.msra.mxu0 %v6467_v4  ;;  %6753 = vmatpush.bf16.msra.mxu2 %v6467_v4  ;;  %v6509_v25 = vld [vmem:[%s8606_s1 + $0x178] sm:$0xff]  ;;  %v6508_v33 = vld [vmem:[%s8606_s1 + $0x170] sm:$0xff]  ;;  %v6507_v37 = vld [vmem:[%s8606_s1 + $0x168] sm:$0xff] }
  0x1a   : > { %1273 = vmatpush.bf16.msra.mxu1 %v6475_v5  ;;  %6761 = vmatpush.bf16.msra.mxu3 %v6475_v5  ;;  %v6485_v30 = vld [vmem:[%s8606_s1 + $0xb8] sm:$0xff]  ;;  %v6484_v34 = vld [vmem:[%s8606_s1 + $0xb0] sm:$0xff]  ;;  %v6483_v38 = vld [vmem:[%s8606_s1 + $0xa8] sm:$0xff] }
  0x1b   : > { %v6493_v31 = vld [vmem:[%s8606_s1 + $0xf8] sm:$0xff]  ;;  %v6492_v35 = vld [vmem:[%s8606_s1 + $0xf0] sm:$0xff]  ;;  %v6491_v39 = vld [vmem:[%s8606_s1 + $0xe8] sm:$0xff] }
  0x1c   : > { %v4893_v40 = vld [vmem:[%s8605_s0 + $0x30] sm:$0xf]  ;;  %v6498_v41 = vld [vmem:[%s8606_s1 + $0x120] sm:$0xff]  ;;  %v6399_v43 = vld [vmem:[%s8605_s0 + $0x44] sm:$0xf0] }
  0x1d   : > { %1201 = vmatpush.bf16.msra.mxu0 %v6466_v6  ;;  %6754 = vmatpush.bf16.msra.mxu2 %v6466_v6  ;;  %v6506_v42 = vld [vmem:[%s8606_s1 + $0x160] sm:$0xff]  ;;  %v6441_v45 = vld [vmem:[%s8605_s0 + $0x194] sm:$0xf0]  ;;  %v6396_v46 = vld [vmem:[%s8605_s0 + $0x34] sm:$0xf]  ;;  %v4894_v52 = vor.u32 %v6399_v43, %v4893_v40 }
  0x1e   : > { %1274 = vmatpush.bf16.msra.mxu1 %v6474_v7  ;;  %6762 = vmatpush.bf16.msra.mxu3 %v6474_v7  ;;  %v5061_v44 = vld [vmem:[%s8605_s0 + $0x180] sm:$0xf]  ;;  %v4895_v47 = vld [vmem:[%s8605_s0 + $0x48] sm:$0xf0]  ;;  %v6438_v48 = vld [vmem:[%s8605_s0 + $0x184] sm:$0xf] }
  0x1f   : > { %v5063_v49 = vld [vmem:[%s8605_s0 + $0x198] sm:$0xf0]  ;;  %v6482_v50 = vld [vmem:[%s8606_s1 + $0xa0] sm:$0xff]  ;;  %v5062_v53 = vor.u32 %v6441_v45, %v5061_v44  ;;  %v4898_v54 = vor.u32 %v6396_v46, %v4895_v47  ;;  %v6405_v61 = vld [vmem:[%s8605_s0 + $0x74] sm:$0xf0] }
  0x20   : > { %v6490_v51 = vld [vmem:[%s8606_s1 + $0xe0] sm:$0xff]  ;;  %v5066_v55 = vor.u32 %v6438_v48, %v5063_v49  ;;  %v6481_v56 = vld [vmem:[%s8606_s1 + $0x98] sm:$0xff]  ;;  %v5085_v62 = vld [vmem:[%s8605_s0 + $0x1b0] sm:$0xf] }
  0x21   : > { %1202 = vmatpush.bf16.msra.mxu0 %v6465_v8  ;;  %6755 = vmatpush.bf16.msra.mxu2 %v6465_v8  ;;  %v6489_v57 = vld [vmem:[%s8606_s1 + $0xd8] sm:$0xff]  ;;  %v4917_v60 = vld [vmem:[%s8605_s0 + $0x60] sm:$0xf]  ;;  %v6447_v63 = vld [vmem:[%s8605_s0 + $0x1c4] sm:$0xf0] }
  0x22   : > { %1275 = vmatpush.bf16.msra.mxu1 %v6473_v9  ;;  %6763 = vmatpush.bf16.msra.mxu3 %v6473_v9  ;;  %v6497_v58 = vld [vmem:[%s8606_s1 + $0x118] sm:$0xff]  ;;  %v6402_v0 = vld [vmem:[%s8605_s0 + $0x64] sm:$0xf]  ;;  %v6444_v2 = vld [vmem:[%s8605_s0 + $0x1b4] sm:$0xf]  ;;  %v4918_v4 = vor.u32 %v6405_v61, %v4917_v60  ;;  %v5086_v5 = vor.u32 %v6447_v63, %v5085_v62 }
  0x23   : > { %v6505_v59 = vld [vmem:[%s8606_s1 + $0x158] sm:$0xff]  ;;  %v5087_v3 = vld [vmem:[%s8605_s0 + $0x1c8] sm:$0xf0]  ;;  %v6480_v8 = vld [vmem:[%s8606_s1 + $0x90] sm:$0xff] }
  0x24   : > { %v4919_v1 = vld [vmem:[%s8605_s0 + $0x78] sm:$0xf0]  ;;  %v5090_v7 = vor.u32 %v6444_v2, %v5087_v3  ;;  %v6488_v9 = vld [vmem:[%s8606_s1 + $0xd0] sm:$0xff]  ;;  %v4943_v17 = vld [vmem:[%s8605_s0 + $0xa8] sm:$0xf0] }
  0x25   : > { %1203 = vmatpush.bf16.msra.mxu0 %v6464_v10  ;;  %6756 = vmatpush.bf16.msra.mxu2 %v6464_v10  ;;  %v4922_v6 = vor.u32 %v6402_v0, %v4919_v1  ;;  %v6496_v10 = vld [vmem:[%s8606_s1 + $0x110] sm:$0xff]  ;;  %v6450_v18 = vld [vmem:[%s8605_s0 + $0x1e4] sm:$0xf]  ;;  %v5111_v19 = vld [vmem:[%s8605_s0 + $0x1f8] sm:$0xf0] }
  0x26   : > { %1276 = vmatpush.bf16.msra.mxu1 %v6472_v11  ;;  %6764 = vmatpush.bf16.msra.mxu3 %v6472_v11  ;;  %v6504_v11 = vld [vmem:[%s8606_s1 + $0x150] sm:$0xff]  ;;  %v5114_v23 = vor.u32 %v6450_v18, %v5111_v19  ;;  %v6502_v43 = vld [vmem:[%s8606_s1 + $0x140] sm:$0xff]  ;;  %v6517_v44 = vld [vmem:[%s8608_s3 + $0x38] sm:$0xff] }
  0x27   : > { %v6408_v16 = vld [vmem:[%s8605_s0 + $0x94] sm:$0xf]  ;;  %v6513_v45 = vld [vmem:[%s8608_s3 + $0x18] sm:$0xff]  ;;  %v426_v46 = vld [vmem:[%s8605_s0 + $0x240] sm:$0xff] }
  0x28   : > { %v4946_v22 = vor.u32 %v6408_v16, %v4943_v17  ;;  %v748_v47 = vunpack.c.l.b16 %v426_v46  ;;  %v4989_v48 = vld [vmem:[%s8605_s0 + $0xf0] sm:$0xf]  ;;  %v6423_v49 = vld [vmem:[%s8605_s0 + $0x104] sm:$0xf0]  ;;  %v6429_v60 = vld [vmem:[%s8605_s0 + $0x134] sm:$0xf0] }
  0x29   : > { %1204 = vmatpush.bf16.msra.mxu0 %v6463_v12  ;;  %6757 = vmatpush.bf16.msra.mxu2 %v6463_v12  ;;  %v4941_v12 = vld [vmem:[%s8605_s0 + $0x90] sm:$0xf]  ;;  %v6426_v61 = vld [vmem:[%s8605_s0 + $0x124] sm:$0xf]  ;;  %v4877_v62 = vld [vmem:[%s8605_s0 + $0x8] sm:$0xf] }
  0x2a   : > { %1277 = vmatpush.bf16.msra.mxu1 %v6471_v13  ;;  %6765 = vmatpush.bf16.msra.mxu3 %v6471_v13  ;;  %v6411_v13 = vld [vmem:[%s8605_s0 + $0xa4] sm:$0xf0]  ;;  %v6394_v63 = vld [vmem:[%s8605_s0 + $0x1c] sm:$0xf0]  ;;  %v5015_v0 = vld [vmem:[%s8605_s0 + $0x138] sm:$0xf0] }
  0x2b   : > { %v4942_v20 = vor.u32 %v6411_v13, %v4941_v12  ;;  %v6391_v1 = vld [vmem:[%s8605_s0 + $0xc] sm:$0xf]  ;;  %v4879_v2 = vld [vmem:[%s8605_s0 + $0x20] sm:$0xf0]  ;;  %v4903_v12 = vld [vmem:[%s8605_s0 + $0x50] sm:$0xf0] }
  0x2c   : > { %v6392_v13 = vld [vmem:[%s8605_s0 + $0x14] sm:$0xf]  ;;  %v7254_v19 = vld [vmem:[%s8607_s2] ss:$0 sm:$0xff] }
  0x2d   : > { %1205 = vmatpush.bf16.msra.mxu0 %v6462_v14  ;;  %6758 = vmatpush.bf16.msra.mxu2 %v6462_v14  ;;  %v5109_v14 = vld [vmem:[%s8605_s0 + $0x1e0] sm:$0xf] }
  0x2e   : > { %1278 = vmatpush.bf16.msra.mxu1 %v6470_v15  ;;  %6766 = vmatpush.bf16.msra.mxu3 %v6470_v15  ;;  %v6453_v15 = vld [vmem:[%s8605_s0 + $0x1f4] sm:$0xf0] }
  0x2f   : > { %v5110_v21 = vor.u32 %v6453_v15, %v5109_v14  ;;  %v4887_v14 = vld [vmem:[%s8605_s0 + $0x28] sm:$0xf0] }
  0x30   : > { %1206 = vmatmul.bf16.vlgmr.msra.gmra.mxu0 %v4870_v26  ;;  %1241 = vmatmul.bf16.vlgmr.msra.gmra.mxu2 %v5038_v27  ;;  %v6495_v26 = vld [vmem:[%s8606_s1 + $0x108] sm:$0xff]  ;;  %v4890_v18 = vor.u32 %v6392_v13, %v4887_v14  ;;  %v6418_v13 = vld [vmem:[%s8605_s0 + $0xdc] sm:$0xf0] }
  0x31   : > { %1490 = vmatpush.bf16.msrb.mxu0 %v6501_v24  ;;  %1279 = vmatmul.bf16.vlgmr.msra.gmra.mxu1 %v4874_v28  ;;  %v6479_v24 = vld [vmem:[%s8606_s1 + $0x88] sm:$0xff]  ;;  %v6478_v28 = vld [vmem:[%s8606_s1 + $0x80] sm:$0xff] }
  0x32   : > { %1563 = vmatpush.bf16.msrb.mxu1 %v6509_v25  ;;  %1314 = vmatmul.bf16.vlgmr.msra.gmra.mxu3 %v5042_v29  ;;  %v6487_v25 = vld [vmem:[%s8606_s1 + $0xc8] sm:$0xff]  ;;  %v6486_v29 = vld [vmem:[%s8606_s1 + $0xc0] sm:$0xff] }
  0x33   : > { %1344 = vmatpush.bf16.msrb.mxu2 %v6485_v30  ;;  %1417 = vmatpush.bf16.msrb.mxu3 %v6493_v31  ;;  %v6503_v27 = vld [vmem:[%s8606_s1 + $0x148] sm:$0xff]  ;;  %v4965_v30 = vld [vmem:[%s8605_s0 + $0xc0] sm:$0xf]  ;;  %v6417_v31 = vld [vmem:[%s8605_s0 + $0xd4] sm:$0xf0] }
  0x34   : > { %v6415_v14 = vld [vmem:[%s8605_s0 + $0xcc] sm:$0xf] }
  0x35   : > { %1491 = vmatpush.bf16.msrb.mxu0 %v6500_v32  ;;  %v5133_v32 = vld [vmem:[%s8605_s0 + $0x210] sm:$0xf] }
  0x36   : > { %1564 = vmatpush.bf16.msrb.mxu1 %v6508_v33  ;;  %v6459_v33 = vld [vmem:[%s8605_s0 + $0x224] sm:$0xf0] }
  0x37   : > { %1345 = vmatpush.bf16.msrb.mxu2 %v6484_v34  ;;  %1418 = vmatpush.bf16.msrb.mxu3 %v6492_v35  ;;  %v6414_v34 = vld [vmem:[%s8605_s0 + $0xc4] sm:$0xf]  ;;  %v4967_v35 = vld [vmem:[%s8605_s0 + $0xd8] sm:$0xf0] }
  0x38   : > { %v4970_v40 = vor.u32 %v6414_v34, %v4967_v35  ;;  %v6516_v35 = vld [vmem:[%s8608_s3 + $0x30] sm:$0xff] }
  0x39   : > { %1492 = vmatpush.bf16.msrb.mxu0 %v6499_v36  ;;  %v6456_v36 = vld [vmem:[%s8605_s0 + $0x214] sm:$0xf] }
  0x3a   : > { %1565 = vmatpush.bf16.msrb.mxu1 %v6507_v37  ;;  %v5135_v37 = vld [vmem:[%s8605_s0 + $0x228] sm:$0xf0] }
  0x3b   : > { %1346 = vmatpush.bf16.msrb.mxu2 %v6483_v38  ;;  %1419 = vmatpush.bf16.msrb.mxu3 %v6491_v39  ;;  %v4966_v38 = vor.u32 %v6417_v31, %v4965_v30  ;;  %v5134_v39 = vor.u32 %v6459_v33, %v5133_v32 }
  0x3d   : > { %1493 = vmatpush.bf16.msrb.mxu0 %v6498_v41  ;;  %v5138_v41 = vor.u32 %v6456_v36, %v5135_v37  ;;  %v6512_v36 = vld [vmem:[%s8608_s3 + $0x10] sm:$0xff] }
  0x3e   : > { %1566 = vmatpush.bf16.msrb.mxu1 %v6506_v42  ;;  %v6494_v42 = vld [vmem:[%s8606_s1 + $0x100] sm:$0xff] }
  0x3f   : > { %1347 = vmatpush.bf16.msrb.mxu2 %v6482_v50  ;;  %1420 = vmatpush.bf16.msrb.mxu3 %v6490_v51  ;;  %v749_v50 = vunpack.c.h.b16 %v426_v46  ;;  %v6420_v51 = vld [vmem:[%s8605_s0 + $0xf4] sm:$0xf] }
  0x40   : > { %1211 = vmatmul.bf16.gmra.mxu0 %v4894_v52  ;;  %1246 = vmatmul.bf16.gmra.mxu2 %v5062_v53  ;;  %v4991_v52 = vld [vmem:[%s8605_s0 + $0x108] sm:$0xf0]  ;;  %v4990_v53 = vor.u32 %v6423_v49, %v4989_v48  ;;  %v6412_v48 = vld [vmem:[%s8605_s0 + $0xac] sm:$0xf0] }
  0x41   : > { %1284 = vmatmul.bf16.gmra.mxu1 %v4898_v54  ;;  %1494 = vmatpush.bf16.msrb.mxu0 %v6497_v58  ;;  %v826_v54 = vpack.c.b16 %v748_v47, %v748_v47  ;;  %v6525_v58 = vld [vmem:[%s8608_s3 + $0x78] sm:$0xff]  ;;  %v6524_v49 = vld [vmem:[%s8608_s3 + $0x70] sm:$0xff] }
  0x42   : > { %1319 = vmatmul.bf16.gmra.mxu3 %v5066_v55  ;;  %1567 = vmatpush.bf16.msrb.mxu1 %v6505_v59  ;;  %v4994_v55 = vor.u32 %v6420_v51, %v4991_v52  ;;  %v5013_v59 = vld [vmem:[%s8605_s0 + $0x120] sm:$0xf]  ;;  %v4949_v47 = vld [vmem:[%s8605_s0 + $0x98] sm:$0xf]  ;;  %v4933_v51 = vld [vmem:[%s8605_s0 + $0x70] sm:$0xf] }
  0x43   : > { %1348 = vmatpush.bf16.msrb.mxu2 %v6481_v56  ;;  %1421 = vmatpush.bf16.msrb.mxu3 %v6489_v57  ;;  %v827_v56 = vpack.c.b16 %v749_v50, %v749_v50  ;;  %v6521_v57 = vld [vmem:[%s8608_s3 + $0x58] sm:$0xff]  ;;  %v5014_v3 = vor.u32 %v6429_v60, %v5013_v59  ;;  %v6407_v52 = vld [vmem:[%s8605_s0 + $0x84] sm:$0xf0]  ;;  %v4950_v59 = vor.u32 %v6412_v48, %v4949_v47  ;;  %v4981_v47 = vld [vmem:[%s8605_s0 + $0xd0] sm:$0xf] }
  0x44   : > { %v6409_v50 = vld [vmem:[%s8605_s0 + $0x9c] sm:$0xf]  ;;  %v4934_v60 = vor.u32 %v6407_v52, %v4933_v51  ;;  %v6419_v48 = vld [vmem:[%s8605_s0 + $0xe4] sm:$0xf0]  ;;  %v4983_v51 = vld [vmem:[%s8605_s0 + $0xe8] sm:$0xf0] }
  0x45   : > { %1495 = vmatpush.bf16.msrb.mxu0 %v6496_v10  ;;  %v4885_v10 = vld [vmem:[%s8605_s0 + $0x10] sm:$0xf] }
  0x46   : > { %1568 = vmatpush.bf16.msrb.mxu1 %v6504_v11  ;;  %v6395_v11 = vld [vmem:[%s8605_s0 + $0x24] sm:$0xf0] }
  0x47   : > { %1349 = vmatpush.bf16.msrb.mxu2 %v6480_v8  ;;  %1422 = vmatpush.bf16.msrb.mxu3 %v6488_v9  ;;  %v6400_v8 = vld [vmem:[%s8605_s0 + $0x4c] sm:$0xf0]  ;;  %v6397_v9 = vld [vmem:[%s8605_s0 + $0x3c] sm:$0xf]  ;;  %v4886_v16 = vor.u32 %v6395_v11, %v4885_v10 }
  0x48   : > { %v4906_v17 = vor.u32 %v6397_v9, %v4903_v12  ;;  %v4973_v12 = vld [vmem:[%s8605_s0 + $0xc8] sm:$0xf] }
  0x49   : > { %1496 = vmatpush.bf16.msrb.mxu0 %v6495_v26  ;;  %v6398_v26 = vld [vmem:[%s8605_s0 + $0x44] sm:$0xf] }
  0x4a   : > { %1569 = vmatpush.bf16.msrb.mxu1 %v6503_v27  ;;  %v4911_v27 = vld [vmem:[%s8605_s0 + $0x58] sm:$0xf0] }
  0x4b   : > { %1350 = vmatpush.bf16.msrb.mxu2 %v6479_v24  ;;  %1423 = vmatpush.bf16.msrb.mxu3 %v6487_v25  ;;  %v6401_v24 = vld [vmem:[%s8605_s0 + $0x54] sm:$0xf0]  ;;  %v4927_v25 = vld [vmem:[%s8605_s0 + $0x80] sm:$0xf0]  ;;  %v4914_v32 = vor.u32 %v6398_v26, %v4911_v27 }
  0x4d   : > { %1497 = vmatpush.bf16.msrb.mxu0 %v6494_v42 }
  0x4e   : > { %1570 = vmatpush.bf16.msrb.mxu1 %v6502_v43 }
  0x4f   : > { %1351 = vmatpush.bf16.msrb.mxu2 %v6478_v28  ;;  %1424 = vmatpush.bf16.msrb.mxu3 %v6486_v29 }
  0x50   : > { %1216 = vmatmul.bf16.gmra.mxu0 %v4918_v4  ;;  %1251 = vmatmul.bf16.gmra.mxu2 %v5086_v5  ;;  %v4878_v4 = vor.u32 %v6394_v63, %v4877_v62  ;;  %v5018_v5 = vor.u32 %v6426_v61, %v5015_v0 }
  0x51   : > { %1289 = vmatmul.bf16.gmra.mxu1 %v4922_v6  ;;  %2169 = vmatpush.bf16.msra.mxu0 %v6521_v57  ;;  %v4882_v6 = vor.u32 %v6391_v1, %v4879_v2 }
  0x52   : > { %1324 = vmatmul.bf16.gmra.mxu3 %v5090_v7  ;;  %2377 = vmatpush.bf16.msra.mxu1 %v6525_v58  ;;  %v4901_v7 = vld [vmem:[%s8605_s0 + $0x38] sm:$0xf] }
  0x53   : > { %1850 = vmatpush.bf16.msra.mxu2 %v6517_v44  ;;  %1986 = vmatpush.bf16.msra.mxu3 %v6513_v45  ;;  %v4902_v15 = vor.u32 %v6400_v8, %v4901_v7  ;;  %v6520_v45 = vld [vmem:[%s8608_s3 + $0x50] sm:$0xff] }
  0x55   : > { %2170 = vmatpush.bf16.msra.mxu0 %v6520_v45  ;;  %v6421_v45 = vld [vmem:[%s8605_s0 + $0xfc] sm:$0xf] }
  0x56   : > { %2378 = vmatpush.bf16.msra.mxu1 %v6524_v49  ;;  %v4999_v49 = vld [vmem:[%s8605_s0 + $0x110] sm:$0xf0] }
  0x57   : > { %1851 = vmatpush.bf16.msra.mxu2 %v6516_v35  ;;  %1987 = vmatpush.bf16.msra.mxu3 %v6512_v36 }
  0x60   : > { %1221 = vmatmul.bf16.gmra.mxu0 %v4942_v20  ;;  %1256 = vmatmul.bf16.gmra.mxu2 %v5110_v21  ;;  %v4925_v20 = vld [vmem:[%s8605_s0 + $0x68] sm:$0xf]  ;;  %v6406_v21 = vld [vmem:[%s8605_s0 + $0x7c] sm:$0xf0] }
  0x61   : > { %1294 = vmatmul.bf16.gmra.mxu1 %v4946_v22  ;;  %v6403_v22 = vld [vmem:[%s8605_s0 + $0x6c] sm:$0xf]  ;;  %v4926_v28 = vor.u32 %v6406_v21, %v4925_v20  ;;  %v4959_v20 = vld [vmem:[%s8605_s0 + $0xb8] sm:$0xf0] }
  0x62   : > { %1329 = vmatmul.bf16.gmra.mxu3 %v5114_v23  ;;  %v4909_v23 = vld [vmem:[%s8605_s0 + $0x40] sm:$0xf]  ;;  %v4930_v31 = vor.u32 %v6403_v22, %v4927_v25 }
  0x63   : > { %v4910_v29 = vor.u32 %v6401_v24, %v4909_v23  ;;  %v4974_v24 = vor.u32 %v6418_v13, %v4973_v12  ;;  %v5021_v13 = vld [vmem:[%s8605_s0 + $0x128] sm:$0xf] }
  0x70   : > { %1226 = vmatmul.bf16.gmra.mxu0 %v4966_v38  ;;  %1261 = vmatmul.bf16.gmra.mxu2 %v5134_v39 }
  0x71   : > { %1299 = vmatmul.bf16.gmra.mxu1 %v4970_v40 }
  0x72   : > { %1334 = vmatmul.bf16.gmra.mxu3 %v5138_v41 }
  0x80   : > { %1231 = vmatmul.bf16.gmra.mxu0 %v4990_v53  ;;  %1266 = vmatmul.bf16.gmra.mxu2 %v826_v54  ;;  %v4951_v53 = vld [vmem:[%s8605_s0 + $0xb0] sm:$0xf0] }
  0x81   : > { %1304 = vmatmul.bf16.gmra.mxu1 %v4994_v55  ;;  %v6404_v54 = vld [vmem:[%s8605_s0 + $0x74] sm:$0xf]  ;;  %v4935_v55 = vld [vmem:[%s8605_s0 + $0x88] sm:$0xf0]  ;;  %v4954_v62 = vor.u32 %v6409_v50, %v4951_v53 }
  0x82   : > { %1339 = vmatmul.bf16.gmra.mxu3 %v827_v56  ;;  %v4938_v63 = vor.u32 %v6404_v54, %v4935_v55  ;;  %v6416_v50 = vld [vmem:[%s8605_s0 + $0xd4] sm:$0xf] }
  0x90   : > { %1236 = vmatmul.bf16.gmra.mxu0 %v5014_v3  ;;  %1352 = vmatmul.bf16.vlgmr.msrb.gmra.mxu2 %v4878_v4 }
  0x91   : > { %1309 = vmatmul.bf16.gmra.mxu1 %v5018_v5 }
  0x92   : > { %1425 = vmatmul.bf16.vlgmr.msrb.gmra.mxu3 %v4882_v6 }
  0xa0   : > { %1357 = vmatmul.bf16.gmra.mxu2 %v4902_v15  ;;  %1498 = vmatmul.bf16.vlgmr.msrb.gmra.mxu0 %v4886_v16  ;;  %v4957_v15 = vld [vmem:[%s8605_s0 + $0xa0] sm:$0xf]  ;;  %v6413_v16 = vld [vmem:[%s8605_s0 + $0xb4] sm:$0xf0] }
  0xa1   : > { %1571 = vmatmul.bf16.vlgmr.msrb.gmra.mxu1 %v4890_v18  ;;  %v6410_v18 = vld [vmem:[%s8605_s0 + $0xa4] sm:$0xf]  ;;  %v4958_v25 = vor.u32 %v6413_v16, %v4957_v15  ;;  %v6430_v15 = vld [vmem:[%s8605_s0 + $0x13c] sm:$0xf0]  ;;  %v6519_v16 = vld [vmem:[%s8608_s3 + $0x48] sm:$0xff] }
  0xa2   : > { %1430 = vmatmul.bf16.gmra.mxu3 %v4906_v17  ;;  %v4975_v17 = vld [vmem:[%s8605_s0 + $0xe0] sm:$0xf0]  ;;  %2171 = vmatpush.bf16.msra.mxu0 %v6519_v16 }
  0xa3   : > { %v4978_v27 = vor.u32 %v6415_v14, %v4975_v17  ;;  %v6523_v17 = vld [vmem:[%s8608_s3 + $0x68] sm:$0xff] }
  0xa4   : > { %2379 = vmatpush.bf16.msra.mxu1 %v6523_v17 }
  0xad   : > { %v1207_v30 = vpop.f32.mrf.mxu0 }
  0xae   : > { %v1208_v33 = vadd.f32 %v7254_v19, %v1207_v30  ;;  %v1280_v34 = vpop.f32.mrf.mxu1 }
  0xb0   : > { %v7287_v37 = vadd.f32 %v1280_v34, %v1208_v33  ;;  %1362 = vmatmul.bf16.gmra.mxu2 %v4926_v28  ;;  %1503 = vmatmul.bf16.gmra.mxu0 %v4910_v29  ;;  %v4962_v28 = vor.u32 %v6410_v18, %v4959_v20  ;;  %v6427_v18 = vld [vmem:[%s8605_s0 + $0x12c] sm:$0xf]  ;;  %v5005_v20 = vld [vmem:[%s8605_s0 + $0x100] sm:$0xf] }
  0xb1   : > { %1576 = vmatmul.bf16.gmra.mxu1 %v4914_v32 }
  0xb2   : > { %1435 = vmatmul.bf16.gmra.mxu3 %v4930_v31 }
  0xb3   : > { %v1242_v38 = vpop.f32.mrf.mxu2 }
  0xb4   : > { %v1243_v39 = vadd.f32 %v7254_v19, %v1242_v38 }
  0xb5   : > { %v1315_v40 = vpop.f32.mrf.mxu3  ;;  %v1209_v41 = vpop.f32.mrf.mxu0 }
  0xb6   : > { %v7290_v42 = vadd.f32 %v1315_v40, %v1243_v39  ;;  %v1210_v43 = vadd.f32 %v7254_v19, %v1209_v41  ;;  %v1282_v44 = vpop.f32.mrf.mxu1 }
  0xb8   : > { %v7296_v46 = vadd.f32 %v1282_v44, %v1210_v43  ;;  %v4997_v43 = vld [vmem:[%s8605_s0 + $0xf8] sm:$0xf]  ;;  %v6424_v44 = vld [vmem:[%s8605_s0 + $0x10c] sm:$0xf0] }
  0xb9   : > { %v4998_v55 = vor.u32 %v6424_v44, %v4997_v43 }
  0xbb   : > { %v1244_v56 = vpop.f32.mrf.mxu2 }
  0xbc   : > { %v1245_v57 = vadd.f32 %v7254_v19, %v1244_v56  ;;  %v4982_v56 = vor.u32 %v6419_v48, %v4981_v47 }
  0xbd   : > { %v1317_v58 = vpop.f32.mrf.mxu3  ;;  %v1212_v61 = vpop.f32.mrf.mxu0 }
  0xbe   : > { %v7326_v0 = vadd.f32 %v1317_v58, %v1245_v57  ;;  %v1213_v1 = vadd.f32 %v7254_v19, %v1212_v61  ;;  %v1285_v2 = vpop.f32.mrf.mxu1  ;;  %v5002_v58 = vor.u32 %v6421_v45, %v4999_v49 }
  0xc0   : > { %v7329_v3 = vadd.f32 %v1285_v2, %v1213_v1  ;;  %1367 = vmatmul.bf16.gmra.mxu2 %v4950_v59  ;;  %1508 = vmatmul.bf16.gmra.mxu0 %v4934_v60  ;;  %v4986_v59 = vor.u32 %v6416_v50, %v4983_v51  ;;  %v6515_v1 = vld [vmem:[%s8608_s3 + $0x28] sm:$0xff] }
  0xc1   : > { %1581 = vmatmul.bf16.gmra.mxu1 %v4938_v63  ;;  %v6511_v2 = vld [vmem:[%s8608_s3 + $0x8] sm:$0xff]  ;;  %1852 = vmatpush.bf16.msra.mxu2 %v6515_v1 }
  0xc2   : > { %1440 = vmatmul.bf16.gmra.mxu3 %v4954_v62 }
  0xc3   : > { %v1247_v4 = vpop.f32.mrf.mxu2  ;;  %1988 = vmatpush.bf16.msra.mxu3 %v6511_v2 }
  0xc4   : > { %v1248_v5 = vadd.f32 %v7254_v19, %v1247_v4 }
  0xc5   : > { %v1320_v6 = vpop.f32.mrf.mxu3  ;;  %v1214_v7 = vpop.f32.mrf.mxu0 }
  0xc6   : > { %v7332_v8 = vadd.f32 %v1320_v6, %v1248_v5  ;;  %v1215_v9 = vadd.f32 %v7254_v19, %v1214_v7  ;;  %v1287_v10 = vpop.f32.mrf.mxu1 }
  0xc8   : > { %v7335_v11 = vadd.f32 %v1287_v10, %v1215_v9 }
  0xcb   : > { %v1249_v21 = vpop.f32.mrf.mxu2 }
  0xcc   : > { %v1250_v22 = vadd.f32 %v7254_v19, %v1249_v21  ;;  %v6425_v21 = vld [vmem:[%s8605_s0 + $0x114] sm:$0xf0] }
  0xcd   : > { %v1322_v23 = vpop.f32.mrf.mxu3  ;;  %v1217_v26 = vpop.f32.mrf.mxu0 }
  0xce   : > { %v7362_v29 = vadd.f32 %v1322_v23, %v1250_v22  ;;  %v1218_v30 = vadd.f32 %v7254_v19, %v1217_v26  ;;  %v1290_v31 = vpop.f32.mrf.mxu1  ;;  %v5023_v22 = vld [vmem:[%s8605_s0 + $0x140] sm:$0xf0] }
  0xcf   : > { %v6422_v23 = vld [vmem:[%s8605_s0 + $0x104] sm:$0xf] }
  0xd0   : > { %v7365_v32 = vadd.f32 %v1290_v31, %v1218_v30  ;;  %1372 = vmatmul.bf16.gmra.mxu2 %v4974_v24  ;;  %1513 = vmatmul.bf16.gmra.mxu0 %v4958_v25  ;;  %v5007_v24 = vld [vmem:[%s8605_s0 + $0x118] sm:$0xf0]  ;;  %v5006_v30 = vor.u32 %v6425_v21, %v5005_v20 }
  0xd1   : > { %1586 = vmatmul.bf16.gmra.mxu1 %v4962_v28  ;;  %v5022_v28 = vor.u32 %v6430_v15, %v5021_v13 }
  0xd2   : > { %1445 = vmatmul.bf16.gmra.mxu3 %v4978_v27 }
  0xd3   : > { %v1252_v33 = vpop.f32.mrf.mxu2 }
  0xd4   : > { %v1253_v34 = vadd.f32 %v7254_v19, %v1252_v33  ;;  %v5026_v33 = vor.u32 %v6427_v18, %v5023_v22 }
  0xd5   : > { %v1325_v35 = vpop.f32.mrf.mxu3  ;;  %v1219_v36 = vpop.f32.mrf.mxu0 }
  0xd6   : > { %v7368_v38 = vadd.f32 %v1325_v35, %v1253_v34  ;;  %v1220_v39 = vadd.f32 %v7254_v19, %v1219_v36  ;;  %v1292_v40 = vpop.f32.mrf.mxu1  ;;  %v5010_v34 = vor.u32 %v6422_v23, %v5007_v24 }
  0xd8   : > { %v7371_v41 = vadd.f32 %v1292_v40, %v1220_v39 }
  0xdb   : > { %v1254_v52 = vpop.f32.mrf.mxu2 }
  0xdc   : > { %v1255_v53 = vadd.f32 %v7254_v19, %v1254_v52  ;;  %v5045_v52 = vld [vmem:[%s8605_s0 + $0x158] sm:$0xf] }
  0xdd   : > { %v1327_v54 = vpop.f32.mrf.mxu3  ;;  %v1222_v57 = vpop.f32.mrf.mxu0 }
  0xde   : > { %v7398_v60 = vadd.f32 %v1327_v54, %v1255_v53  ;;  %v1223_v61 = vadd.f32 %v7254_v19, %v1222_v57  ;;  %v1295_v62 = vpop.f32.mrf.mxu1  ;;  %v6436_v53 = vld [vmem:[%s8605_s0 + $0x16c] sm:$0xf0]  ;;  %v6433_v54 = vld [vmem:[%s8605_s0 + $0x15c] sm:$0xf]  ;;  %v5047_v57 = vld [vmem:[%s8605_s0 + $0x170] sm:$0xf0] }
  0xdf   : > { %v5046_v2 = vor.u32 %v6436_v53, %v5045_v52 }
  0xe0   : > { %v7401_v63 = vadd.f32 %v1295_v62, %v1223_v61  ;;  %1377 = vmatmul.bf16.gmra.mxu2 %v4998_v55  ;;  %1518 = vmatmul.bf16.gmra.mxu0 %v4982_v56  ;;  %v5029_v55 = vld [vmem:[%s8605_s0 + $0x130] sm:$0xf]  ;;  %v6431_v56 = vld [vmem:[%s8605_s0 + $0x144] sm:$0xf0] }
  0xe1   : > { %1591 = vmatmul.bf16.gmra.mxu1 %v4986_v59  ;;  %v5031_v59 = vld [vmem:[%s8605_s0 + $0x148] sm:$0xf0] }
  0xe2   : > { %1450 = vmatmul.bf16.gmra.mxu3 %v5002_v58  ;;  %v6428_v58 = vld [vmem:[%s8605_s0 + $0x134] sm:$0xf] }
  0xe3   : > { %v1257_v4 = vpop.f32.mrf.mxu2 }
  0xe4   : > { %v1258_v5 = vadd.f32 %v7254_v19, %v1257_v4  ;;  %v5030_v4 = vor.u32 %v6431_v56, %v5029_v55 }
  0xe5   : > { %v1330_v6 = vpop.f32.mrf.mxu3  ;;  %v1224_v7 = vpop.f32.mrf.mxu0 }
  0xe6   : > { %v7410_v9 = vadd.f32 %v1330_v6, %v1258_v5  ;;  %v1225_v10 = vadd.f32 %v7254_v19, %v1224_v7  ;;  %v1297_v12 = vpop.f32.mrf.mxu1  ;;  %v5050_v6 = vor.u32 %v6433_v54, %v5047_v57  ;;  %v5034_v7 = vor.u32 %v6428_v58, %v5031_v59  ;;  %v6514_v59 = vld [vmem:[%s8608_s3 + $0x20] sm:$0xff] }
  0xe7   : > { %1853 = vmatpush.bf16.msra.mxu2 %v6514_v59  ;;  %v5103_v59 = vld [vmem:[%s8605_s0 + $0x1d8] sm:$0xf0] }
  0xe8   : > { %v7416_v14 = vadd.f32 %v1297_v12, %v1225_v10 }
  0xeb   : > { %v1259_v25 = vpop.f32.mrf.mxu2 }
  0xec   : > { %v1260_v26 = vadd.f32 %v7254_v19, %v1259_v25  ;;  %v5069_v25 = vld [vmem:[%s8605_s0 + $0x188] sm:$0xf] }
  0xed   : > { %v1332_v27 = vpop.f32.mrf.mxu3  ;;  %v1227_v31 = vpop.f32.mrf.mxu0 }
  0xee   : > { %v7446_v35 = vadd.f32 %v1332_v27, %v1260_v26  ;;  %v1228_v36 = vadd.f32 %v7254_v19, %v1227_v31  ;;  %v1300_v39 = vpop.f32.mrf.mxu1  ;;  %v6442_v26 = vld [vmem:[%s8605_s0 + $0x19c] sm:$0xf0]  ;;  %v6439_v27 = vld [vmem:[%s8605_s0 + $0x18c] sm:$0xf]  ;;  %v5071_v31 = vld [vmem:[%s8605_s0 + $0x1a0] sm:$0xf0] }
  0xf0   : > { %v7449_v40 = vadd.f32 %v1300_v39, %v1228_v36  ;;  %1382 = vmatmul.bf16.gmra.mxu2 %v5022_v28  ;;  %1523 = vmatmul.bf16.gmra.mxu0 %v5006_v30  ;;  %v5053_v28 = vld [vmem:[%s8605_s0 + $0x160] sm:$0xf]  ;;  %v6437_v30 = vld [vmem:[%s8605_s0 + $0x174] sm:$0xf0] }
  0xf1   : > { %1596 = vmatmul.bf16.gmra.mxu1 %v5010_v34  ;;  %v5055_v34 = vld [vmem:[%s8605_s0 + $0x178] sm:$0xf0] }
  0xf2   : > { %1455 = vmatmul.bf16.gmra.mxu3 %v5026_v33  ;;  %v6434_v33 = vld [vmem:[%s8605_s0 + $0x164] sm:$0xf] }
  0xf3   : > { %v1262_v43 = vpop.f32.mrf.mxu2 }
  0xf4   : > { %v1263_v44 = vadd.f32 %v7254_v19, %v1262_v43  ;;  %v5070_v43 = vor.u32 %v6442_v26, %v5069_v25 }
  0xf5   : > { %v1335_v45 = vpop.f32.mrf.mxu3  ;;  %v1229_v47 = vpop.f32.mrf.mxu0 }
  0xf6   : > { %v7452_v48 = vadd.f32 %v1335_v45, %v1263_v44  ;;  %v1230_v49 = vadd.f32 %v7254_v19, %v1229_v47  ;;  %v1302_v50 = vpop.f32.mrf.mxu1  ;;  %v5054_v44 = vor.u32 %v6437_v30, %v5053_v28  ;;  %v5074_v47 = vor.u32 %v6439_v27, %v5071_v31  ;;  %v6518_v28 = vld [vmem:[%s8608_s3 + $0x40] sm:$0xff] }
  0xf7   : > { %2172 = vmatpush.bf16.msra.mxu0 %v6518_v28 }
  0xf8   : > { %v7455_v51 = vadd.f32 %v1302_v50, %v1230_v49  ;;  %v5058_v49 = vor.u32 %v6434_v33, %v5055_v34 }
  0xfb   : > { %v1264_v61 = vpop.f32.mrf.mxu2 }
  0xfc   : > { %v1265_v62 = vadd.f32 %v7254_v19, %v1264_v61  ;;  %v6510_v61 = vld [vmem:[%s8608_s3] sm:$0xff] }
  0xfd   : > { %v1337_v1 = vpop.f32.mrf.mxu3  ;;  %v1232_v5 = vpop.f32.mrf.mxu0  ;;  %1989 = vmatpush.bf16.msra.mxu3 %v6510_v61 }
  0xfe   : > { %v7482_v10 = vadd.f32 %v1337_v1, %v1265_v62  ;;  %v1233_v12 = vadd.f32 %v7254_v19, %v1232_v5  ;;  %v1305_v13 = vpop.f32.mrf.mxu1  ;;  %v6443_v5 = vld [vmem:[%s8605_s0 + $0x1a4] sm:$0xf0] }
 0x100   : > { %v7485_v15 = vadd.f32 %v1305_v13, %v1233_v12  ;;  %1387 = vmatmul.bf16.gmra.mxu2 %v5046_v2  ;;  %1528 = vmatmul.bf16.gmra.mxu0 %v5030_v4  ;;  %v5093_v2 = vld [vmem:[%s8605_s0 + $0x1b8] sm:$0xf]  ;;  %v6445_v4 = vld [vmem:[%s8605_s0 + $0x1bc] sm:$0xf]  ;;  %v5079_v12 = vld [vmem:[%s8605_s0 + $0x1a8] sm:$0xf0] }
 0x101   : > { %1601 = vmatmul.bf16.gmra.mxu1 %v5034_v7  ;;  %v6440_v7 = vld [vmem:[%s8605_s0 + $0x194] sm:$0xf] }
 0x102   : > { %1460 = vmatmul.bf16.gmra.mxu3 %v5050_v6  ;;  %v5095_v6 = vld [vmem:[%s8605_s0 + $0x1d0] sm:$0xf0]  ;;  %v5082_v25 = vor.u32 %v6440_v7, %v5079_v12 }
 0x103   : > { %v1267_v16 = vpop.f32.mrf.mxu2 }
 0x104   : > { %v1268_v17 = vadd.f32 %v7254_v19, %v1267_v16 }
 0x105   : > { %v1340_v18 = vpop.f32.mrf.mxu3  ;;  %v1234_v20 = vpop.f32.mrf.mxu0 }
 0x106   : > { %v7488_v21 = vadd.f32 %v1340_v18, %v1268_v17  ;;  %v1235_v22 = vadd.f32 %v7254_v19, %v1234_v20  ;;  %v1307_v23 = vpop.f32.mrf.mxu1 }
 0x108   : > { %v7491_v24 = vadd.f32 %v1307_v23, %v1235_v22  ;;  %v5098_v23 = vor.u32 %v6445_v4, %v5095_v6 }
 0x10b   : > { %v1269_v36 = vpop.f32.mrf.mxu2 }
 0x10d   : > { %v1342_v39 = vpop.f32.mrf.mxu3  ;;  %v1237_v45 = vpop.f32.mrf.mxu0 }
 0x10e   : > { %v1238_v50 = vadd.f32 %v7254_v19, %v1237_v45  ;;  %v1310_v52 = vpop.f32.mrf.mxu1 }
 0x110   : > { %v7518_v53 = vadd.f32 %v1310_v52, %v1238_v50  ;;  %1392 = vmatmul.bf16.gmra.mxu2 %v5070_v43  ;;  %1533 = vmatmul.bf16.gmra.mxu0 %v5054_v44  ;;  %v6522_v43 = vld [vmem:[%s8608_s3 + $0x60] sm:$0xff]  ;;  %v5117_v50 = vld [vmem:[%s8605_s0 + $0x1e8] sm:$0xf] }
 0x111   : > { %1606 = vmatmul.bf16.gmra.mxu1 %v5058_v49  ;;  %v6454_v52 = vld [vmem:[%s8605_s0 + $0x1fc] sm:$0xf0] }
 0x112   : > { %1465 = vmatmul.bf16.gmra.mxu3 %v5074_v47  ;;  %2380 = vmatpush.bf16.msra.mxu1 %v6522_v43  ;;  %v5127_v43 = vld [vmem:[%s8605_s0 + $0x208] sm:$0xf0] }
 0x113   : > { %v1353_v54 = vpop.f32.mrf.mxu2 }
 0x114   : > { %v1354_v62 = vadd.f32 %v1353_v54, %v7287_v37  ;;  %v5077_v37 = vld [vmem:[%s8605_s0 + $0x190] sm:$0xf]  ;;  %v6451_v54 = vld [vmem:[%s8605_s0 + $0x1ec] sm:$0xf] }
 0x115   : > { %v1426_v55 = vpop.f32.mrf.mxu3  ;;  %v1239_v56 = vpop.f32.mrf.mxu0  ;;  %v5078_v20 = vor.u32 %v6443_v5, %v5077_v37 }
 0x116   : > { %v1240_v57 = vadd.f32 %v7254_v19, %v1239_v56  ;;  %v1312_v58 = vpop.f32.mrf.mxu1  ;;  %v6448_v19 = vld [vmem:[%s8605_s0 + $0x1cc] sm:$0xf0]  ;;  %v1427_v16 = vadd.f32 %v1426_v55, %v1354_v62  ;;  %v5119_v55 = vld [vmem:[%s8605_s0 + $0x200] sm:$0xf0]  ;;  %v6449_v56 = vld [vmem:[%s8605_s0 + $0x1d4] sm:$0xf0] }
 0x117   : > { %v5094_v18 = vor.u32 %v6448_v19, %v5093_v2  ;;  %v5118_v19 = vor.u32 %v6454_v52, %v5117_v50  ;;  %v5122_v5 = vor.u32 %v6451_v54, %v5119_v55 }
 0x118   : > { %v7528_v1 = vadd.f32 %v1312_v58, %v1240_v57  ;;  %v6446_v58 = vld [vmem:[%s8605_s0 + $0x1c4] sm:$0xf] }
 0x119   : > { %v5106_v6 = vor.u32 %v6446_v58, %v5103_v59 }
 0x11b   : > { %v1355_v13 = vpop.f32.mrf.mxu2 }
 0x11c   : > { %v1356_v30 = vadd.f32 %v1355_v13, %v7296_v46 }
 0x11d   : > { %v1428_v17 = vpop.f32.mrf.mxu3  ;;  %v1499_v22 = vpop.f32.mrf.mxu0 }
 0x11e   : > { %v1500_v26 = vadd.f32 %v1499_v22, %v1427_v16  ;;  %v1572_v27 = vpop.f32.mrf.mxu1  ;;  %v1429_v36 = vadd.f32 %v1428_v17, %v1356_v30  ;;  %v6460_v30 = vld [vmem:[%s8605_s0 + $0x22c] sm:$0xf0] }
 0x120   : > { %v1573_v31 = vadd.f32 %v1572_v27, %v1500_v26  ;;  %1397 = vmatmul.bf16.gmra.mxu2 %v5094_v18  ;;  %1538 = vmatmul.bf16.gmra.mxu0 %v5078_v20 }
 0x121   : > { %1611 = vmatmul.bf16.gmra.mxu1 %v5082_v25 }
 0x122   : > { %1470 = vmatmul.bf16.gmra.mxu3 %v5098_v23  ;;  %v1636_v33 = vmax.f32 %v1573_v31, 0.0  ;;  %v6457_v31 = vld [vmem:[%s8605_s0 + $0x21c] sm:$0xf] }
 0x123   : > { %v1358_v34 = vpop.f32.mrf.mxu2 }
 0x124   : > { %1662 = vst.msk [vmem:[#allocation2] sm:$0xff] %vm1661_vm0, %v1636_v33  ;;  %v1359_v47 = vadd.f32 %v1358_v34, %v7329_v3  ;;  %v5101_v3 = vld [vmem:[%s8605_s0 + $0x1c0] sm:$0xf]  ;;  %v5143_v33 = vld [vmem:[%s8605_s0 + $0x230] sm:$0xf0] }
 0x125   : > { %v1431_v39 = vpop.f32.mrf.mxu3  ;;  %v1501_v44 = vpop.f32.mrf.mxu0  ;;  %v5102_v4 = vor.u32 %v6449_v56, %v5101_v3  ;;  %v6455_v34 = vld [vmem:[%s8605_s0 + $0x204] sm:$0xf0]  ;;  %v5146_v52 = vor.u32 %v6457_v31, %v5143_v33 }
 0x126   : > { %v1502_v45 = vadd.f32 %v1501_v44, %v1429_v36  ;;  %v1574_v46 = vpop.f32.mrf.mxu1  ;;  %v1432_v62 = vadd.f32 %v1431_v39, %v1359_v47  ;;  %v6452_v39 = vld [vmem:[%s8605_s0 + $0x1f4] sm:$0xf] }
 0x127   : > { %v5130_v54 = vor.u32 %v6452_v39, %v5127_v43 }
 0x128   : > { %v1575_v49 = vadd.f32 %v1574_v46, %v1502_v45 }
 0x12a   : > { %v1637_v57 = vmax.f32 %v1575_v49, 0.0 }
 0x12b   : > { %v1360_v61 = vpop.f32.mrf.mxu2 }
 0x12c   : > { %1663 = vst.msk [vmem:[#allocation2 + $0x8] sm:$0xff] %vm1661_vm0, %v1637_v57  ;;  %v1361_v13 = vadd.f32 %v1360_v61, %v7335_v11  ;;  %v5141_v11 = vld [vmem:[%s8605_s0 + $0x218] sm:$0xf] }
 0x12d   : > { %v1433_v2 = vpop.f32.mrf.mxu3  ;;  %v1504_v37 = vpop.f32.mrf.mxu0  ;;  %v5142_v47 = vor.u32 %v6460_v30, %v5141_v11 }
 0x12e   : > { %v1505_v7 = vadd.f32 %v1504_v37, %v1432_v62  ;;  %v1577_v12 = vpop.f32.mrf.mxu1  ;;  %v1434_v20 = vadd.f32 %v1433_v2, %v1361_v13  ;;  %v6461_v13 = vld [vmem:[%s8605_s0 + $0x234] sm:$0xf0] }
 0x130   : > { %v1578_v16 = vadd.f32 %v1577_v12, %v1505_v7  ;;  %1402 = vmatmul.bf16.gmra.mxu2 %v5118_v19  ;;  %1543 = vmatmul.bf16.gmra.mxu0 %v5102_v4  ;;  %v427_v19 = vld [vmem:[%s8605_s0 + $0x248] sm:$0xff]  ;;  %v5149_v12 = vld [vmem:[%s8605_s0 + $0x220] sm:$0xf] }
 0x131   : > { %1616 = vmatmul.bf16.gmra.mxu1 %v5106_v6  ;;  %v750_v6 = vunpack.c.l.b16 %v427_v19  ;;  %v751_v7 = vunpack.c.h.b16 %v427_v19 }
 0x132   : > { %1475 = vmatmul.bf16.gmra.mxu3 %v5122_v5  ;;  %v1638_v17 = vmax.f32 %v1578_v16, 0.0 }
 0x133   : > { %v1363_v18 = vpop.f32.mrf.mxu2 }
 0x134   : > { %1664 = vst.msk [vmem:[#allocation2 + $0x10] sm:$0xff] %vm1661_vm0, %v1638_v17  ;;  %v1364_v27 = vadd.f32 %v1363_v18, %v7365_v32  ;;  %v5125_v32 = vld [vmem:[%s8605_s0 + $0x1f0] sm:$0xf]  ;;  %v6458_v17 = vld [vmem:[%s8605_s0 + $0x224] sm:$0xf] }
 0x135   : > { %v1436_v22 = vpop.f32.mrf.mxu3  ;;  %v1506_v23 = vpop.f32.mrf.mxu0  ;;  %v5126_v49 = vor.u32 %v6455_v34, %v5125_v32 }
 0x136   : > { %v1507_v25 = vadd.f32 %v1506_v23, %v1434_v20  ;;  %v1579_v26 = vpop.f32.mrf.mxu1  ;;  %v1437_v45 = vadd.f32 %v1436_v22, %v1364_v27  ;;  %v828_v23 = vpack.c.b16 %v750_v6, %v750_v6  ;;  %v829_v27 = vpack.c.b16 %v751_v7, %v751_v7 }
 0x138   : > { %v1580_v28 = vadd.f32 %v1579_v26, %v1507_v25  ;;  %v5150_v25 = vor.u32 %v6461_v13, %v5149_v12 }
 0x13a   : > { %v1639_v36 = vmax.f32 %v1580_v28, 0.0 }
 0x13b   : > { %v1365_v44 = vpop.f32.mrf.mxu2 }
 0x13c   : > { %1665 = vst.msk [vmem:[#allocation2 + $0x18] sm:$0xff] %vm1661_vm0, %v1639_v36  ;;  %v1366_v56 = vadd.f32 %v1365_v44, %v7371_v41  ;;  %v428_v44 = vld [vmem:[%s8605_s0 + $0x250] sm:$0xff] }
 0x13d   : > { %v1438_v46 = vpop.f32.mrf.mxu3  ;;  %v1509_v50 = vpop.f32.mrf.mxu0 }
 0x13e   : > { %v1510_v55 = vadd.f32 %v1509_v50, %v1437_v45  ;;  %v1582_v3 = vpop.f32.mrf.mxu1  ;;  %v1439_v61 = vadd.f32 %v1438_v46, %v1366_v56  ;;  %v753_v50 = vunpack.c.h.b16 %v428_v44 }
 0x140   : > { %v1583_v57 = vadd.f32 %v1582_v3, %v1510_v55  ;;  %1407 = vmatmul.bf16.gmra.mxu2 %v5142_v47  ;;  %1548 = vmatmul.bf16.gmra.mxu0 %v5126_v49  ;;  %v752_v49 = vunpack.c.l.b16 %v428_v44  ;;  %v1737_v55 = vld [vmem:[#allocation2 + $0xa] sm:$0xff] }
 0x141   : > { %1621 = vmatmul.bf16.gmra.mxu1 %v5130_v54 }
 0x142   : > { %1480 = vmatmul.bf16.gmra.mxu3 %v5146_v52  ;;  %v1640_v58 = vmax.f32 %v1583_v57, 0.0  ;;  %v830_v57 = vpack.c.b16 %v752_v49, %v752_v49 }
 0x143   : > { %v1368_v59 = vpop.f32.mrf.mxu2 }
 0x144   : > { %1666 = vst.msk [vmem:[#allocation2 + $0x20] sm:$0xff] %vm1661_vm0, %v1640_v58  ;;  %v1369_v41 = vadd.f32 %v1368_v59, %v7401_v63  ;;  %v5151_v63 = vld [vmem:[%s8605_s0 + $0x238] sm:$0xf0]  ;;  %v1691_v58 = vld [vmem:[#allocation2 + $0x8] sm:$0xff] }
 0x145   : > { %v1441_v62 = vpop.f32.mrf.mxu3  ;;  %v1511_v2 = vpop.f32.mrf.mxu0  ;;  %v5154_v28 = vor.u32 %v6458_v17, %v5151_v63 }
 0x146   : > { %v1512_v4 = vadd.f32 %v1511_v2, %v1439_v61  ;;  %v1584_v37 = vpop.f32.mrf.mxu1  ;;  %v1442_v20 = vadd.f32 %v1441_v62, %v1369_v41  ;;  %v831_v61 = vpack.c.b16 %v753_v50, %v753_v50  ;;  %v1736_v62 = vld [vmem:[#allocation2 + $0x2] sm:$0xff] }
 0x148   : > { %v1585_v5 = vadd.f32 %v1584_v37, %v1512_v4  ;;  %v1761_v4 = vpack.c.bf16 %v1737_v55, %v1736_v62  ;;  %v1690_v37 = vld [vmem:[#allocation2] sm:$0xff] }
 0x14a   : > { %v1641_v16 = vmax.f32 %v1585_v5, 0.0 }
 0x14b   : > { %v1370_v18 = vpop.f32.mrf.mxu2 }
 0x14c   : > { %1667 = vst.msk [vmem:[#allocation2 + $0x28] sm:$0xff] %vm1661_vm0, %v1641_v16  ;;  %v1371_v31 = vadd.f32 %v1370_v18, %v7416_v14 }
 0x14d   : > { %v1443_v22 = vpop.f32.mrf.mxu3  ;;  %v1514_v26 = vpop.f32.mrf.mxu0 }
 0x14e   : > { %v1515_v11 = vadd.f32 %v1514_v26, %v1442_v20  ;;  %v1587_v30 = vpop.f32.mrf.mxu1  ;;  %v1444_v36 = vadd.f32 %v1443_v22, %v1371_v31  ;;  %v1738_v31 = vld [vmem:[#allocation2 + $0x12] sm:$0xff] }
 0x150   : > { %v1588_v33 = vadd.f32 %v1587_v30, %v1515_v11  ;;  %1412 = vmatmul.bf16.gmra.mxu2 %v828_v23  ;;  %1553 = vmatmul.bf16.gmra.mxu0 %v5150_v25  ;;  %v1739_v23 = vld [vmem:[#allocation2 + $0x1a] sm:$0xff] }
 0x151   : > { %1626 = vmatmul.bf16.gmra.mxu1 %v5154_v28  ;;  %v2056_v25 = vld [vmem:[#allocation2 + $0x1c] sm:$0xff] }
 0x152   : > { %1485 = vmatmul.bf16.gmra.mxu3 %v829_v27  ;;  %v1642_v32 = vmax.f32 %v1588_v33, 0.0  ;;  %v1693_v28 = vld [vmem:[#allocation2 + $0x18] sm:$0xff] }
 0x153   : > { %v1373_v34 = vpop.f32.mrf.mxu2  ;;  %v2264_v11 = vld [vmem:[#allocation2 + $0x1e] sm:$0xff]  ;;  %v2055_v33 = vld [vmem:[#allocation2 + $0x14] sm:$0xff] }
 0x154   : > { %1668 = vst.msk [vmem:[#allocation2 + $0x30] sm:$0xff] %vm1661_vm0, %v1642_v32  ;;  %v1374_v14 = vadd.f32 %v1373_v34, %v7449_v40  ;;  %v1715_v40 = vpack.c.bf16 %v1691_v58, %v1690_v37 }
 0x155   : > { %v1446_v39 = vpop.f32.mrf.mxu3  ;;  %v1516_v43 = vpop.f32.mrf.mxu0 }
 0x156   : > { %v1517_v45 = vadd.f32 %v1516_v43, %v1444_v36  ;;  %v1589_v46 = vpop.f32.mrf.mxu1  ;;  %v1447_v3 = vadd.f32 %v1446_v39, %v1374_v14  ;;  %v1762_v36 = vpack.c.bf16 %v1739_v23, %v1738_v31  ;;  %v1692_v39 = vld [vmem:[#allocation2 + $0x10] sm:$0xff]  ;;  %v2080_v43 = vpack.c.bf16 %v2056_v25, %v2055_v33 }
 0x157   : > { %v1716_v44 = vpack.c.bf16 %v1693_v28, %v1692_v39 }
 0x158   : > { %v1590_v47 = vadd.f32 %v1589_v46, %v1517_v45 }
 0x15a   : > { %v1643_v52 = vmax.f32 %v1590_v47, 0.0 }
 0x15b   : > { %v1375_v54 = vpop.f32.mrf.mxu2 }
 0x15c   : > { %1669 = vst.msk [vmem:[#allocation2 + $0x38] sm:$0xff] %vm1661_vm0, %v1643_v52  ;;  %v1376_v41 = vadd.f32 %v1375_v54, %v7455_v51 }
 0x15d   : > { %v1448_v56 = vpop.f32.mrf.mxu3  ;;  %v1519_v59 = vpop.f32.mrf.mxu0 }
 0x15e   : > { %v1520_v2 = vadd.f32 %v1519_v59, %v1447_v3  ;;  %v1592_v19 = vpop.f32.mrf.mxu1  ;;  %v1449_v12 = vadd.f32 %v1448_v56, %v1376_v41  ;;  %v1741_v59 = vld [vmem:[#allocation2 + $0x2a] sm:$0xff] }
 0x15f   : > { %v2057_v41 = vld [vmem:[#allocation2 + $0x24] sm:$0xff] }
 0x160   : > { %v1593_v5 = vadd.f32 %v1592_v19, %v1520_v2  ;;  %1558 = vmatmul.bf16.gmra.mxu0 %v830_v57  ;;  %5371 = vmatmul.msk.bf16.vlgmr.msra.gmra.mxu2 %vm1661_vm0, %v1761_v4  ;;  %v1695_v19 = vld [vmem:[#allocation2 + $0x28] sm:$0xff] }
 0x161   : > { %1631 = vmatmul.bf16.gmra.mxu1 %v831_v61  ;;  %v2058_v61 = vld [vmem:[#allocation2 + $0x2c] sm:$0xff] }
 0x162   : > { %5400 = vmatmul.msk.bf16.vlgmr.msra.gmra.mxu3 %vm1661_vm0, %v1715_v40  ;;  %v1644_v6 = vmax.f32 %v1593_v5, 0.0  ;;  %v2266_v4 = vld [vmem:[#allocation2 + $0x2e] sm:$0xff]  ;;  %v1740_v40 = vld [vmem:[#allocation2 + $0x22] sm:$0xff] }
 0x163   : > { %v1378_v7 = vpop.f32.mrf.mxu2 }
 0x164   : > { %1670 = vst.msk [vmem:[#allocation2 + $0x40] sm:$0xff] %vm1661_vm0, %v1644_v6  ;;  %v1379_v18 = vadd.f32 %v1378_v7, %v7485_v15  ;;  %v2263_v15 = vld [vmem:[#allocation2 + $0x16] sm:$0xff]  ;;  %v1763_v7 = vpack.c.bf16 %v1741_v59, %v1740_v40 }
 0x165   : > { %v1451_v13 = vpop.f32.mrf.mxu3  ;;  %v1521_v16 = vpop.f32.mrf.mxu0  ;;  %v2288_v45 = vpack.c.bf16 %v2264_v11, %v2263_v15  ;;  %v1742_v15 = vld [vmem:[#allocation2 + $0x32] sm:$0xff] }
 0x166   : > { %v1522_v17 = vadd.f32 %v1521_v16, %v1449_v12  ;;  %v1594_v63 = vpop.f32.mrf.mxu1  ;;  %v1452_v26 = vadd.f32 %v1451_v13, %v1379_v18  ;;  %v1694_v12 = vld [vmem:[#allocation2 + $0x20] sm:$0xff]  ;;  %v2081_v13 = vpack.c.bf16 %v2058_v61, %v2057_v41 }
 0x167   : > { %v1717_v16 = vpack.c.bf16 %v1695_v19, %v1694_v12 }
 0x168   : > { %v1595_v20 = vadd.f32 %v1594_v63, %v1522_v17 }
 0x16a   : > { %v1645_v51 = vmax.f32 %v1595_v20, 0.0 }
 0x16b   : > { %v1380_v22 = vpop.f32.mrf.mxu2  ;;  %v1743_v31 = vld [vmem:[#allocation2 + $0x3a] sm:$0xff] }
 0x16c   : > { %1671 = vst.msk [vmem:[#allocation2 + $0x48] sm:$0xff] %vm1661_vm0, %v1645_v51  ;;  %v1381_v46 = vadd.f32 %v1380_v22, %v7491_v24  ;;  %v2060_v33 = vld [vmem:[#allocation2 + $0x3c] sm:$0xff] }
 0x16d   : > { %v1453_v27 = vpop.f32.mrf.mxu3  ;;  %v1524_v30 = vpop.f32.mrf.mxu0  ;;  %v2268_v39 = vld [vmem:[#allocation2 + $0x3e] sm:$0xff] }
 0x16e   : > { %v1525_v32 = vadd.f32 %v1524_v30, %v1452_v26  ;;  %v1597_v34 = vpop.f32.mrf.mxu1  ;;  %v1454_v50 = vadd.f32 %v1453_v27, %v1381_v46 }
 0x170   : > { %v1598_v14 = vadd.f32 %v1597_v34, %v1525_v32  ;;  %5372 = vmatmul.msk.bf16.gmra.mxu2 %vm1661_vm0, %v1762_v36  ;;  %5437 = vmatmul.msk.bf16.vlgmr.msra.gmra.mxu0 %vm1661_vm0, %v2080_v43  ;;  %v1697_v36 = vld [vmem:[#allocation2 + $0x38] sm:$0xff] }
 0x171   : > { %5474 = vmatmul.msk.bf16.vlgmr.msra.gmra.mxu1 %vm1661_vm0, %v2288_v45 }
 0x172   : > { %5401 = vmatmul.msk.bf16.gmra.mxu3 %vm1661_vm0, %v1716_v44  ;;  %v1646_v47 = vmax.f32 %v1598_v14, 0.0  ;;  %v2059_v44 = vld [vmem:[#allocation2 + $0x34] sm:$0xff]  ;;  %v1764_v14 = vpack.c.bf16 %v1743_v31, %v1742_v15 }
 0x173   : > { %v1383_v49 = vpop.f32.mrf.mxu2  ;;  %v1744_v12 = vld [vmem:[#allocation2 + $0x42] sm:$0xff] }
 0x174   : > { %1672 = vst.msk [vmem:[#allocation2 + $0x50] sm:$0xff] %vm1661_vm0, %v1646_v47  ;;  %v1384_v24 = vadd.f32 %v1383_v49, %v7518_v53  ;;  %v2265_v53 = vld [vmem:[#allocation2 + $0x26] sm:$0xff]  ;;  %v1696_v47 = vld [vmem:[#allocation2 + $0x30] sm:$0xff]  ;;  %v2082_v49 = vpack.c.bf16 %v2060_v33, %v2059_v44 }
 0x175   : > { %v1456_v52 = vpop.f32.mrf.mxu3  ;;  %v1526_v54 = vpop.f32.mrf.mxu0  ;;  %v2289_v17 = vpack.c.bf16 %v2266_v4, %v2265_v53 }
 0x176   : > { %v1527_v55 = vadd.f32 %v1526_v54, %v1454_v50  ;;  %v1599_v3 = vpop.f32.mrf.mxu1  ;;  %v1457_v62 = vadd.f32 %v1456_v52, %v1384_v24  ;;  %v1718_v50 = vpack.c.bf16 %v1697_v36, %v1696_v47 }
 0x178   : > { %v1600_v56 = vadd.f32 %v1599_v3, %v1527_v55 }
 0x17a   : > { %v1647_v57 = vmax.f32 %v1600_v56, 0.0 }
 0x17b   : > { %v1385_v58 = vpop.f32.mrf.mxu2  ;;  %v1745_v4 = vld [vmem:[#allocation2 + $0x4a] sm:$0xff] }
 0x17c   : > { %1673 = vst.msk [vmem:[#allocation2 + $0x58] sm:$0xff] %vm1661_vm0, %v1647_v57  ;;  %v1386_v63 = vadd.f32 %v1385_v58, %v7528_v1 }
 0x17d   : > { %v1458_v2 = vpop.f32.mrf.mxu3  ;;  %v1529_v37 = vpop.f32.mrf.mxu0 }
 0x17e   : > { %v1530_v5 = vadd.f32 %v1529_v37, %v1457_v62  ;;  %v1602_v6 = vpop.f32.mrf.mxu1  ;;  %v1459_v22 = vadd.f32 %v1458_v2, %v1386_v63  ;;  %v2062_v37 = vld [vmem:[#allocation2 + $0x4c] sm:$0xff]  ;;  %v1698_v63 = vld [vmem:[#allocation2 + $0x40] sm:$0xff] }
 0x180   : > { %v1603_v18 = vadd.f32 %v1602_v6, %v1530_v5  ;;  %5373 = vmatmul.msk.bf16.gmra.mxu2 %vm1661_vm0, %v1763_v7  ;;  %5438 = vmatmul.msk.bf16.gmra.mxu0 %vm1661_vm0, %v2081_v13  ;;  %v1699_v5 = vld [vmem:[#allocation2 + $0x48] sm:$0xff] }
 0x181   : > { %5475 = vmatmul.msk.bf16.gmra.mxu1 %vm1661_vm0, %v2289_v17  ;;  %v2270_v6 = vld [vmem:[#allocation2 + $0x4e] sm:$0xff]  ;;  %v2061_v13 = vld [vmem:[#allocation2 + $0x44] sm:$0xff]  ;;  %v1765_v17 = vpack.c.bf16 %v1745_v4, %v1744_v12 }
 0x182   : > { %5402 = vmatmul.msk.bf16.gmra.mxu3 %vm1661_vm0, %v1717_v16  ;;  %v1648_v20 = vmax.f32 %v1603_v18, 0.0  ;;  %v2083_v18 = vpack.c.bf16 %v2062_v37, %v2061_v13 }
 0x183   : > { %v1388_v51 = vpop.f32.mrf.mxu2  ;;  %v1701_v15 = vld [vmem:[#allocation2 + $0x58] sm:$0xff] }
 0x184   : > { %1674 = vst.msk [vmem:[#allocation2 + $0x60] sm:$0xff] %vm1661_vm0, %v1648_v20  ;;  %v1389_v1 = vadd.f32 %v1388_v51, %v7290_v42  ;;  %v2267_v42 = vld [vmem:[#allocation2 + $0x36] sm:$0xff]  ;;  %v1719_v20 = vpack.c.bf16 %v1699_v5, %v1698_v63 }
 0x185   : > { %v1461_v23 = vpop.f32.mrf.mxu3  ;;  %v1531_v25 = vpop.f32.mrf.mxu0  ;;  %v2290_v52 = vpack.c.bf16 %v2268_v39, %v2267_v42 }
 0x186   : > { %v1532_v26 = vadd.f32 %v1531_v25, %v1459_v22  ;;  %v1604_v27 = vpop.f32.mrf.mxu1  ;;  %v1462_v32 = vadd.f32 %v1461_v23, %v1389_v1 }
 0x188   : > { %v1605_v28 = vadd.f32 %v1604_v27, %v1532_v26 }
 0x18a   : > { %v1649_v11 = vmax.f32 %v1605_v28, 0.0 }
 0x18b   : > { %v1390_v30 = vpop.f32.mrf.mxu2  ;;  %v2064_v36 = vld [vmem:[#allocation2 + $0x5c] sm:$0xff] }
 0x18c   : > { %1675 = vst.msk [vmem:[#allocation2 + $0x68] sm:$0xff] %vm1661_vm0, %v1649_v11  ;;  %v1391_v54 = vadd.f32 %v1390_v30, %v7326_v0  ;;  %v2272_v44 = vld [vmem:[#allocation2 + $0x5e] sm:$0xff] }
 0x18d   : > { %v1463_v34 = vpop.f32.mrf.mxu3  ;;  %v1534_v43 = vpop.f32.mrf.mxu0 }
 0x18e   : > { %v1535_v45 = vadd.f32 %v1534_v43, %v1462_v32  ;;  %v1607_v46 = vpop.f32.mrf.mxu1  ;;  %v1464_v56 = vadd.f32 %v1463_v34, %v1391_v54  ;;  %v1747_v34 = vld [vmem:[#allocation2 + $0x5a] sm:$0xff] }
 0x190   : > { %v1608_v55 = vadd.f32 %v1607_v46, %v1535_v45  ;;  %5374 = vmatmul.msk.bf16.gmra.mxu2 %vm1661_vm0, %v1764_v14  ;;  %5439 = vmatmul.msk.bf16.gmra.mxu0 %vm1661_vm0, %v2082_v49  ;;  %v1746_v46 = vld [vmem:[#allocation2 + $0x52] sm:$0xff] }
 0x191   : > { %5476 = vmatmul.msk.bf16.gmra.mxu1 %vm1661_vm0, %v2290_v52  ;;  %v2063_v14 = vld [vmem:[#allocation2 + $0x54] sm:$0xff]  ;;  %v1766_v42 = vpack.c.bf16 %v1747_v34, %v1746_v46 }
 0x192   : > { %5403 = vmatmul.msk.bf16.gmra.mxu3 %vm1661_vm0, %v1718_v50  ;;  %v1650_v3 = vmax.f32 %v1608_v55, 0.0  ;;  %v1700_v50 = vld [vmem:[#allocation2 + $0x50] sm:$0xff]  ;;  %v2084_v52 = vpack.c.bf16 %v2064_v36, %v2063_v14 }
 0x193   : > { %v1393_v24 = vpop.f32.mrf.mxu2  ;;  %v1720_v54 = vpack.c.bf16 %v1701_v15, %v1700_v50  ;;  %v1748_v13 = vld [vmem:[#allocation2 + $0x62] sm:$0xff] }
 0x194   : > { %1676 = vst.msk [vmem:[#allocation2 + $0x70] sm:$0xff] %vm1661_vm0, %v1650_v3  ;;  %v1394_v0 = vadd.f32 %v1393_v24, %v7332_v8  ;;  %v2269_v8 = vld [vmem:[#allocation2 + $0x46] sm:$0xff] }
 0x195   : > { %v1466_v57 = vpop.f32.mrf.mxu3  ;;  %v1536_v58 = vpop.f32.mrf.mxu0  ;;  %v2291_v51 = vpack.c.bf16 %v2270_v6, %v2269_v8  ;;  %v1703_v6 = vld [vmem:[#allocation2 + $0x68] sm:$0xff] }
 0x196   : > { %v1537_v59 = vadd.f32 %v1536_v58, %v1464_v56  ;;  %v1609_v61 = vpop.f32.mrf.mxu1  ;;  %v1467_v40 = vadd.f32 %v1466_v57, %v1394_v0 }
 0x198   : > { %v1610_v62 = vadd.f32 %v1609_v61, %v1537_v59 }
 0x19a   : > { %v1651_v2 = vmax.f32 %v1610_v62, 0.0 }
 0x19b   : > { %v1395_v19 = vpop.f32.mrf.mxu2  ;;  %v1749_v37 = vld [vmem:[#allocation2 + $0x6a] sm:$0xff] }
 0x19c   : > { %1677 = vst.msk [vmem:[#allocation2 + $0x78] sm:$0xff] %vm1661_vm0, %v1651_v2  ;;  %v1396_v22 = vadd.f32 %v1395_v19, %v7362_v29  ;;  %v1767_v63 = vpack.c.bf16 %v1749_v37, %v1748_v13 }
 0x19d   : > { %v1468_v41 = vpop.f32.mrf.mxu3  ;;  %v1539_v7 = vpop.f32.mrf.mxu0 }
 0x19e   : > { %v1540_v53 = vadd.f32 %v1539_v7, %v1467_v40  ;;  %v1612_v16 = vpop.f32.mrf.mxu1  ;;  %v1469_v27 = vadd.f32 %v1468_v41, %v1396_v22  ;;  %v2066_v40 = vld [vmem:[#allocation2 + $0x6c] sm:$0xff] }
 0x19f   : > { %v2274_v7 = vld [vmem:[#allocation2 + $0x6e] sm:$0xff] }
 0x1a0   : > { %v1613_v23 = vadd.f32 %v1612_v16, %v1540_v53  ;;  %5375 = vmatmul.msk.bf16.gmra.mxu2 %vm1661_vm0, %v1765_v17  ;;  %5440 = vmatmul.msk.bf16.gmra.mxu0 %vm1661_vm0, %v2083_v18  ;;  %v2065_v53 = vld [vmem:[#allocation2 + $0x64] sm:$0xff] }
 0x1a1   : > { %5477 = vmatmul.msk.bf16.gmra.mxu1 %vm1661_vm0, %v2291_v51  ;;  %v1702_v18 = vld [vmem:[#allocation2 + $0x60] sm:$0xff]  ;;  %v2085_v8 = vpack.c.bf16 %v2066_v40, %v2065_v53 }
 0x1a2   : > { %5404 = vmatmul.msk.bf16.gmra.mxu3 %vm1661_vm0, %v1719_v20  ;;  %v1652_v25 = vmax.f32 %v1613_v23, 0.0  ;;  %v1721_v20 = vpack.c.bf16 %v1703_v6, %v1702_v18 }
 0x1a3   : > { %v1398_v26 = vpop.f32.mrf.mxu2  ;;  %v1705_v15 = vld [vmem:[#allocation2 + $0x78] sm:$0xff] }
 0x1a4   : > { %1678 = vst.msk [vmem:[#allocation2 + $0x80] sm:$0xff] %vm1661_vm0, %v1652_v25  ;;  %v1399_v29 = vadd.f32 %v1398_v26, %v7368_v38  ;;  %v2271_v38 = vld [vmem:[#allocation2 + $0x56] sm:$0xff] }
 0x1a5   : > { %v1471_v1 = vpop.f32.mrf.mxu3  ;;  %v1541_v28 = vpop.f32.mrf.mxu0  ;;  %v2292_v55 = vpack.c.bf16 %v2272_v44, %v2271_v38  ;;  %v1750_v46 = vld [vmem:[#allocation2 + $0x72] sm:$0xff] }
 0x1a6   : > { %v1542_v11 = vadd.f32 %v1541_v28, %v1469_v27  ;;  %v1614_v30 = vpop.f32.mrf.mxu1  ;;  %v1472_v39 = vadd.f32 %v1471_v1, %v1399_v29  ;;  %v6834_v29 = vmov 0.0  }
 0x1a7   : > { %1687 = vst.msk [vmem:[#allocation2 + $0xc8] sm:$0xff] %vm1661_vm0, %v6834_v29 }
 0x1a8   : > { %v1615_v31 = vadd.f32 %v1614_v30, %v1542_v11  ;;  %2953 = vst [vmem:[#allocation3 + $0x32] sm:$0x3] %v6834_v29 }
 0x1a9   : > { %2954 = vst [vmem:[#allocation4] sm:$0xf] %v6834_v29 }
 0x1aa   : > { %v1653_v33 = vmax.f32 %v1615_v31, 0.0  ;;  %1688 = vst.msk [vmem:[#allocation2 + $0xd0] sm:$0xff] %vm1661_vm0, %v6834_v29 }
 0x1ab   : > { %v1400_v32 = vpop.f32.mrf.mxu2  ;;  %v1751_v34 = vld [vmem:[#allocation2 + $0x7a] sm:$0xff]  ;;  %1689 = vst.msk [vmem:[#allocation2 + $0xd8] sm:$0xff] %vm1661_vm0, %v6834_v29 }
 0x1ac   : > { %1679 = vst.msk [vmem:[#allocation2 + $0x88] sm:$0xff] %vm1661_vm0, %v1653_v33  ;;  %v1401_v3 = vadd.f32 %v1400_v32, %v7398_v60  ;;  %v2068_v36 = vld [vmem:[#allocation2 + $0x7c] sm:$0xff] }
 0x1ad   : > { %v1473_v43 = vpop.f32.mrf.mxu3  ;;  %v1544_v45 = vpop.f32.mrf.mxu0  ;;  %v2276_v44 = vld [vmem:[#allocation2 + $0x7e] sm:$0xff] }
 0x1ae   : > { %v1545_v47 = vadd.f32 %v1544_v45, %v1472_v39  ;;  %v1617_v49 = vpop.f32.mrf.mxu1  ;;  %v1474_v58 = vadd.f32 %v1473_v43, %v1401_v3 }
 0x1b0   : > { %v1618_v24 = vadd.f32 %v1617_v49, %v1545_v47  ;;  %5376 = vmatmul.msk.bf16.gmra.mxu2 %vm1661_vm0, %v1766_v42  ;;  %5441 = vmatmul.msk.bf16.gmra.mxu0 %vm1661_vm0, %v2084_v52  ;;  %v1768_v49 = vpack.c.bf16 %v1751_v34, %v1750_v46  ;;  %v1704_v42 = vld [vmem:[#allocation2 + $0x70] sm:$0xff] }
 0x1b1   : > { %5478 = vmatmul.msk.bf16.gmra.mxu1 %vm1661_vm0, %v2292_v55  ;;  %v2275_v52 = vld [vmem:[#allocation2 + $0x76] sm:$0xff]  ;;  %v1722_v38 = vpack.c.bf16 %v1705_v15, %v1704_v42 }
 0x1b2   : > { %5405 = vmatmul.msk.bf16.gmra.mxu3 %vm1661_vm0, %v1720_v54  ;;  %v1654_v56 = vmax.f32 %v1618_v24, 0.0  ;;  %v2294_v54 = vpack.c.bf16 %v2276_v44, %v2275_v52 }
 0x1b3   : > { %v1403_v57 = vpop.f32.mrf.mxu2 }
 0x1b4   : > { %1680 = vst.msk [vmem:[#allocation2 + $0x90] sm:$0xff] %vm1661_vm0, %v1654_v56  ;;  %v1404_v60 = vadd.f32 %v1403_v57, %v7410_v9  ;;  %v2273_v9 = vld [vmem:[#allocation2 + $0x66] sm:$0xff] }
 0x1b5   : > { %v1476_v59 = vpop.f32.mrf.mxu3  ;;  %v1546_v61 = vpop.f32.mrf.mxu0  ;;  %v2293_v51 = vpack.c.bf16 %v2274_v7, %v2273_v9  ;;  %v1752_v7 = vld [vmem:[#allocation2 + $0x82] sm:$0xff] }
 0x1b6   : > { %v1547_v0 = vadd.f32 %v1546_v61, %v1474_v58  ;;  %v1619_v62 = vpop.f32.mrf.mxu1  ;;  %v1477_v41 = vadd.f32 %v1476_v59, %v1404_v60 }
 0x1b8   : > { %v1620_v2 = vadd.f32 %v1619_v62, %v1547_v0 }
 0x1ba   : > { %v1655_v19 = vmax.f32 %v1620_v2, 0.0 }
 0x1bb   : > { %v1405_v4 = vpop.f32.mrf.mxu2 }
 0x1bc   : > { %1681 = vst.msk [vmem:[#allocation2 + $0x98] sm:$0xff] %vm1661_vm0, %v1655_v19  ;;  %v1406_v22 = vadd.f32 %v1405_v4, %v7446_v35  ;;  %v1753_v19 = vld [vmem:[#allocation2 + $0x8a] sm:$0xff] }
 0x1bd   : > { %v1478_v5 = vpop.f32.mrf.mxu3  ;;  %v1549_v12 = vpop.f32.mrf.mxu0  ;;  %v2070_v4 = vld [vmem:[#allocation2 + $0x8c] sm:$0xff] }
 0x1be   : > { %v1550_v16 = vadd.f32 %v1549_v12, %v1477_v41  ;;  %v1622_v17 = vpop.f32.mrf.mxu1  ;;  %v1479_v27 = vadd.f32 %v1478_v5, %v1406_v22  ;;  %v1707_v41 = vld [vmem:[#allocation2 + $0x88] sm:$0xff] }
 0x1bf   : > { %v2278_v5 = vld [vmem:[#allocation2 + $0x8e] sm:$0xff]  ;;  %v2069_v12 = vld [vmem:[#allocation2 + $0x84] sm:$0xff] }
 0x1c0   : > { %v1623_v23 = vadd.f32 %v1622_v17, %v1550_v16  ;;  %5377 = vmatmul.msk.bf16.gmra.mxu2 %vm1661_vm0, %v1767_v63  ;;  %5442 = vmatmul.msk.bf16.gmra.mxu0 %vm1661_vm0, %v2085_v8  ;;  %v1769_v16 = vpack.c.bf16 %v1753_v19, %v1752_v7  ;;  %v1706_v17 = vld [vmem:[#allocation2 + $0x80] sm:$0xff]  ;;  %v2087_v63 = vpack.c.bf16 %v2070_v4, %v2069_v12 }
 0x1c1   : > { %5479 = vmatmul.msk.bf16.gmra.mxu1 %vm1661_vm0, %v2293_v51  ;;  %v1723_v18 = vpack.c.bf16 %v1707_v41, %v1706_v17 }
 0x1c2   : > { %5406 = vmatmul.msk.bf16.gmra.mxu3 %vm1661_vm0, %v1721_v20  ;;  %v1656_v25 = vmax.f32 %v1623_v23, 0.0 }
 0x1c3   : > { %v1408_v26 = vpop.f32.mrf.mxu2  ;;  %v2279_v44 = vld [vmem:[#allocation2 + $0x96] sm:$0xff] }
 0x1c4   : > { %1682 = vst.msk [vmem:[#allocation2 + $0xa0] sm:$0xff] %vm1661_vm0, %v1656_v25  ;;  %v1409_v35 = vadd.f32 %v1408_v26, %v7452_v48  ;;  %v2067_v48 = vld [vmem:[#allocation2 + $0x74] sm:$0xff] }
 0x1c5   : > { %v1481_v1 = vpop.f32.mrf.mxu3  ;;  %v1551_v28 = vpop.f32.mrf.mxu0  ;;  %v2086_v50 = vpack.c.bf16 %v2068_v36, %v2067_v48  ;;  %v7715_v36 = vld [vmem:[%s8609_s4] ss:$0 sm:$0xff] }
 0x1c6   : > { %v1552_v11 = vadd.f32 %v1551_v28, %v1479_v27  ;;  %v1624_v30 = vpop.f32.mrf.mxu1  ;;  %v1482_v39 = vadd.f32 %v1481_v1, %v1409_v35 }
 0x1c8   : > { %v1625_v31 = vadd.f32 %v1624_v30, %v1552_v11  ;;  %v1709_v30 = vld [vmem:[#allocation2 + $0x98] sm:$0xff] }
 0x1ca   : > { %v1657_v33 = vmax.f32 %v1625_v31, 0.0  ;;  %v1754_v31 = vld [vmem:[#allocation2 + $0x92] sm:$0xff] }
 0x1cb   : > { %v1410_v32 = vpop.f32.mrf.mxu2  ;;  %v1755_v27 = vld [vmem:[#allocation2 + $0x9a] sm:$0xff] }
 0x1cc   : > { %1683 = vst.msk [vmem:[#allocation2 + $0xa8] sm:$0xff] %vm1661_vm0, %v1657_v33  ;;  %v1411_v55 = vadd.f32 %v1410_v32, %v7482_v10  ;;  %v2072_v1 = vld [vmem:[#allocation2 + $0x9c] sm:$0xff]  ;;  %v2071_v33 = vld [vmem:[#allocation2 + $0x94] sm:$0xff] }
 0x1cd   : > { %v1483_v43 = vpop.f32.mrf.mxu3  ;;  %v1554_v45 = vpop.f32.mrf.mxu0  ;;  %v2280_v29 = vld [vmem:[#allocation2 + $0x9e] sm:$0xff]  ;;  %v2088_v15 = vpack.c.bf16 %v2072_v1, %v2071_v33 }
 0x1ce   : > { %v1555_v14 = vadd.f32 %v1554_v45, %v1482_v39  ;;  %v1627_v47 = vpop.f32.mrf.mxu1  ;;  %v1484_v57 = vadd.f32 %v1483_v43, %v1411_v55  ;;  %v1770_v39 = vpack.c.bf16 %v1755_v27, %v1754_v31  ;;  %v1708_v43 = vld [vmem:[#allocation2 + $0x90] sm:$0xff]  ;;  %v2296_v46 = vpack.c.bf16 %v2280_v29, %v2279_v44 }
 0x1cf   : > { %v1724_v45 = vpack.c.bf16 %v1709_v30, %v1708_v43 }
 0x1d0   : > { %v1628_v3 = vadd.f32 %v1627_v47, %v1555_v14  ;;  %5378 = vmatmul.msk.bf16.gmra.mxu2 %vm1661_vm0, %v1768_v49  ;;  %5443 = vmatmul.msk.bf16.gmra.mxu0 %vm1661_vm0, %v2086_v50 }
 0x1d1   : > { %5480 = vmatmul.msk.bf16.gmra.mxu1 %vm1661_vm0, %v2294_v54 }
 0x1d2   : > { %5407 = vmatmul.msk.bf16.gmra.mxu3 %vm1661_vm0, %v1722_v38  ;;  %v1658_v24 = vmax.f32 %v1628_v3, 0.0 }
 0x1d3   : > { %v1413_v56 = vpop.f32.mrf.mxu2  ;;  %v2281_v7 = vld [vmem:[#allocation2 + $0xa6] sm:$0xff] }
 0x1d4   : > { %1684 = vst.msk [vmem:[#allocation2 + $0xb0] sm:$0xff] %vm1661_vm0, %v1658_v24  ;;  %v1414_v10 = vadd.f32 %v1413_v56, %v7488_v21  ;;  %v2277_v21 = vld [vmem:[#allocation2 + $0x86] sm:$0xff] }
 0x1d5   : > { %v1486_v58 = vpop.f32.mrf.mxu3  ;;  %v1556_v59 = vpop.f32.mrf.mxu0  ;;  %v2295_v8 = vpack.c.bf16 %v2278_v5, %v2277_v21  ;;  %v1710_v5 = vld [vmem:[#allocation2 + $0xa0] sm:$0xff] }
 0x1d6   : > { %v1557_v61 = vadd.f32 %v1556_v59, %v1484_v57  ;;  %v1629_v0 = vpop.f32.mrf.mxu1  ;;  %v1487_v37 = vadd.f32 %v1486_v58, %v1414_v10 }
 0x1d8   : > { %v1630_v62 = vadd.f32 %v1629_v0, %v1557_v61 }
 0x1da   : > { %v1659_v60 = vmax.f32 %v1630_v62, 0.0  ;;  %v1756_v62 = vld [vmem:[#allocation2 + $0xa2] sm:$0xff] }
 0x1db   : > { %v1415_v2 = vpop.f32.mrf.mxu2  ;;  %v1757_v57 = vld [vmem:[#allocation2 + $0xaa] sm:$0xff] }
 0x1dc   : > { %1685 = vst.msk [vmem:[#allocation2 + $0xb8] sm:$0xff] %vm1661_vm0, %v1659_v60  ;;  %v2074_v59 = vld [vmem:[#allocation2 + $0xac] sm:$0xff]  ;;  %v1771_v4 = vpack.c.bf16 %v1757_v57, %v1756_v62 }
 0x1dd   : > { %v1488_v40 = vpop.f32.mrf.mxu3  ;;  %v1559_v6 = vpop.f32.mrf.mxu0  ;;  %v1711_v60 = vld [vmem:[#allocation2 + $0xa8] sm:$0xff] }
 0x1de   : > { %v1560_v13 = vadd.f32 %v1559_v6, %v1487_v37  ;;  %v1632_v53 = vpop.f32.mrf.mxu1  ;;  %v2282_v2 = vld [vmem:[#allocation2 + $0xae] sm:$0xff]  ;;  %v2073_v37 = vld [vmem:[#allocation2 + $0xa4] sm:$0xff] }
 0x1df   : > { %v2089_v6 = vpack.c.bf16 %v2074_v59, %v2073_v37 }
 0x1e0   : > { %v1633_v9 = vadd.f32 %v1632_v53, %v1560_v13  ;;  %5379 = vmatmul.msk.bf16.gmra.mxu2 %vm1661_vm0, %v1769_v16  ;;  %5444 = vmatmul.msk.bf16.gmra.mxu0 %vm1661_vm0, %v2087_v63  ;;  %v1725_v53 = vpack.c.bf16 %v1711_v60, %v1710_v5  ;;  %v2297_v16 = vpack.c.bf16 %v2282_v2, %v2281_v7  ;;  %v2078_v5 = vld [vmem:[#allocation2 + $0xcc] sm:$0xff] }
 0x1e1   : > { %5481 = vmatmul.msk.bf16.gmra.mxu1 %vm1661_vm0, %v2295_v8 }
 0x1e2   : > { %5408 = vmatmul.msk.bf16.gmra.mxu3 %vm1661_vm0, %v1723_v18  ;;  %v1660_v20 = vmax.f32 %v1633_v9, 0.0 }
 0x1e3   : > { %v1855_v51 = vpop.f32.mrf.mxu2  ;;  %v1758_v43 = vld [vmem:[#allocation2 + $0xb2] sm:$0xff] }
 0x1e4   : > { %1686 = vst.msk [vmem:[#allocation2 + $0xc0] sm:$0xff] %vm1661_vm0, %v1660_v20 }
 0x1e5   : > { %v1991_v22 = vpop.f32.mrf.mxu3  ;;  %v1561_v23 = vpop.f32.mrf.mxu0 }
 0x1e6   : > { %v1634_v25 = vpop.f32.mrf.mxu1  ;;  %v1992_v28 = vadd.f32 %v1991_v22, %v1855_v51 }
 0x1eb   : > { %v1857_v26 = vpop.f32.mrf.mxu2  ;;  %v1759_v30 = vld [vmem:[#allocation2 + $0xba] sm:$0xff] }
 0x1ec   : > { %v2076_v29 = vld [vmem:[#allocation2 + $0xbc] sm:$0xff] }
 0x1ed   : > { %v1993_v11 = vpop.f32.mrf.mxu3  ;;  %v2174_v35 = vpop.f32.mrf.mxu0 }
 0x1ee   : > { %v2238_v32 = vadd.f32 %v2174_v35, %v1992_v28  ;;  %v2382_v34 = vpop.f32.mrf.mxu1  ;;  %v1994_v49 = vadd.f32 %v1993_v11, %v1857_v26 }
 0x1f0   : > { %v2446_v48 = vadd.f32 %v2382_v34, %v2238_v32  ;;  %5380 = vmatmul.msk.bf16.gmra.mxu2 %vm1661_vm0, %v1770_v39  ;;  %5445 = vmatmul.msk.bf16.gmra.mxu0 %vm1661_vm0, %v2088_v15  ;;  %v1713_v32 = vld [vmem:[#allocation2 + $0xb8] sm:$0xff] }
 0x1f1   : > { %5482 = vmatmul.msk.bf16.gmra.mxu1 %vm1661_vm0, %v2296_v46  ;;  %v2284_v34 = vld [vmem:[#allocation2 + $0xbe] sm:$0xff]  ;;  %v2075_v15 = vld [vmem:[#allocation2 + $0xb4] sm:$0xff]  ;;  %v1772_v46 = vpack.c.bf16 %v1759_v30, %v1758_v43 }
 0x1f2   : > { %5409 = vmatmul.msk.bf16.gmra.mxu3 %vm1661_vm0, %v1724_v45  ;;  %v2475_v14 = vadd.f32 %v7715_v36, %v2446_v48  ;;  %v1712_v48 = vld [vmem:[#allocation2 + $0xb0] sm:$0xff] }
 0x1f3   : > { %v1860_v47 = vpop.f32.mrf.mxu2 }
 0x1f4   : > { %v7722_v42 = vmax.f32 %v2475_v14, 0.0  ;;  %v2090_v14 = vpack.c.bf16 %v2076_v29, %v2075_v15  ;;  %v2079_v15 = vld [vmem:[#allocation2 + $0xd4] sm:$0xff] }
 0x1f5   : > { %v1996_v50 = vpop.f32.mrf.mxu3  ;;  %v2176_v52 = vpop.f32.mrf.mxu0 }
 0x1f6   : > { %v2239_v38 = vadd.f32 %v2176_v52, %v1994_v49  ;;  %v2384_v54 = vpop.f32.mrf.mxu1  ;;  %v2534_v55 = vrot.slane %v7722_v42, 6  ;;  %v2526_v3 = vrot.slane %v7722_v42, 2  ;;  %v1997_v61 = vadd.f32 %v1996_v50, %v1860_v47  ;;  %v2283_v47 = vld [vmem:[#allocation2 + $0xb6] sm:$0xff] }
 0x1f7   : > { %v2530_v63 = vrot.slane %v7722_v42, 4  ;;  %v1726_v50 = vpack.c.bf16 %v1713_v32, %v1712_v48  ;;  %v2298_v52 = vpack.c.bf16 %v2284_v34, %v2283_v47 }
 0x1f8   : > { %v2447_v24 = vadd.f32 %v2384_v54, %v2239_v38  ;;  %2535 = vrot.lane.b32.xlu1 %v2534_v55, %s6835_s21  ;;  %2527 = vrot.lane.b32.xlu0 %v2526_v3, %s6836_s22 }
 0x1fa   : > { %v2476_v56 = vadd.f32 %v7715_v36, %v2447_v24 }
 0x1fb   : > { %v1862_v58 = vpop.f32.mrf.mxu2 }
 0x1fc   : > { %v7729_v0 = vmax.f32 %v2476_v56, 0.0 }
 0x1fd   : > { %v1998_v10 = vpop.f32.mrf.mxu3  ;;  %v2179_v19 = vpop.f32.mrf.mxu0 }
 0x1fe   : > { %v2240_v40 = vadd.f32 %v2179_v19, %v1997_v61  ;;  %v2387_v41 = vpop.f32.mrf.mxu1  ;;  %v2549_v12 = vrot.slane %v7729_v0, 4  ;;  %v2545_v13 = vrot.slane %v7729_v0, 2  ;;  %v1999_v8 = vadd.f32 %v1998_v10, %v1862_v58 }
 0x1ff   : > { %v2553_v1 = vrot.slane %v7729_v0, 6 }
 0x200   : > { %v2448_v17 = vadd.f32 %v2387_v41, %v2240_v40  ;;  %5381 = vmatmul.msk.bf16.gmra.mxu2 %vm1661_vm0, %v1771_v4  ;;  %5446 = vmatmul.msk.bf16.gmra.mxu0 %vm1661_vm0, %v2089_v6  ;;  %v1760_v40 = vld [vmem:[#allocation2 + $0xc2] sm:$0xff] }
 0x201   : > { %5483 = vmatmul.msk.bf16.gmra.mxu1 %vm1661_vm0, %v2297_v16  ;;  %2550 = vrot.lane.b32.xlu2 %v2549_v12, %s6837_s23  ;;  %v2077_v41 = vld [vmem:[#allocation2 + $0xc4] sm:$0xff]  ;;  %v2286_v16 = vld [vmem:[#allocation2 + $0xce] sm:$0xff] }
 0x202   : > { %5410 = vmatmul.msk.bf16.gmra.mxu3 %vm1661_vm0, %v1725_v53  ;;  %v2477_v21 = vadd.f32 %v7715_v36, %v2448_v17  ;;  %2546 = vrot.lane.b32.xlu1 %v2545_v13, %s6836_s22  ;;  %v1714_v13 = vld [vmem:[#allocation2 + $0xc0] sm:$0xff] }
 0x203   : > { %2531 = vrot.lane.b32.xlu0 %v2530_v63, %s6837_s23  ;;  %v1865_v18 = vpop.f32.mrf.mxu2  ;;  %v2285_v53 = vld [vmem:[#allocation2 + $0xc6] sm:$0xff] }
 0x204   : > { %v7742_v9 = vmax.f32 %v2477_v21, 0.0 }
 0x205   : > { %v2001_v20 = vpop.f32.mrf.mxu3  ;;  %v2181_v51 = vpop.f32.mrf.mxu0 }
 0x206   : > { %v2241_v22 = vadd.f32 %v2181_v51, %v1999_v8  ;;  %v2389_v23 = vpop.f32.mrf.mxu1  ;;  %v2566_v25 = vrot.slane %v7742_v9, 4  ;;  %v2562_v26 = vrot.slane %v7742_v9, 2  ;;  %v2002_v35 = vadd.f32 %v2001_v20, %v1865_v18 }
 0x207   : > { %v2570_v55 = vrot.slane %v7742_v9, 6  ;;  %v1773_v18 = vpack.c.bf16 %v1760_v40, %v1760_v40  ;;  %v2091_v8 = vpack.c.bf16 %v2078_v5, %v2077_v41  ;;  %v1727_v51 = vpack.c.bf16 %v1714_v13, %v1714_v13 }
 0x208   : > { %v2449_v27 = vadd.f32 %v2389_v23, %v2241_v22  ;;  %v2299_v22 = vpack.c.bf16 %v2286_v16, %v2285_v53 }
 0x209   : > { %2554 = vrot.lane.b32.xlu2 %v2553_v1, %s6835_s21 }
 0x20a   : > { %v2478_v28 = vadd.f32 %v7715_v36, %v2449_v27  ;;  %2567 = vrot.lane.b32.xlu1 %v2566_v25, %s6837_s23 }
 0x20b   : > { %2563 = vrot.lane.b32.xlu0 %v2562_v26, %s6836_s22  ;;  %v1867_v11 = vpop.f32.mrf.mxu2 }
 0x20c   : > { %v7751_v31 = vmax.f32 %v2478_v28, 0.0 }
 0x20d   : > { %v2003_v33 = vpop.f32.mrf.mxu3  ;;  %v2184_v39 = vpop.f32.mrf.mxu0 }
 0x20e   : > { %v2242_v44 = vadd.f32 %v2184_v39, %v2002_v35  ;;  %v2392_v45 = vpop.f32.mrf.mxu1  ;;  %v2583_v49 = vrot.slane %v7751_v31, 4  ;;  %v2579_v38 = vrot.slane %v7751_v31, 2  ;;  %v2004_v56 = vadd.f32 %v2003_v33, %v1867_v11 }
 0x20f   : > { %v2587_v19 = vrot.slane %v7751_v31, 6 }
 0x210   : > { %v2450_v54 = vadd.f32 %v2392_v45, %v2242_v44  ;;  %5382 = vmatmul.msk.bf16.gmra.mxu2 %vm1661_vm0, %v1772_v46  ;;  %5447 = vmatmul.msk.bf16.gmra.mxu0 %vm1661_vm0, %v2090_v14  ;;  %v2287_v45 = vld [vmem:[#allocation2 + $0xd6] sm:$0xff] }
 0x211   : > { %5484 = vmatmul.msk.bf16.gmra.mxu1 %vm1661_vm0, %v2298_v52  ;;  %2571 = vrot.lane.b32.xlu2 %v2570_v55, %s6835_s21  ;;  %v2300_v52 = vpack.c.bf16 %v2287_v45, %v2287_v45 }
 0x212   : > { %5411 = vmatmul.msk.bf16.gmra.mxu3 %vm1661_vm0, %v1726_v50  ;;  %v2479_v3 = vadd.f32 %v7715_v36, %v2450_v54  ;;  %2584 = vrot.lane.b32.xlu1 %v2583_v49, %s6837_s23  ;;  %v2092_v49 = vpack.c.bf16 %v2079_v15, %v2079_v15 }
 0x213   : > { %2580 = vrot.lane.b32.xlu0 %v2579_v38, %s6836_s22  ;;  %v1870_v24 = vpop.f32.mrf.mxu2 }
 0x214   : > { %v7764_v57 = vmax.f32 %v2479_v3, 0.0 }
 0x215   : > { %v2006_v58 = vpop.f32.mrf.mxu3  ;;  %v2186_v59 = vpop.f32.mrf.mxu0 }
 0x216   : > { %v2243_v61 = vadd.f32 %v2186_v59, %v2004_v56  ;;  %v2394_v10 = vpop.f32.mrf.mxu1  ;;  %v2600_v62 = vrot.slane %v7764_v57, 4  ;;  %v2596_v60 = vrot.slane %v7764_v57, 2  ;;  %v2007_v6 = vadd.f32 %v2006_v58, %v1870_v24 }
 0x217   : > { %v2604_v26 = vrot.slane %v7764_v57, 6 }
 0x218   : > { %v2451_v2 = vadd.f32 %v2394_v10, %v2243_v61 }
 0x219   : > { %2588 = vrot.lane.b32.xlu2 %v2587_v19, %s6835_s21 }
 0x21a   : > { %v2480_v4 = vadd.f32 %v7715_v36, %v2451_v2  ;;  %2601 = vrot.lane.b32.xlu1 %v2600_v62, %s6837_s23 }
 0x21b   : > { %2597 = vrot.lane.b32.xlu0 %v2596_v60, %s6836_s22  ;;  %v1872_v37 = vpop.f32.mrf.mxu2 }
 0x21c   : > { %v7773_v7 = vmax.f32 %v2480_v4, 0.0 }
 0x21d   : > { %v2008_v12 = vpop.f32.mrf.mxu3  ;;  %v2189_v17 = vpop.f32.mrf.mxu0 }
 0x21e   : > { %v2244_v63 = vadd.f32 %v2189_v17, %v2007_v6  ;;  %v2397_v21 = vpop.f32.mrf.mxu1  ;;  %v2617_v20 = vrot.slane %v7773_v7, 4  ;;  %v2613_v23 = vrot.slane %v7773_v7, 2  ;;  %v2009_v28 = vadd.f32 %v2008_v12, %v1872_v37 }
 0x21f   : > { %v2621_v43 = vrot.slane %v7773_v7, 6 }
 0x220   : > { %v2452_v25 = vadd.f32 %v2397_v21, %v2244_v63  ;;  %5383 = vmatmul.msk.bf16.gmra.mxu2 %vm1661_vm0, %v1773_v18  ;;  %5448 = vmatmul.msk.bf16.gmra.mxu0 %vm1661_vm0, %v2091_v8 }
 0x221   : > { %5485 = vmatmul.msk.bf16.gmra.mxu1 %vm1661_vm0, %v2299_v22  ;;  %2605 = vrot.lane.b32.xlu2 %v2604_v26, %s6835_s21 }
 0x222   : > { %5412 = vmatmul.msk.bf16.gmra.mxu3 %vm1661_vm0, %v1727_v51  ;;  %v2481_v27 = vadd.f32 %v7715_v36, %v2452_v25  ;;  %2618 = vrot.lane.b32.xlu1 %v2617_v20, %s6837_s23 }
 0x223   : > { %2614 = vrot.lane.b32.xlu0 %v2613_v23, %s6836_s22  ;;  %v1875_v1 = vpop.f32.mrf.mxu2 }
 0x224   : > { %v7786_v11 = vmax.f32 %v2481_v27, 0.0 }
 0x225   : > { %v2011_v30 = vpop.f32.mrf.mxu3  ;;  %v2191_v29 = vpop.f32.mrf.mxu0 }
 0x226   : > { %v2245_v35 = vadd.f32 %v2191_v29, %v2009_v28  ;;  %v2399_v33 = vpop.f32.mrf.mxu1  ;;  %v2634_v32 = vrot.slane %v7786_v11, 4  ;;  %v2630_v34 = vrot.slane %v7786_v11, 2  ;;  %v2012_v48 = vadd.f32 %v2011_v30, %v1875_v1 }
 0x227   : > { %v2638_v56 = vrot.slane %v7786_v11, 6 }
 0x228   : > { %v2453_v39 = vadd.f32 %v2399_v33, %v2245_v35 }
 0x229   : > { %2622 = vrot.lane.b32.xlu2 %v2621_v43, %s6835_s21 }
 0x22a   : > { %v2482_v44 = vadd.f32 %v7715_v36, %v2453_v39  ;;  %2635 = vrot.lane.b32.xlu1 %v2634_v32, %s6837_s23 }
 0x22b   : > { %2631 = vrot.lane.b32.xlu0 %v2630_v34, %s6836_s22  ;;  %v1877_v46 = vpop.f32.mrf.mxu2 }
 0x22c   : > { %v7795_v14 = vmax.f32 %v2482_v44, 0.0 }
 0x22d   : > { %v2013_v47 = vpop.f32.mrf.mxu3  ;;  %v2194_v50 = vpop.f32.mrf.mxu0 }
 0x22e   : > { %v2246_v38 = vadd.f32 %v2194_v50, %v2012_v48  ;;  %v2402_v54 = vpop.f32.mrf.mxu1  ;;  %v2651_v55 = vrot.slane %v7795_v14, 4  ;;  %v2647_v3 = vrot.slane %v7795_v14, 2  ;;  %v2014_v61 = vadd.f32 %v2013_v47, %v1877_v46 }
 0x22f   : > { %v2655_v41 = vrot.slane %v7795_v14, 6 }
 0x230   : > { %v2454_v24 = vadd.f32 %v2402_v54, %v2246_v38  ;;  %5449 = vmatmul.msk.bf16.gmra.mxu0 %vm1661_vm0, %v2092_v49 }
 0x231   : > { %5486 = vmatmul.msk.bf16.gmra.mxu1 %vm1661_vm0, %v2300_v52  ;;  %2639 = vrot.lane.b32.xlu2 %v2638_v56, %s6835_s21 }
 0x232   : > { %v2483_v58 = vadd.f32 %v7715_v36, %v2454_v24  ;;  %2652 = vrot.lane.b32.xlu1 %v2651_v55, %s6837_s23 }
 0x233   : > { %2648 = vrot.lane.b32.xlu0 %v2647_v3, %s6836_s22  ;;  %v1880_v59 = vpop.f32.mrf.mxu2 }
 0x234   : > { %v7806_v10 = vmax.f32 %v2483_v58, 0.0 }
 0x235   : > { %v2016_v62 = vpop.f32.mrf.mxu3  ;;  %v2196_v60 = vpop.f32.mrf.mxu0 }
 0x236   : > { %v2247_v2 = vadd.f32 %v2196_v60, %v2014_v61  ;;  %v2404_v19 = vpop.f32.mrf.mxu1  ;;  %v2668_v4 = vrot.slane %v7806_v10, 4  ;;  %v2664_v37 = vrot.slane %v7806_v10, 2  ;;  %v2017_v12 = vadd.f32 %v2016_v62, %v1880_v59 }
 0x237   : > { %v2672_v20 = vrot.slane %v7806_v10, 6 }
 0x238   : > { %v2455_v40 = vadd.f32 %v2404_v19, %v2247_v2 }
 0x239   : > { %2656 = vrot.lane.b32.xlu2 %v2655_v41, %s6835_s21 }
 0x23a   : > { %v2484_v5 = vadd.f32 %v7715_v36, %v2455_v40  ;;  %2669 = vrot.lane.b32.xlu1 %v2668_v4, %s6837_s23 }
 0x23b   : > { %2665 = vrot.lane.b32.xlu0 %v2664_v37, %s6836_s22  ;;  %v1882_v6 = vpop.f32.mrf.mxu2 }
 0x23c   : > { %v7815_v13 = vmax.f32 %v2484_v5, 0.0 }
 0x23d   : > { %v2018_v53 = vpop.f32.mrf.mxu3  ;;  %v2199_v16 = vpop.f32.mrf.mxu0 }
 0x23e   : > { %v2248_v17 = vadd.f32 %v2199_v16, %v2017_v12  ;;  %v2407_v63 = vpop.f32.mrf.mxu1  ;;  %v2685_v21 = vrot.slane %v7815_v13, 4  ;;  %v2681_v18 = vrot.slane %v7815_v13, 2  ;;  %v2019_v23 = vadd.f32 %v2018_v53, %v1882_v6 }
 0x23f   : > { %v2689_v33 = vrot.slane %v7815_v13, 6 }
 0x240   : > { %v2456_v8 = vadd.f32 %v2407_v63, %v2248_v17 }
 0x241   : > { %2673 = vrot.lane.b32.xlu2 %v2672_v20, %s6835_s21 }
 0x242   : > { %v2485_v51 = vadd.f32 %v7715_v36, %v2456_v8  ;;  %2686 = vrot.lane.b32.xlu1 %v2685_v21, %s6837_s23 }
 0x243   : > { %2682 = vrot.lane.b32.xlu0 %v2681_v18, %s6836_s22  ;;  %v1885_v22 = vpop.f32.mrf.mxu2 }
 0x244   : > { %v7824_v25 = vmax.f32 %v2485_v51, 0.0 }
 0x245   : > { %v2021_v26 = vpop.f32.mrf.mxu3  ;;  %v2201_v27 = vpop.f32.mrf.mxu0 }
 0x246   : > { %v2249_v1 = vadd.f32 %v2201_v27, %v2019_v23  ;;  %v2409_v28 = vpop.f32.mrf.mxu1  ;;  %v2702_v30 = vrot.slane %v7824_v25, 4  ;;  %v2698_v29 = vrot.slane %v7824_v25, 2  ;;  %v2022_v39 = vadd.f32 %v2021_v26, %v1885_v22 }
 0x247   : > { %v2706_v50 = vrot.slane %v7824_v25, 6 }
 0x248   : > { %v2457_v35 = vadd.f32 %v2409_v28, %v2249_v1 }
 0x249   : > { %2690 = vrot.lane.b32.xlu2 %v2689_v33, %s6835_s21 }
 0x24a   : > { %v2486_v32 = vadd.f32 %v7715_v36, %v2457_v35  ;;  %2703 = vrot.lane.b32.xlu1 %v2702_v30, %s6837_s23 }
 0x24b   : > { %2699 = vrot.lane.b32.xlu0 %v2698_v29, %s6836_s22  ;;  %v1887_v34 = vpop.f32.mrf.mxu2 }
 0x24c   : > { %v7833_v43 = vmax.f32 %v2486_v32, 0.0 }
 0x24d   : > { %v2023_v15 = vpop.f32.mrf.mxu3  ;;  %v2204_v44 = vpop.f32.mrf.mxu0 }
 0x24e   : > { %v2250_v45 = vadd.f32 %v2204_v44, %v2022_v39  ;;  %v2412_v46 = vpop.f32.mrf.mxu1  ;;  %v2719_v48 = vrot.slane %v7833_v43, 4  ;;  %v2715_v47 = vrot.slane %v7833_v43, 2  ;;  %v2024_v54 = vadd.f32 %v2023_v15, %v1887_v34 }
 0x24f   : > { %v2723_v60 = vrot.slane %v7833_v43, 6 }
 0x250   : > { %v2458_v49 = vadd.f32 %v2412_v46, %v2250_v45 }
 0x251   : > { %2707 = vrot.lane.b32.xlu2 %v2706_v50, %s6835_s21 }
 0x252   : > { %v2487_v52 = vadd.f32 %v7715_v36, %v2458_v49  ;;  %2720 = vrot.lane.b32.xlu1 %v2719_v48, %s6837_s23 }
 0x253   : > { %2716 = vrot.lane.b32.xlu0 %v2715_v47, %s6836_s22  ;;  %v1890_v38 = vpop.f32.mrf.mxu2 }
 0x254   : > { %v7842_v55 = vmax.f32 %v2487_v52, 0.0 }
 0x255   : > { %v2026_v3 = vpop.f32.mrf.mxu3  ;;  %v2206_v24 = vpop.f32.mrf.mxu0 }
 0x256   : > { %v2251_v56 = vadd.f32 %v2206_v24, %v2024_v54  ;;  %v2414_v58 = vpop.f32.mrf.mxu1  ;;  %v2736_v59 = vrot.slane %v7842_v55, 4  ;;  %v2732_v61 = vrot.slane %v7842_v55, 2  ;;  %v2027_v4 = vadd.f32 %v2026_v3, %v1890_v38 }
 0x257   : > { %v2740_v63 = vrot.slane %v7842_v55, 6 }
 0x258   : > { %v2459_v62 = vadd.f32 %v2414_v58, %v2251_v56 }
 0x259   : > { %2724 = vrot.lane.b32.xlu2 %v2723_v60, %s6835_s21 }
 0x25a   : > { %v2488_v2 = vadd.f32 %v7715_v36, %v2459_v62  ;;  %2737 = vrot.lane.b32.xlu1 %v2736_v59, %s6837_s23 }
 0x25b   : > { %2733 = vrot.lane.b32.xlu0 %v2732_v61, %s6836_s22  ;;  %v1892_v19 = vpop.f32.mrf.mxu2  ;;  %v2551_v40 = vpop.permute.xlu2 %2550 }
 0x25c   : > { %v7851_v37 = vmax.f32 %v2488_v2, 0.0 }
 0x25d   : > { %v2028_v41 = vpop.f32.mrf.mxu3  ;;  %v2209_v5 = vpop.f32.mrf.mxu0 }
 0x25e   : > { %v2252_v6 = vadd.f32 %v2209_v5, %v2027_v4  ;;  %v2417_v12 = vpop.f32.mrf.mxu1  ;;  %v2753_v53 = vrot.slane %v7851_v37, 4  ;;  %v2749_v16 = vrot.slane %v7851_v37, 2  ;;  %v2029_v8 = vadd.f32 %v2028_v41, %v1892_v19 }
 0x25f   : > { %v2757_v29 = vrot.slane %v7851_v37, 6 }
 0x260   : > { %v2460_v17 = vadd.f32 %v2417_v12, %v2252_v6 }
 0x261   : > { %2741 = vrot.lane.b32.xlu2 %v2740_v63, %s6835_s21 }
 0x262   : > { %v2489_v21 = vadd.f32 %v7715_v36, %v2460_v17  ;;  %2754 = vrot.lane.b32.xlu1 %v2753_v53, %s6837_s23 }
 0x263   : > { %2750 = vrot.lane.b32.xlu0 %v2749_v16, %s6836_s22  ;;  %v1895_v18 = vpop.f32.mrf.mxu2  ;;  %v2555_v51 = vpop.permute.xlu2 %2554 }
 0x264   : > { %v7860_v20 = vmax.f32 %v2489_v21, 0.0 }
 0x265   : > { %v2031_v22 = vpop.f32.mrf.mxu3  ;;  %v2211_v23 = vpop.f32.mrf.mxu0 }
 0x266   : > { %v2253_v26 = vadd.f32 %v2211_v23, %v2029_v8  ;;  %v2419_v27 = vpop.f32.mrf.mxu1  ;;  %v2771_v1 = vrot.slane %v7860_v20, 4  ;;  %v2767_v28 = vrot.slane %v7860_v20, 2  ;;  %v2032_v39 = vadd.f32 %v2031_v22, %v1895_v18 }
 0x267   : > { %v2775_v38 = vrot.slane %v7860_v20, 6 }
 0x268   : > { %v2461_v30 = vadd.f32 %v2419_v27, %v2253_v26 }
 0x269   : > { %2758 = vrot.lane.b32.xlu2 %v2757_v29, %s6835_s21 }
 0x26a   : > { %v2490_v35 = vadd.f32 %v7715_v36, %v2461_v30  ;;  %2772 = vrot.lane.b32.xlu1 %v2771_v1, %s6837_s23  ;;  %v2536_v33 = vpop.permute.xlu1 %2535  ;;  %v2528_v32 = vpop.permute.xlu0 %2527 }
 0x26b   : > { %2768 = vrot.lane.b32.xlu0 %v2767_v28, %s6836_s22  ;;  %v1897_v34 = vpop.f32.mrf.mxu2  ;;  %v2572_v44 = vpop.permute.xlu2 %2571  ;;  %v2539_v59 = vsel %vm2538_vm1, %v7722_v42, %v2528_v32 }
 0x26c   : > { %v7869_v15 = vmax.f32 %v2490_v35, 0.0 }
 0x26d   : > { %v2033_v45 = vpop.f32.mrf.mxu3  ;;  %v2214_v46 = vpop.f32.mrf.mxu0 }
 0x26e   : > { %v2254_v48 = vadd.f32 %v2214_v46, %v2032_v39  ;;  %v2422_v47 = vpop.f32.mrf.mxu1  ;;  %v2788_v49 = vrot.slane %v7869_v15, 4  ;;  %v2784_v50 = vrot.slane %v7869_v15, 2  ;;  %v2034_v61 = vadd.f32 %v2033_v45, %v1897_v34 }
 0x270   : > { %v2462_v52 = vadd.f32 %v2422_v47, %v2254_v48 }
 0x271   : > { %2776 = vrot.lane.b32.xlu2 %v2775_v38, %s6835_s21 }
 0x272   : > { %v2491_v54 = vadd.f32 %v7715_v36, %v2462_v52  ;;  %2789 = vrot.lane.b32.xlu1 %v2788_v49, %s6837_s23 }
 0x273   : > { %2785 = vrot.lane.b32.xlu0 %v2784_v50, %s6836_s22  ;;  %v1900_v3 = vpop.f32.mrf.mxu2  ;;  %v2589_v56 = vpop.permute.xlu2 %2588 }
 0x274   : > { %v7878_v24 = vmax.f32 %v2491_v54, 0.0  ;;  %v2547_v58 = vpop.permute.xlu1 %2546 }
 0x275   : > { %v2557_v62 = vsel %vm2538_vm1, %v7729_v0, %v2547_v58  ;;  %v2532_v60 = vpop.permute.xlu0 %2531  ;;  %v2036_v2 = vpop.f32.mrf.mxu3  ;;  %v2792_v0 = vrot.slane %v7869_v15, 6 }
 0x276   : > { %v2558_v19 = vsel %vm1661_vm0, %v2557_v62, %v2551_v40  ;;  %v2540_v4 = vsel %vm1661_vm0, %v2539_v59, %v2532_v60  ;;  %v2216_v41 = vpop.f32.mrf.mxu0  ;;  %v2424_v5 = vpop.f32.mrf.mxu1  ;;  %v2805_v6 = vrot.slane %v7878_v24, 4  ;;  %v2801_v42 = vrot.slane %v7878_v24, 2 }
 0x277   : > { %v2559_v12 = vsel %vm2541_vm2, %v2558_v19, %v2555_v51  ;;  %v2542_v53 = vsel %vm2541_vm2, %v2540_v4, %v2536_v33  ;;  %v2255_v16 = vadd.f32 %v2216_v41, %v2034_v61  ;;  %v2037_v8 = vadd.f32 %v2036_v2, %v1900_v3 }
 0x278   : > { %2560 = vst [vmem:[#allocation3 + $0x2] sm:$0x3] %v2559_v12  ;;  %v2809_v32 = vrot.slane %v7878_v24, 6 }
 0x279   : > { %2543 = vst [vmem:[#allocation3] sm:$0x3] %v2542_v53  ;;  %v2463_v17 = vadd.f32 %v2424_v5, %v2255_v16  ;;  %2793 = vrot.lane.b32.xlu2 %v2792_v0, %s6835_s21 }
 0x27a   : > { %2806 = vrot.lane.b32.xlu1 %v2805_v6, %s6837_s23 }
 0x27b   : > { %v2492_v40 = vadd.f32 %v7715_v36, %v2463_v17  ;;  %2802 = vrot.lane.b32.xlu0 %v2801_v42, %s6836_s22  ;;  %v1902_v63 = vpop.f32.mrf.mxu2  ;;  %v2606_v21 = vpop.permute.xlu2 %2605 }
 0x27c   : > { %v2568_v18 = vpop.permute.xlu1 %2567 }
 0x27d   : > { %v7895_v51 = vmax.f32 %v2492_v40, 0.0  ;;  %v2564_v22 = vpop.permute.xlu0 %2563  ;;  %v2038_v23 = vpop.f32.mrf.mxu3 }
 0x27e   : > { %v2574_v26 = vsel %vm2538_vm1, %v7742_v9, %v2564_v22  ;;  %v2219_v27 = vpop.f32.mrf.mxu0  ;;  %v2427_v1 = vpop.f32.mrf.mxu1  ;;  %v2039_v48 = vadd.f32 %v2038_v23, %v1902_v63 }
 0x27f   : > { %v2575_v28 = vsel %vm1661_vm0, %v2574_v26, %v2568_v18  ;;  %v2256_v30 = vadd.f32 %v2219_v27, %v2037_v8  ;;  %v2822_v29 = vrot.slane %v7895_v51, 4  ;;  %v2818_v35 = vrot.slane %v7895_v51, 2 }
 0x280   : > { %v2576_v33 = vsel %vm2541_vm2, %v2575_v28, %v2572_v44  ;;  %v2826_v62 = vrot.slane %v7895_v51, 6 }
 0x281   : > { %2577 = vst [vmem:[#allocation3 + $0x4] sm:$0x3] %v2576_v33  ;;  %v2464_v34 = vadd.f32 %v2427_v1, %v2256_v30  ;;  %2810 = vrot.lane.b32.xlu2 %v2809_v32, %s6835_s21 }
 0x282   : > { %2823 = vrot.lane.b32.xlu1 %v2822_v29, %s6837_s23 }
 0x283   : > { %v2493_v9 = vadd.f32 %v7715_v36, %v2464_v34  ;;  %2819 = vrot.lane.b32.xlu0 %v2818_v35, %s6836_s22  ;;  %v1905_v39 = vpop.f32.mrf.mxu2  ;;  %v2623_v45 = vpop.permute.xlu2 %2622 }
 0x284   : > { %v2585_v46 = vpop.permute.xlu1 %2584 }
 0x285   : > { %v7908_v47 = vmax.f32 %v2493_v9, 0.0  ;;  %v2581_v49 = vpop.permute.xlu0 %2580  ;;  %v2041_v44 = vpop.f32.mrf.mxu3 }
 0x286   : > { %v2591_v50 = vsel %vm2538_vm1, %v7751_v31, %v2581_v49  ;;  %v2221_v52 = vpop.f32.mrf.mxu0  ;;  %v2429_v38 = vpop.f32.mrf.mxu1  ;;  %v2042_v41 = vadd.f32 %v2041_v44, %v1905_v39 }
 0x287   : > { %v2592_v54 = vsel %vm1661_vm0, %v2591_v50, %v2585_v46  ;;  %v2257_v3 = vadd.f32 %v2221_v52, %v2039_v48  ;;  %v2839_v58 = vrot.slane %v7908_v47, 4  ;;  %v2835_v59 = vrot.slane %v7908_v47, 2 }
 0x288   : > { %v2593_v61 = vsel %vm2541_vm2, %v2592_v54, %v2589_v56  ;;  %v2843_v18 = vrot.slane %v7908_v47, 6 }
 0x289   : > { %2594 = vst [vmem:[#allocation3 + $0x6] sm:$0x3] %v2593_v61  ;;  %v2465_v60 = vadd.f32 %v2429_v38, %v2257_v3  ;;  %2827 = vrot.lane.b32.xlu2 %v2826_v62, %s6835_s21 }
 0x28a   : > { %2840 = vrot.lane.b32.xlu1 %v2839_v58, %s6837_s23 }
 0x28b   : > { %v2494_v31 = vadd.f32 %v7715_v36, %v2465_v60  ;;  %2836 = vrot.lane.b32.xlu0 %v2835_v59, %s6836_s22  ;;  %v1907_v2 = vpop.f32.mrf.mxu2  ;;  %v2640_v19 = vpop.permute.xlu2 %2639 }
 0x28c   : > { %v2602_v4 = vpop.permute.xlu1 %2601 }
 0x28d   : > { %v7921_v5 = vmax.f32 %v2494_v31, 0.0  ;;  %v2598_v6 = vpop.permute.xlu0 %2597  ;;  %v2043_v56 = vpop.f32.mrf.mxu3 }
 0x28e   : > { %v2608_v12 = vsel %vm2538_vm1, %v7764_v57, %v2598_v6  ;;  %v2224_v53 = vpop.f32.mrf.mxu0  ;;  %v2432_v16 = vpop.f32.mrf.mxu1  ;;  %v2044_v27 = vadd.f32 %v2043_v56, %v1907_v2 }
 0x28f   : > { %v2609_v42 = vsel %vm1661_vm0, %v2608_v12, %v2602_v4  ;;  %v2258_v0 = vadd.f32 %v2224_v53, %v2042_v41  ;;  %v2856_v17 = vrot.slane %v7921_v5, 4  ;;  %v2852_v40 = vrot.slane %v7921_v5, 2 }
 0x290   : > { %v2610_v63 = vsel %vm2541_vm2, %v2609_v42, %v2606_v21  ;;  %v2860_v46 = vrot.slane %v7921_v5, 6 }
 0x291   : > { %2611 = vst [vmem:[#allocation3 + $0x8] sm:$0x3] %v2610_v63  ;;  %v2466_v8 = vadd.f32 %v2432_v16, %v2258_v0  ;;  %2844 = vrot.lane.b32.xlu2 %v2843_v18, %s6835_s21 }
 0x292   : > { %2857 = vrot.lane.b32.xlu1 %v2856_v17, %s6837_s23 }
 0x293   : > { %v2495_v57 = vadd.f32 %v7715_v36, %v2466_v8  ;;  %2853 = vrot.lane.b32.xlu0 %v2852_v40, %s6836_s22  ;;  %v1910_v22 = vpop.f32.mrf.mxu2  ;;  %v2657_v23 = vpop.permute.xlu2 %2656 }
 0x294   : > { %v2619_v26 = vpop.permute.xlu1 %2618 }
 0x295   : > { %v7934_v1 = vmax.f32 %v2495_v57, 0.0  ;;  %v2615_v28 = vpop.permute.xlu0 %2614  ;;  %v2046_v21 = vpop.f32.mrf.mxu3 }
 0x296   : > { %v2625_v30 = vsel %vm2538_vm1, %v7773_v7, %v2615_v28  ;;  %v2226_v29 = vpop.f32.mrf.mxu0  ;;  %v2434_v35 = vpop.f32.mrf.mxu1  ;;  %v2047_v52 = vadd.f32 %v2046_v21, %v1910_v22 }
 0x297   : > { %v2626_v33 = vsel %vm1661_vm0, %v2625_v30, %v2619_v26  ;;  %v2259_v32 = vadd.f32 %v2226_v29, %v2044_v27  ;;  %v2877_v34 = vrot.slane %v7934_v1, 6  ;;  %v2869_v9 = vrot.slane %v7934_v1, 2 }
 0x298   : > { %v2627_v39 = vsel %vm2541_vm2, %v2626_v33, %v2623_v45  ;;  %v2873_v4 = vrot.slane %v7934_v1, 4 }
 0x299   : > { %2628 = vst [vmem:[#allocation3 + $0xa] sm:$0x3] %v2627_v39  ;;  %v2467_v48 = vadd.f32 %v2434_v35, %v2259_v32  ;;  %2861 = vrot.lane.b32.xlu2 %v2860_v46, %s6835_s21 }
 0x29a   : > { %2878 = vrot.lane.b32.xlu1 %v2877_v34, %s6835_s21 }
 0x29b   : > { %v2496_v7 = vadd.f32 %v7715_v36, %v2467_v48  ;;  %2870 = vrot.lane.b32.xlu0 %v2869_v9, %s6836_s22  ;;  %v1912_v49 = vpop.f32.mrf.mxu2  ;;  %v2674_v44 = vpop.permute.xlu2 %2673 }
 0x29c   : > { %v2636_v50 = vpop.permute.xlu1 %2635 }
 0x29d   : > { %v7947_v38 = vmax.f32 %v2496_v7, 0.0  ;;  %v2632_v54 = vpop.permute.xlu0 %2631  ;;  %v2048_v45 = vpop.f32.mrf.mxu3 }
 0x29e   : > { %v2642_v3 = vsel %vm2538_vm1, %v7786_v11, %v2632_v54  ;;  %v2229_v58 = vpop.f32.mrf.mxu0  ;;  %v2437_v59 = vpop.f32.mrf.mxu1  ;;  %v2049_v53 = vadd.f32 %v2048_v45, %v1912_v49 }
 0x29f   : > { %v2643_v61 = vsel %vm1661_vm0, %v2642_v3, %v2636_v50  ;;  %v2260_v62 = vadd.f32 %v2229_v58, %v2047_v52  ;;  %v2886_v60 = vrot.slane %v7947_v38, 2  ;;  %v2890_v31 = vrot.slane %v7947_v38, 4 }
 0x2a0   : > { %v2644_v2 = vsel %vm2541_vm2, %v2643_v61, %v2640_v19  ;;  %v2894_v22 = vrot.slane %v7947_v38, 6 }
 0x2a1   : > { %2645 = vst [vmem:[#allocation3 + $0xc] sm:$0x3] %v2644_v2  ;;  %v2468_v41 = vadd.f32 %v2437_v59, %v2260_v62  ;;  %2874 = vrot.lane.b32.xlu2 %v2873_v4, %s6837_s23 }
 0x2a2   : > { %2887 = vrot.lane.b32.xlu1 %v2886_v60, %s6836_s22 }
 0x2a3   : > { %v2497_v11 = vadd.f32 %v7715_v36, %v2468_v41  ;;  %2891 = vrot.lane.b32.xlu0 %v2890_v31, %s6837_s23  ;;  %v1915_v6 = vpop.f32.mrf.mxu2  ;;  %v2691_v56 = vpop.permute.xlu2 %2690 }
 0x2a4   : > { %v2653_v12 = vpop.permute.xlu1 %2652 }
 0x2a5   : > { %v7960_v16 = vmax.f32 %v2497_v11, 0.0  ;;  %v2649_v42 = vpop.permute.xlu0 %2648  ;;  %v2051_v19 = vpop.f32.mrf.mxu3 }
 0x2a6   : > { %v2659_v0 = vsel %vm2538_vm1, %v7795_v14, %v2649_v42  ;;  %v2231_v17 = vpop.f32.mrf.mxu0  ;;  %v2439_v40 = vpop.f32.mrf.mxu1  ;;  %v2052_v30 = vadd.f32 %v2051_v19, %v1915_v6 }
 0x2a7   : > { %v2660_v63 = vsel %vm1661_vm0, %v2659_v0, %v2653_v12  ;;  %v2261_v18 = vadd.f32 %v2231_v17, %v2049_v53  ;;  %v2907_v8 = vrot.slane %v7960_v16, 4  ;;  %v2903_v7 = vrot.slane %v7960_v16, 2 }
 0x2a8   : > { %v2661_v57 = vsel %vm2541_vm2, %v2660_v63, %v2657_v23  ;;  %v2911_v6 = vrot.slane %v7960_v16, 6 }
 0x2a9   : > { %2662 = vst [vmem:[#allocation3 + $0xe] sm:$0x3] %v2661_v57  ;;  %v2469_v26 = vadd.f32 %v2439_v40, %v2261_v18  ;;  %2895 = vrot.lane.b32.xlu2 %v2894_v22, %s6835_s21 }
 0x2aa   : > { %2908 = vrot.lane.b32.xlu1 %v2907_v8, %s6837_s23 }
 0x2ab   : > { %v2498_v27 = vadd.f32 %v7715_v36, %v2469_v26  ;;  %v1917_v14 = vpop.f32.mrf.mxu2  ;;  %v2708_v28 = vpop.permute.xlu2 %2707 }
 0x2ac   : > { %v2670_v21 = vpop.permute.xlu1 %2669 }
 0x2ad   : > { %v7971_v29 = vmax.f32 %v2498_v27, 0.0  ;;  %v2666_v35 = vpop.permute.xlu0 %2665  ;;  %v2053_v33 = vpop.f32.mrf.mxu3 }
 0x2ae   : > { %v2676_v23 = vsel %vm2538_vm1, %v7806_v10, %v2666_v35  ;;  %v2234_v32 = vpop.f32.mrf.mxu0  ;;  %v2442_v34 = vpop.f32.mrf.mxu1 }
 0x2af   : > { %v2677_v9 = vsel %vm1661_vm0, %v2676_v23, %v2670_v21  ;;  %v2262_v39 = vadd.f32 %v2234_v32, %v2052_v30  ;;  %v2920_v46 = vrot.slane %v7971_v29, 2  ;;  %v2928_v11 = vrot.slane %v7971_v29, 6 }
 0x2b0   : > { %v2678_v48 = vsel %vm2541_vm2, %v2677_v9, %v2674_v44 }
 0x2b1   : > { %2679 = vst [vmem:[#allocation3 + $0x10] sm:$0x3] %v2678_v48  ;;  %v2470_v49 = vadd.f32 %v2442_v34, %v2262_v39  ;;  %2921 = vrot.lane.b32.xlu0 %v2920_v46, %s6836_s22  ;;  %2904 = vrot.lane.b32.xlu2 %v2903_v7, %s6836_s22 }
 0x2b3   : > { %v2499_v50 = vadd.f32 %v7715_v36, %v2470_v49  ;;  %v2725_v10 = vpop.permute.xlu2 %2724  ;;  %v2924_v36 = vrot.slane %v7971_v29, 4 }
 0x2b4   : > { %v2687_v52 = vpop.permute.xlu1 %2686 }
 0x2b5   : > { %v7982_v54 = vmax.f32 %v2499_v50, 0.0  ;;  %v2683_v45 = vpop.permute.xlu0 %2682 }
 0x2b6   : > { %v2693_v3 = vsel %vm2538_vm1, %v7815_v13, %v2683_v45  ;;  %v2236_v58 = vpop.f32.mrf.mxu0  ;;  %v2444_v44 = vpop.f32.mrf.mxu1 }
 0x2b7   : > { %v2694_v59 = vsel %vm1661_vm0, %v2693_v3, %v2687_v52  ;;  %v2937_v61 = vrot.slane %v7982_v54, 2  ;;  %v2941_v62 = vrot.slane %v7982_v54, 4  ;;  %v2945_v12 = vrot.slane %v7982_v54, 6 }
 0x2b8   : > { %v2695_v60 = vsel %vm2541_vm2, %v2694_v59, %v2691_v56 }
 0x2b9   : > { %2696 = vst [vmem:[#allocation3 + $0x12] sm:$0x3] %v2695_v60  ;;  %2938 = vrot.lane.b32.xlu1 %v2937_v61, %s6836_s22  ;;  %2942 = vrot.lane.b32.xlu0 %v2941_v62, %s6837_s23 }
 0x2ba   : > { %2925 = vrot.lane.b32.xlu2 %v2924_v36, %s6837_s23 }
 0x2bb   : > { %v2742_v13 = vpop.permute.xlu2 %2741 }
 0x2bc   : > { %v2704_v31 = vpop.permute.xlu1 %2703 }
 0x2bd   : > { %v2700_v2 = vpop.permute.xlu0 %2699 }
 0x2be   : > { %v2710_v4 = vsel %vm2538_vm1, %v7824_v25, %v2700_v2 }
 0x2bf   : > { %v2711_v41 = vsel %vm1661_vm0, %v2710_v4, %v2704_v31 }
 0x2c0   : > { %v2712_v56 = vsel %vm2541_vm2, %v2711_v41, %v2708_v28 }
 0x2c1   : > { %2713 = vst [vmem:[#allocation3 + $0x14] sm:$0x3] %v2712_v56  ;;  %2929 = vrot.lane.b32.xlu1 %v2928_v11, %s6835_s21  ;;  %2912 = vrot.lane.b32.xlu0 %v2911_v6, %s6835_s21 }
 0x2c2   : > { %2946 = vrot.lane.b32.xlu2 %v2945_v12, %s6835_s21 }
 0x2c3   : > { %v2759_v53 = vpop.permute.xlu2 %2758 }
 0x2c4   : > { %v2721_v42 = vpop.permute.xlu1 %2720 }
 0x2c5   : > { %v2717_v25 = vpop.permute.xlu0 %2716 }
 0x2c6   : > { %v2727_v19 = vsel %vm2538_vm1, %v7833_v43, %v2717_v25 }
 0x2c7   : > { %v2728_v0 = vsel %vm1661_vm0, %v2727_v19, %v2721_v42 }
 0x2c8   : > { %v2729_v17 = vsel %vm2541_vm2, %v2728_v0, %v2725_v10 }
 0x2c9   : > { %2730 = vst [vmem:[#allocation3 + $0x16] sm:$0x3] %v2729_v17 }
 0x2cb   : > { %v2777_v40 = vpop.permute.xlu2 %2776 }
 0x2cc   : > { %v2738_v63 = vpop.permute.xlu1 %2737 }
 0x2cd   : > { %v2734_v18 = vpop.permute.xlu0 %2733 }
 0x2ce   : > { %v2744_v8 = vsel %vm2538_vm1, %v7842_v55, %v2734_v18 }
 0x2cf   : > { %v2745_v57 = vsel %vm1661_vm0, %v2744_v8, %v2738_v63 }
 0x2d0   : > { %v2746_v22 = vsel %vm2541_vm2, %v2745_v57, %v2742_v13 }
 0x2d1   : > { %2747 = vst [vmem:[#allocation3 + $0x18] sm:$0x3] %v2746_v22 }
 0x2d3   : > { %v2794_v26 = vpop.permute.xlu2 %2793 }
 0x2d4   : > { %v2755_v27 = vpop.permute.xlu1 %2754 }
 0x2d5   : > { %v2751_v14 = vpop.permute.xlu0 %2750 }
 0x2d6   : > { %v2761_v43 = vsel %vm2538_vm1, %v7851_v37, %v2751_v14 }
 0x2d7   : > { %v2762_v28 = vsel %vm1661_vm0, %v2761_v43, %v2755_v27 }
 0x2d8   : > { %v2763_v21 = vsel %vm2541_vm2, %v2762_v28, %v2759_v53 }
 0x2d9   : > { %2765 = vst [vmem:[#allocation3 + $0x1a] sm:$0x3] %v2763_v21 }
 0x2db   : > { %v2811_v30 = vpop.permute.xlu2 %2810 }
 0x2dc   : > { %v2773_v35 = vpop.permute.xlu1 %2772 }
 0x2dd   : > { %v2769_v33 = vpop.permute.xlu0 %2768 }
 0x2de   : > { %v2779_v55 = vsel %vm2538_vm1, %v7860_v20, %v2769_v33 }
 0x2df   : > { %v2780_v23 = vsel %vm1661_vm0, %v2779_v55, %v2773_v35 }
 0x2e0   : > { %v2781_v32 = vsel %vm2541_vm2, %v2780_v23, %v2777_v40 }
 0x2e1   : > { %2782 = vst [vmem:[#allocation3 + $0x1c] sm:$0x3] %v2781_v32 }
 0x2e3   : > { %v2828_v39 = vpop.permute.xlu2 %2827 }
 0x2e4   : > { %v2790_v34 = vpop.permute.xlu1 %2789 }
 0x2e5   : > { %v2786_v9 = vpop.permute.xlu0 %2785 }
 0x2e6   : > { %v2796_v37 = vsel %vm2538_vm1, %v7869_v15, %v2786_v9 }
 0x2e7   : > { %v2797_v46 = vsel %vm1661_vm0, %v2796_v37, %v2790_v34 }
 0x2e8   : > { %v2798_v48 = vsel %vm2541_vm2, %v2797_v46, %v2794_v26 }
 0x2e9   : > { %2799 = vst [vmem:[#allocation3 + $0x1e] sm:$0x3] %v2798_v48 }
 0x2eb   : > { %v2845_v10 = vpop.permute.xlu2 %2844 }
 0x2ec   : > { %v2807_v7 = vpop.permute.xlu1 %2806 }
 0x2ed   : > { %v2803_v49 = vpop.permute.xlu0 %2802 }
 0x2ee   : > { %v2813_v20 = vsel %vm2538_vm1, %v7878_v24, %v2803_v49 }
 0x2ef   : > { %v2814_v50 = vsel %vm1661_vm0, %v2813_v20, %v2807_v7 }
 0x2f0   : > { %v2815_v52 = vsel %vm2541_vm2, %v2814_v50, %v2811_v30 }
 0x2f1   : > { %2816 = vst [vmem:[#allocation3 + $0x20] sm:$0x3] %v2815_v52 }
 0x2f3   : > { %v2862_v59 = vpop.permute.xlu2 %2861 }
 0x2f4   : > { %v2824_v45 = vpop.permute.xlu1 %2823 }
 0x2f5   : > { %v2820_v3 = vpop.permute.xlu0 %2819 }
 0x2f6   : > { %v2830_v15 = vsel %vm2538_vm1, %v7895_v51, %v2820_v3 }
 0x2f7   : > { %v2831_v58 = vsel %vm1661_vm0, %v2830_v15, %v2824_v45 }
 0x2f8   : > { %v2832_v44 = vsel %vm2541_vm2, %v2831_v58, %v2828_v39 }
 0x2f9   : > { %2833 = vst [vmem:[#allocation3 + $0x22] sm:$0x3] %v2832_v44 }
 0x2fb   : > { %v2875_v13 = vpop.permute.xlu2 %2874 }
 0x2fc   : > { %v2841_v61 = vpop.permute.xlu1 %2840 }
 0x2fd   : > { %v2837_v62 = vpop.permute.xlu0 %2836 }
 0x2fe   : > { %v2847_v24 = vsel %vm2538_vm1, %v7908_v47, %v2837_v62 }
 0x2ff   : > { %v2848_v60 = vsel %vm1661_vm0, %v2847_v24, %v2841_v61 }
 0x300   : > { %v2849_v36 = vsel %vm2541_vm2, %v2848_v60, %v2845_v10 }
 0x301   : > { %2850 = vst [vmem:[#allocation3 + $0x24] sm:$0x3] %v2849_v36 }
 0x303   : > { %v2896_v56 = vpop.permute.xlu2 %2895 }
 0x304   : > { %v2858_v31 = vpop.permute.xlu1 %2857 }
 0x305   : > { %v2854_v2 = vpop.permute.xlu0 %2853 }
 0x306   : > { %v2864_v51 = vsel %vm2538_vm1, %v7921_v5, %v2854_v2 }
 0x307   : > { %v2865_v4 = vsel %vm1661_vm0, %v2864_v51, %v2858_v31 }
 0x308   : > { %v2866_v41 = vsel %vm2541_vm2, %v2865_v4, %v2862_v59 }
 0x309   : > { %2867 = vst [vmem:[#allocation3 + $0x26] sm:$0x3] %v2866_v41 }
 0x30b   : > { %v2905_v17 = vpop.permute.xlu2 %2904 }
 0x30c   : > { %v2879_v11 = vpop.permute.xlu1 %2878  ;;  %v2915_v14 = vsel %vm2538_vm1, %v7960_v16, %v2905_v17 }
 0x30d   : > { %v2871_v6 = vpop.permute.xlu0 %2870 }
 0x30e   : > { %v2881_v47 = vsel %vm2538_vm1, %v7934_v1, %v2871_v6 }
 0x30f   : > { %v2882_v12 = vsel %vm1661_vm0, %v2881_v47, %v2875_v13 }
 0x310   : > { %v2883_v53 = vsel %vm2541_vm2, %v2882_v12, %v2879_v11 }
 0x311   : > { %2884 = vst [vmem:[#allocation3 + $0x28] sm:$0x3] %v2883_v53 }
 0x314   : > { %v2888_v42 = vpop.permute.xlu1 %2887  ;;  %v2926_v40 = vpop.permute.xlu2 %2925 }
 0x315   : > { %v2898_v5 = vsel %vm2538_vm1, %v7947_v38, %v2888_v42  ;;  %v2892_v25 = vpop.permute.xlu0 %2891 }
 0x316   : > { %v2899_v19 = vsel %vm1661_vm0, %v2898_v5, %v2892_v25 }
 0x317   : > { %v2900_v0 = vsel %vm2541_vm2, %v2899_v19, %v2896_v56 }
 0x318   : > { %2901 = vst [vmem:[#allocation3 + $0x2a] sm:$0x3] %v2900_v0 }
 0x31c   : > { %v2909_v63 = vpop.permute.xlu1 %2908  ;;  %v2947_v22 = vpop.permute.xlu2 %2946 }
 0x31d   : > { %v2916_v43 = vsel %vm1661_vm0, %v2915_v14, %v2909_v63 }
 0x323   : > { %v2922_v18 = vpop.permute.xlu0 %2921 }
 0x324   : > { %v2932_v27 = vsel %vm2538_vm1, %v7971_v29, %v2922_v18 }
 0x325   : > { %v2933_v21 = vsel %vm1661_vm0, %v2932_v27, %v2926_v40 }
 0x32b   : > { %v2939_v1 = vpop.permute.xlu1 %2938  ;;  %v2943_v8 = vpop.permute.xlu0 %2942 }
 0x32c   : > { %v2949_v57 = vsel %vm2538_vm1, %v7982_v54, %v2939_v1 }
 0x32d   : > { %v2950_v26 = vsel %vm1661_vm0, %v2949_v57, %v2943_v8 }
 0x32e   : > { %v2951_v38 = vsel %vm2541_vm2, %v2950_v26, %v2947_v22 }
 0x32f   : > { %2952 = vst [vmem:[#allocation3 + $0x30] sm:$0x3] %v2951_v38 }
 0x333   : > { %v2930_v28 = vpop.permute.xlu1 %2929  ;;  %v2913_v30 = vpop.permute.xlu0 %2912 }
 0x334   : > { %v2934_v54 = vsel %vm2541_vm2, %v2933_v21, %v2930_v28  ;;  %v2917_v35 = vsel %vm2541_vm2, %v2916_v43, %v2913_v30 }
 0x335   : > { %2935 = vst [vmem:[#allocation3 + $0x2e] sm:$0x3] %v2934_v54 }
 0x336   : > { %2918 = vst [vmem:[#allocation3 + $0x2c] sm:$0x3] %v2917_v35 }
 0x337 PF: > { %v5546_v16 = vld [vmem:[%s6909_s19 + $0x70] sm:$0xf]  ;;  %v6542_v29 = vld [vmem:[%s6909_s19 + $0x74] sm:$0xf0]  ;;  %v5538_v48 = vld [vmem:[%s6909_s19 + $0x60] sm:$0xf] }
 0x338   : > { %v5610_v33 = vld [vmem:[%s6909_s19 + $0xf0] sm:$0xf]  ;;  %v5547_v55 = vor.u32 %v6542_v29, %v5546_v16  ;;  %v6558_v23 = vld [vmem:[%s6909_s19 + $0xf4] sm:$0xf0]  ;;  %v6540_v49 = vld [vmem:[%s6909_s19 + $0x64] sm:$0xf0] }
 0x339   : > { %v5674_v32 = vld [vmem:[%s6909_s19 + $0x170] sm:$0xf]  ;;  %v6574_v34 = vld [vmem:[%s6909_s19 + $0x174] sm:$0xf0]  ;;  %v5611_v9 = vor.u32 %v6558_v23, %v5610_v33  ;;  %v5602_v20 = vld [vmem:[%s6909_s19 + $0xe0] sm:$0xf]  ;;  %v5539_v10 = vor.u32 %v6540_v49, %v5538_v48 }
 0x33a   : > { %v5675_v39 = vor.u32 %v6574_v34, %v5674_v32  ;;  %v5738_v37 = vld [vmem:[%s6909_s19 + $0x1f0] sm:$0xf]  ;;  %v6590_v46 = vld [vmem:[%s6909_s19 + $0x1f4] sm:$0xf0]  ;;  %4259 = vmatpush.bf16.msra.mxu0 %v5547_v55  ;;  %v6556_v50 = vld [vmem:[%s6909_s19 + $0xe4] sm:$0xf0] }
 0x33b   : > { %v5739_v7 = vor.u32 %v6590_v46, %v5738_v37  ;;  %4272 = vmatpush.bf16.msra.mxu1 %v5611_v9  ;;  %v5603_v52 = vor.u32 %v6556_v50, %v5602_v20  ;;  %v5666_v45 = vld [vmem:[%s6909_s19 + $0x160] sm:$0xf]  ;;  %v6572_v3 = vld [vmem:[%s6909_s19 + $0x164] sm:$0xf0]  ;;  %v5530_v59 = vld [vmem:[%s6909_s19 + $0x50] sm:$0xf] }
 0x33c   : > { %4285 = vmatpush.bf16.msra.mxu2 %v5675_v39  ;;  %v5730_v15 = vld [vmem:[%s6909_s19 + $0x1e0] sm:$0xf]  ;;  %v5667_v58 = vor.u32 %v6572_v3, %v5666_v45  ;;  %v6588_v44 = vld [vmem:[%s6909_s19 + $0x1e4] sm:$0xf0]  ;;  %v6538_v61 = vld [vmem:[%s6909_s19 + $0x54] sm:$0xf0] }
 0x33d   : > { %4298 = vmatpush.bf16.msra.mxu3 %v5739_v7  ;;  %v5731_v62 = vor.u32 %v6588_v44, %v5730_v15  ;;  %v5594_v24 = vld [vmem:[%s6909_s19 + $0xd0] sm:$0xf]  ;;  %v6554_v60 = vld [vmem:[%s6909_s19 + $0xd4] sm:$0xf0]  ;;  %v5531_v13 = vor.u32 %v6538_v61, %v5530_v59  ;;  %v5522_v11 = vld [vmem:[%s6909_s19 + $0x40] sm:$0xf] }
 0x33e   : > { %v5658_v36 = vld [vmem:[%s6909_s19 + $0x150] sm:$0xf]  ;;  %4260 = vmatpush.bf16.msra.mxu0 %v5539_v10  ;;  %v6570_v31 = vld [vmem:[%s6909_s19 + $0x154] sm:$0xf0]  ;;  %v5595_v4 = vor.u32 %v6554_v60, %v5594_v24  ;;  %v6536_v6 = vld [vmem:[%s6909_s19 + $0x44] sm:$0xf0] }
 0x33f   : > { %v5722_v2 = vld [vmem:[%s6909_s19 + $0x1d0] sm:$0xf]  ;;  %v6586_v51 = vld [vmem:[%s6909_s19 + $0x1d4] sm:$0xf0]  ;;  %4273 = vmatpush.bf16.msra.mxu1 %v5603_v52  ;;  %v5659_v41 = vor.u32 %v6570_v31, %v5658_v36  ;;  %v5586_v56 = vld [vmem:[%s6909_s19 + $0xc0] sm:$0xf]  ;;  %v5523_v19 = vor.u32 %v6536_v6, %v5522_v11 }
 0x340   : > { %4286 = vmatpush.bf16.msra.mxu2 %v5667_v58  ;;  %v5723_v47 = vor.u32 %v6586_v51, %v5722_v2  ;;  %v6552_v12 = vld [vmem:[%s6909_s19 + $0xc4] sm:$0xf0]  ;;  %v5650_v53 = vld [vmem:[%s6909_s19 + $0x140] sm:$0xf]  ;;  %v5514_v40 = vld [vmem:[%s6909_s19 + $0x30] sm:$0xf] }
 0x341   : > { %4299 = vmatpush.bf16.msra.mxu3 %v5731_v62  ;;  %v6568_v42 = vld [vmem:[%s6909_s19 + $0x144] sm:$0xf0]  ;;  %v5714_v5 = vld [vmem:[%s6909_s19 + $0x1c0] sm:$0xf]  ;;  %v5587_v0 = vor.u32 %v6552_v12, %v5586_v56  ;;  %v6534_v63 = vld [vmem:[%s6909_s19 + $0x34] sm:$0xf0] }
 0x342   : > { %v6584_v25 = vld [vmem:[%s6909_s19 + $0x1c4] sm:$0xf0]  ;;  %4261 = vmatpush.bf16.msra.mxu0 %v5531_v13  ;;  %v5651_v17 = vor.u32 %v6568_v42, %v5650_v53  ;;  %v5578_v18 = vld [vmem:[%s6909_s19 + $0xb0] sm:$0xf]  ;;  %v6550_v8 = vld [vmem:[%s6909_s19 + $0xb4] sm:$0xf0]  ;;  %v5515_v27 = vor.u32 %v6534_v63, %v5514_v40 }
 0x343   : > { %4274 = vmatpush.bf16.msra.mxu1 %v5595_v4  ;;  %v5715_v1 = vor.u32 %v6584_v25, %v5714_v5  ;;  %v5642_v57 = vld [vmem:[%s6909_s19 + $0x130] sm:$0xf]  ;;  %v6566_v22 = vld [vmem:[%s6909_s19 + $0x134] sm:$0xf0]  ;;  %v5579_v14 = vor.u32 %v6550_v8, %v5578_v18  ;;  %v5506_v28 = vld [vmem:[%s6909_s19 + $0x20] sm:$0xf] }
 0x344   : > { %4287 = vmatpush.bf16.msra.mxu2 %v5659_v41  ;;  %v5706_v26 = vld [vmem:[%s6909_s19 + $0x1b0] sm:$0xf]  ;;  %v6582_v38 = vld [vmem:[%s6909_s19 + $0x1b4] sm:$0xf0]  ;;  %v5643_v43 = vor.u32 %v6566_v22, %v5642_v57  ;;  %v6532_v21 = vld [vmem:[%s6909_s19 + $0x24] sm:$0xf0] }
 0x345   : > { %4300 = vmatpush.bf16.msra.mxu3 %v5723_v47  ;;  %v5570_v30 = vld [vmem:[%s6909_s19 + $0xa0] sm:$0xf]  ;;  %v5707_v54 = vor.u32 %v6582_v38, %v5706_v26  ;;  %v6548_v35 = vld [vmem:[%s6909_s19 + $0xa4] sm:$0xf0]  ;;  %v5507_v23 = vor.u32 %v6532_v21, %v5506_v28  ;;  %v5498_v9 = vld [vmem:[%s6909_s19 + $0x10] sm:$0xf] }
 0x346   : > { %4262 = vmatpush.bf16.msra.mxu0 %v5523_v19  ;;  %v5634_v16 = vld [vmem:[%s6909_s19 + $0x120] sm:$0xf]  ;;  %v6564_v29 = vld [vmem:[%s6909_s19 + $0x124] sm:$0xf0]  ;;  %v5571_v32 = vor.u32 %v6548_v35, %v5570_v30  ;;  %v6530_v39 = vld [vmem:[%s6909_s19 + $0x14] sm:$0xf0] }
 0x347   : > { %4275 = vmatpush.bf16.msra.mxu1 %v5587_v0  ;;  %v5698_v33 = vld [vmem:[%s6909_s19 + $0x1a0] sm:$0xf]  ;;  %v6580_v55 = vld [vmem:[%s6909_s19 + $0x1a4] sm:$0xf0]  ;;  %v5635_v34 = vor.u32 %v6564_v29, %v5634_v16  ;;  %v5562_v37 = vld [vmem:[%s6909_s19 + $0x90] sm:$0xf]  ;;  %v5499_v10 = vor.u32 %v6530_v39, %v5498_v9 }
 0x348   : > { %4288 = vmatpush.bf16.msra.mxu2 %v5651_v17  ;;  %v5699_v46 = vor.u32 %v6580_v55, %v5698_v33  ;;  %v6546_v48 = vld [vmem:[%s6909_s19 + $0x94] sm:$0xf0]  ;;  %v5626_v7 = vld [vmem:[%s6909_s19 + $0x110] sm:$0xf]  ;;  %v5490_v52 = vld [vmem:[%s6909_s19] sm:$0xf] }
 0x349   : > { %4301 = vmatpush.bf16.msra.mxu3 %v5715_v1  ;;  %v6562_v49 = vld [vmem:[%s6909_s19 + $0x114] sm:$0xf0]  ;;  %v5690_v20 = vld [vmem:[%s6909_s19 + $0x190] sm:$0xf]  ;;  %v6528_v45 = vld [vmem:[%s6909_s19 + $0x4] sm:$0xf0]  ;;  %v5563_v3 = vor.u32 %v6546_v48, %v5562_v37 }
 0x34a   : > { %4263 = vmatpush.bf16.msra.mxu0 %v5515_v27  ;;  %v6578_v50 = vld [vmem:[%s6909_s19 + $0x194] sm:$0xf0]  ;;  %v5627_v15 = vor.u32 %v6562_v49, %v5626_v7  ;;  %v5554_v58 = vld [vmem:[%s6909_s19 + $0x80] sm:$0xf]  ;;  %v6544_v44 = vld [vmem:[%s6909_s19 + $0x84] sm:$0xf0]  ;;  %v5491_v2 = vor.u32 %v6528_v45, %v5490_v52 }
 0x34b   : > { %4276 = vmatpush.bf16.msra.mxu1 %v5579_v14  ;;  %v5618_v59 = vld [vmem:[%s6909_s19 + $0x100] sm:$0xf]  ;;  %v5691_v61 = vor.u32 %v6578_v50, %v5690_v20  ;;  %v6560_v62 = vld [vmem:[%s6909_s19 + $0x104] sm:$0xf0]  ;;  %v5802_v24 = vld [vmem:[%s6909_s19 + $0x270] sm:$0xf]  ;;  %v5555_v11 = vor.u32 %v6544_v44, %v5554_v58 }
 0x34c   : > { %4289 = vmatpush.bf16.msra.mxu2 %v5643_v43  ;;  %v6606_v60 = vld [vmem:[%s6909_s19 + $0x274] sm:$0xf0]  ;;  %v5866_v36 = vld [vmem:[%s6909_s19 + $0x2f0] sm:$0xf]  ;;  %v5682_v4 = vld [vmem:[%s6909_s19 + $0x180] sm:$0xf]  ;;  %v5619_v6 = vor.u32 %v6560_v62, %v5618_v59 }
 0x34d   : > { %4302 = vmatpush.bf16.msra.mxu3 %v5707_v54  ;;  %v6622_v13 = vld [vmem:[%s6909_s19 + $0x2f4] sm:$0xf0]  ;;  %v5930_v31 = vld [vmem:[%s6909_s19 + $0x370] sm:$0xf]  ;;  %v6576_v41 = vld [vmem:[%s6909_s19 + $0x184] sm:$0xf0]  ;;  %v5803_v12 = vor.u32 %v6606_v60, %v5802_v24 }
 0x34e   : > { %4264 = vmatpush.bf16.msra.mxu0 %v5507_v23  ;;  %v6638_v51 = vld [vmem:[%s6909_s19 + $0x374] sm:$0xf0]  ;;  %v5994_v56 = vld [vmem:[%s6909_s19 + $0x3f0] sm:$0xf]  ;;  %v5867_v53 = vor.u32 %v6622_v13, %v5866_v36  ;;  %v5794_v42 = vld [vmem:[%s6909_s19 + $0x260] sm:$0xf]  ;;  %v5683_v25 = vor.u32 %v6576_v41, %v5682_v4 }
 0x34f   : > { %4277 = vmatpush.bf16.msra.mxu1 %v5571_v32  ;;  %v6654_v47 = vld [vmem:[%s6909_s19 + $0x3f4] sm:$0xf0]  ;;  %v5931_v5 = vor.u32 %v6638_v51, %v5930_v31  ;;  %v6604_v19 = vld [vmem:[%s6909_s19 + $0x264] sm:$0xf0]  ;;  %v5858_v0 = vld [vmem:[%s6909_s19 + $0x2e0] sm:$0xf] }
 0x350   : > { %4290 = vmatpush.bf16.msra.mxu2 %v5635_v34  ;;  %v6620_v17 = vld [vmem:[%s6909_s19 + $0x2e4] sm:$0xf0]  ;;  %v5995_v40 = vor.u32 %v6654_v47, %v5994_v56  ;;  %v5922_v63 = vld [vmem:[%s6909_s19 + $0x360] sm:$0xf]  ;;  %v5795_v57 = vor.u32 %v6604_v19, %v5794_v42  ;;  %v5786_v26 = vld [vmem:[%s6909_s19 + $0x250] sm:$0xf] }
 0x351   : > { %4303 = vmatpush.bf16.msra.mxu3 %v5699_v46  ;;  %v6636_v18 = vld [vmem:[%s6909_s19 + $0x364] sm:$0xf0]  ;;  %v5986_v1 = vld [vmem:[%s6909_s19 + $0x3e0] sm:$0xf]  ;;  %v5859_v22 = vor.u32 %v6620_v17, %v5858_v0  ;;  %v6602_v38 = vld [vmem:[%s6909_s19 + $0x254] sm:$0xf0] }
 0x352   : > { %4265 = vmatpush.bf16.msra.mxu0 %v5499_v10  ;;  %v6652_v8 = vld [vmem:[%s6909_s19 + $0x3e4] sm:$0xf0]  ;;  %v5923_v27 = vor.u32 %v6636_v18, %v5922_v63  ;;  %v5850_v14 = vld [vmem:[%s6909_s19 + $0x2d0] sm:$0xf]  ;;  %v6618_v43 = vld [vmem:[%s6909_s19 + $0x2d4] sm:$0xf0]  ;;  %v5787_v16 = vor.u32 %v6602_v38, %v5786_v26 }
 0x353   : > { %4278 = vmatpush.bf16.msra.mxu1 %v5563_v3  ;;  %s6526_s24 = smul.u32 26, %s6901_s14  ;;  %v5987_v28 = vor.u32 %v6652_v8, %v5986_v1  ;;  %v5914_v21 = vld [vmem:[%s6909_s19 + $0x350] sm:$0xf]  ;;  %v6634_v30 = vld [vmem:[%s6909_s19 + $0x354] sm:$0xf0]  ;;  %v5851_v29 = vor.u32 %v6618_v43, %v5850_v14  ;;  %vm4600_vm3 = vcmask 1041408  }
 0x354   : > { %4291 = vmatpush.bf16.msra.mxu2 %v5627_v15  ;;  %v5978_v54 = vld [vmem:[%s6909_s19 + $0x3d0] sm:$0xf]  ;;  %v6650_v35 = vld [vmem:[%s6909_s19 + $0x3d4] sm:$0xf0]  ;;  %v5778_v33 = vld [vmem:[%s6909_s19 + $0x240] sm:$0xf]  ;;  %v5915_v32 = vor.u32 %v6634_v30, %v5914_v21 }
 0x355   : > { %4304 = vmatpush.bf16.msra.mxu3 %v5691_v61  ;;  %v6600_v55 = vld [vmem:[%s6909_s19 + $0x244] sm:$0xf0]  ;;  %s8151_s25 = scalar_lea.vmem [#allocation3], %s6526_s24  ;;  %v5842_v34 = vld [vmem:[%s6909_s19 + $0x2c0] sm:$0xf]  ;;  %v5979_v39 = vor.u32 %v6650_v35, %v5978_v54  ;;  %p6320_p5 = scmp.ne.s32.totalorder %s6901_s14, 1 }
 0x356   : > { %4266 = vmatpush.bf16.msra.mxu0 %v5491_v2  ;;  %v2959_v23 = vld [vmem:[%s8151_s25] sm:$0xff]  ;;  %v6616_v9 = vld [vmem:[%s6909_s19 + $0x2c4] sm:$0xf0]  ;;  %v5779_v49 = vor.u32 %v6600_v55, %v5778_v33  ;;  %v5770_v50 = vld [vmem:[%s6909_s19 + $0x230] sm:$0xf] }
 0x357   : > { %4279 = vmatpush.bf16.msra.mxu1 %v5555_v11  ;;  %2967 = vst [vmem:[#allocation1] ss:$4 sm:$0xff] %v2959_v23  ;;  %v5906_v37 = vld [vmem:[%s6909_s19 + $0x340] sm:$0xf]  ;;  %v6632_v46 = vld [vmem:[%s6909_s19 + $0x344] sm:$0xf0]  ;;  %v5843_v20 = vor.u32 %v6616_v9, %v5842_v34 }
 0x358   : > { %4292 = vmatpush.bf16.msra.mxu2 %v5619_v6  ;;  %v5970_v48 = vld [vmem:[%s6909_s19 + $0x3c0] sm:$0xf]  ;;  %v6648_v7 = vld [vmem:[%s6909_s19 + $0x3c4] sm:$0xf0]  ;;  %v6598_v10 = vld [vmem:[%s6909_s19 + $0x234] sm:$0xf0]  ;;  %v5907_v52 = vor.u32 %v6632_v46, %v5906_v37 }
 0x359   : > { %4305 = vmatpush.bf16.msra.mxu3 %v5683_v25  ;;  %v5834_v45 = vld [vmem:[%s6909_s19 + $0x2b0] sm:$0xf]  ;;  %v6614_v3 = vld [vmem:[%s6909_s19 + $0x2b4] sm:$0xf0]  ;;  %v5971_v58 = vor.u32 %v6648_v7, %v5970_v48  ;;  %v5762_v62 = vld [vmem:[%s6909_s19 + $0x220] sm:$0xf]  ;;  %v5771_v31 = vor.u32 %v6598_v10, %v5770_v50 }
 0x35a   : > { %4311 = vmatpush.bf16.msrb.mxu0 %v5803_v12  ;;  %v5898_v15 = vld [vmem:[%s6909_s19 + $0x330] sm:$0xf]  ;;  %v6630_v44 = vld [vmem:[%s6909_s19 + $0x334] sm:$0xf0]  ;;  %v6596_v24 = vld [vmem:[%s6909_s19 + $0x224] sm:$0xf0]  ;;  %v5835_v2 = vor.u32 %v6614_v3, %v5834_v45 }
 0x35b   : > { %4324 = vmatpush.bf16.msrb.mxu1 %v5867_v53  ;;  %v5962_v59 = vld [vmem:[%s6909_s19 + $0x3b0] sm:$0xf]  ;;  %v6646_v61 = vld [vmem:[%s6909_s19 + $0x3b4] sm:$0xf0]  ;;  %v5826_v60 = vld [vmem:[%s6909_s19 + $0x2a0] sm:$0xf]  ;;  %v5899_v41 = vor.u32 %v6630_v44, %v5898_v15 }
 0x35c   : > { %4337 = vmatpush.bf16.msrb.mxu2 %v5931_v5  ;;  %v6612_v36 = vld [vmem:[%s6909_s19 + $0x2a4] sm:$0xf0]  ;;  %v2961_v13 = vld [vmem:[%s8151_s25 + $0x10] sm:$0xff]  ;;  %v5963_v12 = vor.u32 %v6646_v61, %v5962_v59  ;;  %v5890_v42 = vld [vmem:[%s6909_s19 + $0x320] sm:$0xf] }
 0x35d   : > { %4350 = vmatpush.bf16.msrb.mxu3 %v5995_v40  ;;  %v6628_v5 = vld [vmem:[%s6909_s19 + $0x324] sm:$0xf0]  ;;  %v5954_v19 = vld [vmem:[%s6909_s19 + $0x3a0] sm:$0xf]  ;;  %v5754_v17 = vld [vmem:[%s6909_s19 + $0x210] sm:$0xf]  ;;  %v5763_v40 = vor.u32 %v6596_v24, %v5762_v62  ;;  %v5827_v63 = vor.u32 %v6612_v36, %v5826_v60 }
 0x35e   : > { %4312 = vmatpush.bf16.msrb.mxu0 %v5795_v57  ;;  %v2972_v51 = vld.sshfl [vmem:[#allocation1 + $0x10] sm:$0xff pattern:$0x73625140]  ;;  %v2970_v4 = vld.sshfl [vmem:[#allocation1] sm:$0xff pattern:$0x73625140]  ;;  %v5891_v57 = vor.u32 %v6628_v5, %v5890_v42 }
 0x35f   : > { %4325 = vmatpush.bf16.msrb.mxu1 %v5859_v22  ;;  %v8173_v11 = vpack.c.bf16 %v2972_v51, %v2972_v51  ;;  %v8175_v6 = vpack.c.bf16 %v2970_v4, %v2970_v4  ;;  %v2973_v56 = vld.sshfl [vmem:[#allocation1 + $0x18] sm:$0xff pattern:$0x73625140]  ;;  %v2971_v47 = vld.sshfl [vmem:[#allocation1 + $0x8] sm:$0xff pattern:$0x73625140] }
 0x360   : > { %4338 = vmatpush.bf16.msrb.mxu2 %v5923_v27  ;;  %v8177_v53 = vpack.c.bf16 %v2973_v56, %v2973_v56  ;;  %2978 = vst [vmem:[#allocation1] ss:$4 sm:$0xff] %v2961_v13  ;;  %v8181_v25 = vpack.c.bf16 %v2971_v47, %v2971_v47  ;;  %v6644_v0 = vld [vmem:[%s6909_s19 + $0x3a4] sm:$0xf0]  ;;  %v6594_v18 = vld [vmem:[%s6909_s19 + $0x214] sm:$0xf0] }
 0x361   : > { %4351 = vmatpush.bf16.msrb.mxu3 %v5987_v28  ;;  %4293 = vmatmul.bf16.vlgmr.msra.gmra.mxu2 %v8173_v11  ;;  %v5818_v1 = vld [vmem:[%s6909_s19 + $0x290] sm:$0xf]  ;;  %v2960_v8 = vld [vmem:[%s8151_s25 + $0x8] sm:$0xff]  ;;  %v6610_v22 = vld [vmem:[%s6909_s19 + $0x294] sm:$0xf0]  ;;  %v5955_v38 = vor.u32 %v6644_v0, %v5954_v19  ;;  %v5755_v35 = vor.u32 %v6594_v18, %v5754_v17 }
 0x362   : > { %4313 = vmatpush.bf16.msrb.mxu0 %v5787_v16  ;;  %4306 = vmatmul.bf16.vlgmr.msra.gmra.mxu3 %v8177_v53  ;;  %v5882_v26 = vld [vmem:[%s6909_s19 + $0x310] sm:$0xf]  ;;  %2969 = vst [vmem:[#allocation1 + $0x20] ss:$4 sm:$0xff] %v2960_v8  ;;  %v6626_v27 = vld [vmem:[%s6909_s19 + $0x314] sm:$0xf0]  ;;  %v5819_v16 = vor.u32 %v6610_v22, %v5818_v1 }
 0x363   : > { %4326 = vmatpush.bf16.msrb.mxu1 %v5851_v29  ;;  %4267 = vmatmul.bf16.vlgmr.msra.gmra.mxu0 %v8175_v6  ;;  %v5946_v14 = vld [vmem:[%s6909_s19 + $0x390] sm:$0xf]  ;;  %v6642_v43 = vld [vmem:[%s6909_s19 + $0x394] sm:$0xf0]  ;;  %v5746_v28 = vld [vmem:[%s6909_s19 + $0x200] sm:$0xf] }
 0x364   : > { %4339 = vmatpush.bf16.msrb.mxu2 %v5915_v32  ;;  %4280 = vmatmul.bf16.vlgmr.msra.gmra.mxu1 %v8181_v25  ;;  %v6592_v21 = vld [vmem:[%s6909_s19 + $0x204] sm:$0xf0]  ;;  %v5810_v30 = vld [vmem:[%s6909_s19 + $0x280] sm:$0xf]  ;;  %v6058_v55 = vld [vmem:[%s6909_s19 + $0x470] sm:$0xf]  ;;  %v5883_v32 = vor.u32 %v6626_v27, %v5882_v26  ;;  %v5947_v37 = vor.u32 %v6642_v43, %v5946_v14 }
 0x365   : > { %4352 = vmatpush.bf16.msrb.mxu3 %v5979_v39  ;;  %v6608_v54 = vld [vmem:[%s6909_s19 + $0x284] sm:$0xf0]  ;;  %v5874_v29 = vld [vmem:[%s6909_s19 + $0x300] sm:$0xf]  ;;  %v6670_v23 = vld [vmem:[%s6909_s19 + $0x474] sm:$0xf0]  ;;  %v5747_v10 = vor.u32 %v6592_v21, %v5746_v28 }
 0x366   : > { %4314 = vmatpush.bf16.msrb.mxu0 %v5779_v49  ;;  %v6624_v33 = vld [vmem:[%s6909_s19 + $0x304] sm:$0xf0]  ;;  %v6122_v34 = vld [vmem:[%s6909_s19 + $0x4f0] sm:$0xf]  ;;  %v6686_v9 = vld [vmem:[%s6909_s19 + $0x4f4] sm:$0xf0]  ;;  %v6059_v44 = vor.u32 %v6670_v23, %v6058_v55 }
 0x367   : > { %4327 = vmatpush.bf16.msrb.mxu1 %v5843_v20  ;;  %v6186_v39 = vld [vmem:[%s6909_s19 + $0x570] sm:$0xf]  ;;  %v6702_v46 = vld [vmem:[%s6909_s19 + $0x574] sm:$0xf0]  ;;  %v5938_v48 = vld [vmem:[%s6909_s19 + $0x380] sm:$0xf]  ;;  %v6123_v62 = vor.u32 %v6686_v9, %v6122_v34 }
 0x368   : > { %4340 = vmatpush.bf16.msrb.mxu2 %v5907_v52  ;;  %v6640_v7 = vld [vmem:[%s6909_s19 + $0x384] sm:$0xf0]  ;;  %v6250_v49 = vld [vmem:[%s6909_s19 + $0x5f0] sm:$0xf]  ;;  %v6718_v20 = vld [vmem:[%s6909_s19 + $0x5f4] sm:$0xf0]  ;;  %v5811_v52 = vor.u32 %v6608_v54, %v5810_v30  ;;  %v6187_v24 = vor.u32 %v6702_v46, %v6186_v39 }
 0x369   : > { %4353 = vmatpush.bf16.msrb.mxu3 %v5971_v58  ;;  %v2962_v50 = vld [vmem:[%s8151_s25 + $0x18] sm:$0x3]  ;;  %v2976_v45 = vld.sshfl [vmem:[#allocation1 + $0x30] sm:$0xff pattern:$0x73625140]  ;;  %v5875_v58 = vor.u32 %v6624_v33, %v5874_v29  ;;  %v5939_v13 = vor.u32 %v6640_v7, %v5938_v48 }
 0x36a   : > { %4315 = vmatpush.bf16.msrb.mxu0 %v5771_v31  ;;  %v6050_v3 = vld [vmem:[%s6909_s19 + $0x460] sm:$0xf]  ;;  %v2977_v59 = vld.sshfl [vmem:[#allocation1 + $0x38] sm:$0xff pattern:$0x73625140]  ;;  %v8223_v56 = vpack.c.bf16 %v2976_v45, %v2976_v45 }
 0x36b   : > { %4328 = vmatpush.bf16.msrb.mxu1 %v5835_v2  ;;  %v2974_v15 = vld.sshfl [vmem:[#allocation1 + $0x20] sm:$0xff pattern:$0x73625140]  ;;  %v2975_v61 = vld.sshfl [vmem:[#allocation1 + $0x28] sm:$0xff pattern:$0x73625140] }
 0x36c   : > { %4341 = vmatpush.bf16.msrb.mxu2 %v5899_v41  ;;  %v6668_v60 = vld [vmem:[%s6909_s19 + $0x464] sm:$0xf0]  ;;  %v6114_v36 = vld [vmem:[%s6909_s19 + $0x4e0] sm:$0xf]  ;;  %2979 = vst [vmem:[#allocation1 + $0x20] ss:$4 sm:$0xff] %v2962_v50  ;;  %v8221_v4 = vpack.c.bf16 %v2974_v15, %v2974_v15  ;;  %v6251_v41 = vor.u32 %v6718_v20, %v6250_v49  ;;  %v8233_v18 = vpack.c.bf16 %v2975_v61, %v2975_v61 }
 0x36d   : > { %4354 = vmatpush.bf16.msrb.mxu3 %v5963_v12  ;;  %v6684_v31 = vld [vmem:[%s6909_s19 + $0x4e4] sm:$0xf0]  ;;  %v6178_v2 = vld [vmem:[%s6909_s19 + $0x560] sm:$0xf]  ;;  %v6051_v47 = vor.u32 %v6668_v60, %v6050_v3  ;;  %v6042_v0 = vld [vmem:[%s6909_s19 + $0x450] sm:$0xf] }
 0x36e   : > { %4316 = vmatpush.bf16.msrb.mxu0 %v5763_v40  ;;  %v6700_v51 = vld [vmem:[%s6909_s19 + $0x564] sm:$0xf0]  ;;  %v6242_v12 = vld [vmem:[%s6909_s19 + $0x5e0] sm:$0xf]  ;;  %v6115_v5 = vor.u32 %v6684_v31, %v6114_v36  ;;  %v6666_v17 = vld [vmem:[%s6909_s19 + $0x454] sm:$0xf0] }
 0x36f   : > { %4329 = vmatpush.bf16.msrb.mxu1 %v5827_v63  ;;  %v6716_v42 = vld [vmem:[%s6909_s19 + $0x5e4] sm:$0xf0]  ;;  %v6179_v19 = vor.u32 %v6700_v51, %v6178_v2  ;;  %v6106_v40 = vld [vmem:[%s6909_s19 + $0x4d0] sm:$0xf]  ;;  %v8231_v63 = vpack.c.bf16 %v2977_v59, %v2977_v59  ;;  %v6682_v1 = vld [vmem:[%s6909_s19 + $0x4d4] sm:$0xf0]  ;;  %v6043_v26 = vor.u32 %v6666_v17, %v6042_v0 }
 0x370   : > { %4342 = vmatpush.bf16.msrb.mxu2 %v5891_v57  ;;  %v6170_v8 = vld [vmem:[%s6909_s19 + $0x550] sm:$0xf]  ;;  %v6698_v57 = vld [vmem:[%s6909_s19 + $0x554] sm:$0xf0]  ;;  %v6243_v22 = vor.u32 %v6716_v42, %v6242_v12  ;;  %v6107_v14 = vor.u32 %v6682_v1, %v6106_v40  ;;  %v6034_v28 = vld [vmem:[%s6909_s19 + $0x440] sm:$0xf] }
 0x371   : > { %4355 = vmatpush.bf16.msrb.mxu3 %v5955_v38  ;;  %v6234_v38 = vld [vmem:[%s6909_s19 + $0x5d0] sm:$0xf]  ;;  %v6714_v27 = vld [vmem:[%s6909_s19 + $0x5d4] sm:$0xf0]  ;;  %v6171_v43 = vor.u32 %v6698_v57, %v6170_v8  ;;  %v6664_v21 = vld [vmem:[%s6909_s19 + $0x444] sm:$0xf0] }
 0x372   : > { %4317 = vmatpush.bf16.msrb.mxu0 %v5755_v35  ;;  %v6098_v30 = vld [vmem:[%s6909_s19 + $0x4c0] sm:$0xf]  ;;  %v6680_v54 = vld [vmem:[%s6909_s19 + $0x4c4] sm:$0xf0]  ;;  %v6235_v29 = vor.u32 %v6714_v27, %v6234_v38  ;;  %v6035_v33 = vor.u32 %v6664_v21, %v6034_v28  ;;  %v6026_v9 = vld [vmem:[%s6909_s19 + $0x430] sm:$0xf] }
 0x373   : > { %4330 = vmatpush.bf16.msrb.mxu1 %v5819_v16  ;;  %v6162_v35 = vld [vmem:[%s6909_s19 + $0x540] sm:$0xf]  ;;  %v6696_v16 = vld [vmem:[%s6909_s19 + $0x544] sm:$0xf0]  ;;  %v6662_v39 = vld [vmem:[%s6909_s19 + $0x434] sm:$0xf0] }
 0x374   : > { %4343 = vmatpush.bf16.msrb.mxu2 %v5883_v32  ;;  %v6226_v55 = vld [vmem:[%s6909_s19 + $0x5c0] sm:$0xf]  ;;  %v6712_v23 = vld [vmem:[%s6909_s19 + $0x5c4] sm:$0xf0]  ;;  %v6099_v32 = vor.u32 %v6680_v54, %v6098_v30  ;;  %v6163_v34 = vor.u32 %v6696_v16, %v6162_v35  ;;  %v6678_v46 = vld [vmem:[%s6909_s19 + $0x4b4] sm:$0xf0]  ;;  %v6027_v20 = vor.u32 %v6662_v39, %v6026_v9 }
 0x375   : > { %4356 = vmatpush.bf16.msrb.mxu3 %v5947_v37  ;;  %v6090_v37 = vld [vmem:[%s6909_s19 + $0x4b0] sm:$0xf]  ;;  %v6694_v7 = vld [vmem:[%s6909_s19 + $0x534] sm:$0xf0]  ;;  %v6227_v49 = vor.u32 %v6712_v23, %v6226_v55  ;;  %v6018_v3 = vld [vmem:[%s6909_s19 + $0x420] sm:$0xf] }
 0x376   : > { %4318 = vmatpush.bf16.msrb.mxu0 %v5747_v10  ;;  %v6154_v48 = vld [vmem:[%s6909_s19 + $0x530] sm:$0xf]  ;;  %v6710_v10 = vld [vmem:[%s6909_s19 + $0x5b4] sm:$0xf0]  ;;  %v6660_v15 = vld [vmem:[%s6909_s19 + $0x424] sm:$0xf0] }
 0x377   : > { %4331 = vmatpush.bf16.msrb.mxu1 %v5811_v52  ;;  %v6218_v50 = vld [vmem:[%s6909_s19 + $0x5b0] sm:$0xf]  ;;  %v6091_v52 = vor.u32 %v6678_v46, %v6090_v37  ;;  %v6155_v45 = vor.u32 %v6694_v7, %v6154_v48  ;;  %v6146_v59 = vld [vmem:[%s6909_s19 + $0x520] sm:$0xf]  ;;  %v6692_v61 = vld [vmem:[%s6909_s19 + $0x524] sm:$0xf0] }
 0x378   : > { %4344 = vmatpush.bf16.msrb.mxu2 %v5875_v58  ;;  %v6082_v58 = vld [vmem:[%s6909_s19 + $0x4a0] sm:$0xf]  ;;  %v6708_v36 = vld [vmem:[%s6909_s19 + $0x5a4] sm:$0xf0]  ;;  %v6147_v2 = vor.u32 %v6692_v61, %v6146_v59  ;;  %v6658_v51 = vld [vmem:[%s6909_s19 + $0x414] sm:$0xf0] }
 0x379   : > { %4357 = vmatpush.bf16.msrb.mxu3 %v5939_v13  ;;  %4319 = vmatmul.bf16.vlgmr.msrb.gmra.mxu0 %v8221_v4  ;;  %v6210_v60 = vld [vmem:[%s6909_s19 + $0x5a0] sm:$0xf]  ;;  %v6010_v13 = vld [vmem:[%s6909_s19 + $0x410] sm:$0xf]  ;;  %v6690_v42 = vld [vmem:[%s6909_s19 + $0x514] sm:$0xf0] }
 0x37a   : > { %4363 = vmatpush.bf16.msra.mxu0 %v6059_v44  ;;  %4332 = vmatmul.bf16.vlgmr.msrb.gmra.mxu1 %v8233_v18  ;;  %v6676_v44 = vld [vmem:[%s6909_s19 + $0x4a4] sm:$0xf0]  ;;  %v6138_v12 = vld [vmem:[%s6909_s19 + $0x510] sm:$0xf]  ;;  %v6706_v0 = vld [vmem:[%s6909_s19 + $0x594] sm:$0xf0]  ;;  %v6011_v1 = vor.u32 %v6658_v51, %v6010_v13 }
 0x37b   : > { %4376 = vmatpush.bf16.msra.mxu1 %v6123_v62  ;;  %4345 = vmatmul.bf16.vlgmr.msrb.gmra.mxu2 %v8223_v56  ;;  %v6219_v62 = vor.u32 %v6710_v10, %v6218_v50  ;;  %v6083_v31 = vor.u32 %v6676_v44, %v6082_v58  ;;  %v6002_v17 = vld [vmem:[%s6909_s19 + $0x400] sm:$0xf]  ;;  %v6656_v40 = vld [vmem:[%s6909_s19 + $0x404] sm:$0xf0]  ;;  %v6139_v38 = vor.u32 %v6690_v42, %v6138_v12  ;;  %v6541_v28 = vld [vmem:[%s6909_s19 + $0x74] sm:$0xf] }
 0x37c   : > { %4389 = vmatpush.bf16.msra.mxu2 %v6187_v24  ;;  %4358 = vmatmul.bf16.vlgmr.msrb.gmra.mxu3 %v8231_v63  ;;  %v6019_v24 = vor.u32 %v6660_v15, %v6018_v3  ;;  %v6066_v8 = vld [vmem:[%s6909_s19 + $0x480] sm:$0xf]  ;;  %v6672_v57 = vld [vmem:[%s6909_s19 + $0x484] sm:$0xf0]  ;;  %v5548_v21 = vld [vmem:[%s6909_s19 + $0x78] sm:$0xf0] }
 0x37d   : > { %4402 = vmatpush.bf16.msra.mxu3 %v6251_v41  ;;  %v6074_v41 = vld [vmem:[%s6909_s19 + $0x490] sm:$0xf]  ;;  %v6688_v27 = vld [vmem:[%s6909_s19 + $0x504] sm:$0xf0]  ;;  %v6557_v30 = vld [vmem:[%s6909_s19 + $0xf4] sm:$0xf]  ;;  %v5551_v46 = vor.u32 %v6541_v28, %v5548_v21 }
 0x37e   : > { %4364 = vmatpush.bf16.msra.mxu0 %v6051_v47  ;;  %v6674_v47 = vld [vmem:[%s6909_s19 + $0x494] sm:$0xf0]  ;;  %v5612_v35 = vld [vmem:[%s6909_s19 + $0xf8] sm:$0xf0]  ;;  %v6194_v16 = vld [vmem:[%s6909_s19 + $0x580] sm:$0xf] }
 0x37f   : > { %4377 = vmatpush.bf16.msra.mxu1 %v6115_v5  ;;  %v6202_v5 = vld [vmem:[%s6909_s19 + $0x590] sm:$0xf]  ;;  %v2980_v55 = vld.sshfl [vmem:[#allocation1] sm:$0xff pattern:$0x73625140] }
 0x380   : > { %4390 = vmatpush.bf16.msra.mxu2 %v6179_v19  ;;  %v6211_v19 = vor.u32 %v6708_v36, %v6210_v60  ;;  %v6203_v54 = vor.u32 %v6706_v0, %v6202_v5  ;;  %v2982_v23 = vld.sshfl [vmem:[#allocation1 + $0x10] sm:$0xff pattern:$0x73625140]  ;;  %v5676_v39 = vld [vmem:[%s6909_s19 + $0x178] sm:$0xf0] }
 0x381   : > { %4403 = vmatpush.bf16.msra.mxu3 %v6243_v22  ;;  %v6130_v22 = vld [vmem:[%s6909_s19 + $0x500] sm:$0xf]  ;;  %v6573_v9 = vld [vmem:[%s6909_s19 + $0x174] sm:$0xf]  ;;  %v6732_v10 = vld [vmem:[%s6909_s19 + $0x664] sm:$0xf0]  ;;  %v8296_v3 = vpack.c.bf16 %v2982_v23, %v2982_v23 }
 0x382   : > { %4365 = vmatpush.bf16.msra.mxu0 %v6043_v26  ;;  %v6075_v26 = vor.u32 %v6674_v47, %v6074_v41  ;;  %v2981_v48 = vld.sshfl [vmem:[#allocation1 + $0x8] sm:$0xff pattern:$0x73625140]  ;;  %v2983_v7 = vld.sshfl [vmem:[#allocation1 + $0x18] sm:$0xff pattern:$0x73625140]  ;;  %v5679_v59 = vor.u32 %v6573_v9, %v5676_v39 }
 0x383   : > { %4378 = vmatpush.bf16.msra.mxu1 %v6107_v14  ;;  %v6314_v14 = vld [vmem:[%s6909_s19 + $0x670] sm:$0xf]  ;;  %v6306_v50 = vld [vmem:[%s6909_s19 + $0x660] sm:$0xf]  ;;  %v5540_v15 = vld [vmem:[%s6909_s19 + $0x68] sm:$0xf0]  ;;  %v8301_v61 = vpack.c.bf16 %v2981_v48, %v2981_v48 }
 0x384   : > { %4391 = vmatpush.bf16.msra.mxu2 %v6171_v43  ;;  %v6734_v43 = vld [vmem:[%s6909_s19 + $0x674] sm:$0xf0]  ;;  %v6555_v58 = vld [vmem:[%s6909_s19 + $0xe4] sm:$0xf]  ;;  %v5604_v44 = vld [vmem:[%s6909_s19 + $0xe8] sm:$0xf0] }
 0x385   : > { %4404 = vmatpush.bf16.msra.mxu3 %v6235_v29  ;;  %v6704_v29 = vld [vmem:[%s6909_s19 + $0x584] sm:$0xf0]  ;;  %v6315_v37 = vor.u32 %v6734_v43, %v6314_v14  ;;  %v6571_v60 = vld [vmem:[%s6909_s19 + $0x164] sm:$0xf]  ;;  %v5668_v36 = vld [vmem:[%s6909_s19 + $0x168] sm:$0xf0] }
 0x386   : > { %4366 = vmatpush.bf16.msra.mxu0 %v6035_v33  ;;  %v6003_v33 = vor.u32 %v6656_v40, %v6002_v17  ;;  %v6730_v51 = vld [vmem:[%s6909_s19 + $0x654] sm:$0xf0]  ;;  %v6537_v41 = vld [vmem:[%s6909_s19 + $0x54] sm:$0xf]  ;;  %v5532_v47 = vld [vmem:[%s6909_s19 + $0x58] sm:$0xf0]  ;;  %v5671_v5 = vor.u32 %v6571_v60, %v5668_v36 }
 0x387   : > { %4379 = vmatpush.bf16.msra.mxu1 %v6099_v32  ;;  %v6067_v32 = vor.u32 %v6672_v57, %v6066_v8  ;;  %v6553_v12 = vld [vmem:[%s6909_s19 + $0xd4] sm:$0xf]  ;;  %v5596_v42 = vld [vmem:[%s6909_s19 + $0xd8] sm:$0xf0]  ;;  %v5535_v40 = vor.u32 %v6537_v41, %v5532_v47  ;;  %v6290_v8 = vld [vmem:[%s6909_s19 + $0x640] sm:$0xf] }
 0x388   : > { %4392 = vmatpush.bf16.msra.mxu2 %v6163_v34  ;;  %v6131_v34 = vor.u32 %v6688_v27, %v6130_v22  ;;  %v6569_v0 = vld [vmem:[%s6909_s19 + $0x154] sm:$0xf]  ;;  %v5660_v17 = vld [vmem:[%s6909_s19 + $0x158] sm:$0xf0]  ;;  %v6728_v57 = vld [vmem:[%s6909_s19 + $0x644] sm:$0xf0] }
 0x389   : > { %4405 = vmatpush.bf16.msra.mxu3 %v6227_v49  ;;  %v5615_v49 = vor.u32 %v6557_v30, %v5612_v35  ;;  %v6535_v22 = vld [vmem:[%s6909_s19 + $0x44] sm:$0xf]  ;;  %v5588_v27 = vld [vmem:[%s6909_s19 + $0xc8] sm:$0xf0]  ;;  %v5663_v14 = vor.u32 %v6569_v0, %v5660_v17  ;;  %v6291_v43 = vor.u32 %v6728_v57, %v6290_v8  ;;  %v6282_v35 = vld [vmem:[%s6909_s19 + $0x630] sm:$0xf] }
 0x38a   : > { %4367 = vmatpush.bf16.msra.mxu0 %v6027_v20  ;;  %v6195_v20 = vor.u32 %v6704_v29, %v6194_v16  ;;  %v6567_v28 = vld [vmem:[%s6909_s19 + $0x144] sm:$0xf]  ;;  %v5652_v21 = vld [vmem:[%s6909_s19 + $0x148] sm:$0xf0]  ;;  %v6726_v16 = vld [vmem:[%s6909_s19 + $0x634] sm:$0xf0] }
 0x38b   : > { %4380 = vmatpush.bf16.msra.mxu1 %v6091_v52  ;;  %v6539_v52 = vld [vmem:[%s6909_s19 + $0x64] sm:$0xf]  ;;  %v6533_v29 = vld [vmem:[%s6909_s19 + $0x34] sm:$0xf]  ;;  %v5580_v23 = vld [vmem:[%s6909_s19 + $0xb8] sm:$0xf0] }
 0x38c   : > { %4393 = vmatpush.bf16.msra.mxu2 %v6155_v45  ;;  %v8294_v45 = vpack.c.bf16 %v2980_v55, %v2980_v55  ;;  %v5543_v13 = vor.u32 %v6539_v52, %v5540_v15  ;;  %v6549_v55 = vld [vmem:[%s6909_s19 + $0xb4] sm:$0xf]  ;;  %v5644_v39 = vld [vmem:[%s6909_s19 + $0x138] sm:$0xf0]  ;;  %v6274_v48 = vld [vmem:[%s6909_s19 + $0x620] sm:$0xf] }
 0x38d   : > { %4406 = vmatpush.bf16.msra.mxu3 %v6219_v62  ;;  %v8303_v62 = vpack.c.bf16 %v2983_v7, %v2983_v7  ;;  %v6565_v9 = vld [vmem:[%s6909_s19 + $0x134] sm:$0xf]  ;;  %v6724_v7 = vld [vmem:[%s6909_s19 + $0x624] sm:$0xf0]  ;;  %v6266_v60 = vld [vmem:[%s6909_s19 + $0x610] sm:$0xf] }
 0x38e   : > { %4368 = vmatpush.bf16.msra.mxu0 %v6019_v24  ;;  %v6307_v24 = vor.u32 %v6732_v10, %v6306_v50  ;;  %v6547_v50 = vld [vmem:[%s6909_s19 + $0xa4] sm:$0xf]  ;;  %v5572_v10 = vld [vmem:[%s6909_s19 + $0xa8] sm:$0xf0]  ;;  %v5647_v52 = vor.u32 %v6565_v9, %v5644_v39  ;;  %v6275_v15 = vor.u32 %v6724_v7, %v6274_v48  ;;  %v6722_v36 = vld [vmem:[%s6909_s19 + $0x614] sm:$0xf0] }
 0x38f   : > { %4381 = vmatpush.bf16.msra.mxu1 %v6083_v31  ;;  %v5607_v31 = vor.u32 %v6555_v58, %v5604_v44  ;;  %v6563_v58 = vld [vmem:[%s6909_s19 + $0x124] sm:$0xf]  ;;  %v5636_v44 = vld [vmem:[%s6909_s19 + $0x128] sm:$0xf0]  ;;  %v6561_v47 = vld [vmem:[%s6909_s19 + $0x114] sm:$0xf] }
 0x390   : > { %4394 = vmatpush.bf16.msra.mxu2 %v6147_v2  ;;  %v6298_v2 = vld [vmem:[%s6909_s19 + $0x650] sm:$0xf]  ;;  %v5639_v41 = vor.u32 %v6563_v58, %v5636_v44  ;;  %v6527_v0 = vld [vmem:[%s6909_s19 + $0x4] sm:$0xf]  ;;  %v5492_v17 = vld [vmem:[%s6909_s19 + $0x8] sm:$0xf0] }
 0x391   : > { %4407 = vmatpush.bf16.msra.mxu3 %v6211_v19  ;;  %v6299_v19 = vor.u32 %v6730_v51, %v6298_v2  ;;  %v6545_v2 = vld [vmem:[%s6909_s19 + $0x94] sm:$0xf]  ;;  %v5564_v51 = vld [vmem:[%s6909_s19 + $0x98] sm:$0xf0]  ;;  %v6543_v8 = vld [vmem:[%s6909_s19 + $0x84] sm:$0xf] }
 0x392   : > { %4369 = vmatpush.bf16.msra.mxu0 %v6011_v1  ;;  %v5599_v1 = vor.u32 %v6553_v12, %v5596_v42  ;;  %v5628_v12 = vld [vmem:[%s6909_s19 + $0x118] sm:$0xf0]  ;;  %v6258_v42 = vld [vmem:[%s6909_s19 + $0x600] sm:$0xf]  ;;  %v5556_v57 = vld [vmem:[%s6909_s19 + $0x88] sm:$0xf0] }
 0x393   : > { %4382 = vmatpush.bf16.msra.mxu1 %v6075_v26  ;;  %v5524_v26 = vld [vmem:[%s6909_s19 + $0x48] sm:$0xf0]  ;;  %v6585_v44 = vld [vmem:[%s6909_s19 + $0x1d4] sm:$0xf] }
 0x394   : > { %4395 = vmatpush.bf16.msra.mxu2 %v6139_v38  ;;  %v6551_v38 = vld [vmem:[%s6909_s19 + $0xc4] sm:$0xf]  ;;  %v5527_v30 = vor.u32 %v6535_v22, %v5524_v26  ;;  %v6589_v22 = vld [vmem:[%s6909_s19 + $0x1f4] sm:$0xf]  ;;  %v5740_v26 = vld [vmem:[%s6909_s19 + $0x1f8] sm:$0xf0] }
 0x395   : > { %4408 = vmatpush.bf16.msra.mxu3 %v6203_v54  ;;  %v5591_v54 = vor.u32 %v6551_v38, %v5588_v27  ;;  %v6605_v38 = vld [vmem:[%s6909_s19 + $0x274] sm:$0xf]  ;;  %v5804_v27 = vld [vmem:[%s6909_s19 + $0x278] sm:$0xf0]  ;;  %v5796_v48 = vld [vmem:[%s6909_s19 + $0x268] sm:$0xf0] }
 0x396   : > { %4370 = vmatpush.bf16.msra.mxu0 %v6003_v33  ;;  %v5516_v33 = vld [vmem:[%s6909_s19 + $0x38] sm:$0xf0] }
 0x397   : > { %4383 = vmatpush.bf16.msra.mxu1 %v6067_v32  ;;  %v5655_v32 = vor.u32 %v6567_v28, %v5652_v21  ;;  %v5868_v28 = vld [vmem:[%s6909_s19 + $0x2f8] sm:$0xf0]  ;;  %v6559_v21 = vld [vmem:[%s6909_s19 + $0x104] sm:$0xf] }
 0x398   : > { %4396 = vmatpush.bf16.msra.mxu2 %v6131_v34  ;;  %v6283_v34 = vor.u32 %v6726_v16, %v6282_v35  ;;  %v2984_v35 = vld.sshfl [vmem:[#allocation1 + $0x20] sm:$0xff pattern:$0x73625140]  ;;  %v5495_v16 = vor.u32 %v6527_v0, %v5492_v17  ;;  %v5780_v17 = vld [vmem:[%s6909_s19 + $0x248] sm:$0xf0] }
 0x399   : > { %4409 = vmatpush.bf16.msra.mxu3 %v6195_v20  ;;  %4371 = vmatmul.bf16.vlgmr.msra.gmra.mxu0 %v8294_v45  ;;  %v5508_v20 = vld [vmem:[%s6909_s19 + $0x28] sm:$0xf0]  ;;  %v8371_v7 = vpack.c.bf16 %v2984_v35, %v2984_v35  ;;  %v6599_v0 = vld [vmem:[%s6909_s19 + $0x244] sm:$0xf] }
 0x39a   : > { %4415 = vmatpush.bf16.msrb.mxu0 %v6315_v37  ;;  %4384 = vmatmul.bf16.vlgmr.msra.gmra.mxu1 %v8301_v61  ;;  %v5519_v37 = vor.u32 %v6533_v29, %v5516_v33  ;;  %v5559_v29 = vor.u32 %v6543_v8, %v5556_v57  ;;  %v6637_v33 = vld [vmem:[%s6909_s19 + $0x374] sm:$0xf]  ;;  %v5908_v8 = vld [vmem:[%s6909_s19 + $0x348] sm:$0xf0] }
 0x39b   : > { %4428 = vmatpush.bf16.msrb.mxu1 %v5551_v46  ;;  %4397 = vmatmul.bf16.vlgmr.msra.gmra.mxu2 %v8296_v3  ;;  %v5583_v46 = vor.u32 %v6549_v55, %v5580_v23  ;;  %v5932_v55 = vld [vmem:[%s6909_s19 + $0x378] sm:$0xf0]  ;;  %v5743_v23 = vor.u32 %v6589_v22, %v5740_v26  ;;  %v5783_v22 = vor.u32 %v6599_v0, %v5780_v17  ;;  %v6581_v26 = vld [vmem:[%s6909_s19 + $0x1b4] sm:$0xf] }
 0x39c   : > { %4441 = vmatpush.bf16.msrb.mxu2 %v5615_v49  ;;  %4410 = vmatmul.bf16.vlgmr.msra.gmra.mxu3 %v8303_v62  ;;  %v6531_v49 = vld [vmem:[%s6909_s19 + $0x24] sm:$0xf]  ;;  %v5996_v0 = vld [vmem:[%s6909_s19 + $0x3f8] sm:$0xf0]  ;;  %v6669_v17 = vld [vmem:[%s6909_s19 + $0x474] sm:$0xf] }
 0x39d   : > { %4454 = vmatpush.bf16.msrb.mxu3 %v5679_v59  ;;  %v5511_v59 = vor.u32 %v6531_v49, %v5508_v20  ;;  %v5935_v49 = vor.u32 %v6637_v33, %v5932_v55  ;;  %v6619_v20 = vld [vmem:[%s6909_s19 + $0x2e4] sm:$0xf]  ;;  %v5700_v55 = vld [vmem:[%s6909_s19 + $0x1a8] sm:$0xf0] }
 0x39e   : > { %4416 = vmatpush.bf16.msrb.mxu0 %v6307_v24  ;;  %v5575_v24 = vor.u32 %v6547_v50, %v5572_v10  ;;  %v5860_v50 = vld [vmem:[%s6909_s19 + $0x2e8] sm:$0xf0]  ;;  %v6635_v10 = vld [vmem:[%s6909_s19 + $0x364] sm:$0xf] }
 0x39f   : > { %4429 = vmatpush.bf16.msrb.mxu1 %v5543_v13  ;;  %v6529_v13 = vld [vmem:[%s6909_s19 + $0x14] sm:$0xf] }
 0x3a0   : > { %4442 = vmatpush.bf16.msrb.mxu2 %v5607_v31  ;;  %v5500_v31 = vld [vmem:[%s6909_s19 + $0x18] sm:$0xf0] }
 0x3a1   : > { %4455 = vmatpush.bf16.msrb.mxu3 %v5671_v5  ;;  %v6267_v5 = vor.u32 %v6722_v36, %v6266_v60  ;;  %v6601_v60 = vld [vmem:[%s6909_s19 + $0x254] sm:$0xf]  ;;  %v5788_v36 = vld [vmem:[%s6909_s19 + $0x258] sm:$0xf0] }
 0x3a2   : > { %4417 = vmatpush.bf16.msrb.mxu0 %v6299_v19  ;;  %v6720_v19 = vld [vmem:[%s6909_s19 + $0x604] sm:$0xf0] }
 0x3a3   : > { %4430 = vmatpush.bf16.msrb.mxu1 %v5535_v40  ;;  %v5503_v40 = vor.u32 %v6529_v13, %v5500_v31  ;;  %v6617_v31 = vld [vmem:[%s6909_s19 + $0x2d4] sm:$0xf] }
 0x3a4   : > { %4443 = vmatpush.bf16.msrb.mxu2 %v5599_v1  ;;  %v5567_v1 = vor.u32 %v6545_v2, %v5564_v51  ;;  %v5852_v2 = vld [vmem:[%s6909_s19 + $0x2d8] sm:$0xf0]  ;;  %v6633_v51 = vld [vmem:[%s6909_s19 + $0x354] sm:$0xf] }
 0x3a5   : > { %4456 = vmatpush.bf16.msrb.mxu3 %v5663_v14  ;;  %v5631_v14 = vor.u32 %v6561_v47, %v5628_v12  ;;  %v5791_v12 = vor.u32 %v6601_v60, %v5788_v36  ;;  %v5884_v60 = vld [vmem:[%s6909_s19 + $0x318] sm:$0xf0] }
 0x3a6   : > { %4418 = vmatpush.bf16.msrb.mxu0 %v6291_v43  ;;  %v6621_v43 = vld [vmem:[%s6909_s19 + $0x2f4] sm:$0xf] }
 0x3a7   : > { %4431 = vmatpush.bf16.msrb.mxu1 %v5527_v30  ;;  %v6259_v30 = vor.u32 %v6720_v19, %v6258_v42  ;;  %v5871_v9 = vor.u32 %v6621_v43, %v5868_v28  ;;  %v6583_v42 = vld [vmem:[%s6909_s19 + $0x1c4] sm:$0xf]  ;;  %v5716_v19 = vld [vmem:[%s6909_s19 + $0x1c8] sm:$0xf0]  ;;  %v6613_v28 = vld [vmem:[%s6909_s19 + $0x2b4] sm:$0xf] }
 0x3a8   : > { %4444 = vmatpush.bf16.msrb.mxu2 %v5591_v54  ;;  %v5620_v54 = vld [vmem:[%s6909_s19 + $0x108] sm:$0xf0]  ;;  %v5719_v57 = vor.u32 %v6583_v42, %v5716_v19  ;;  %v6653_v19 = vld [vmem:[%s6909_s19 + $0x3f4] sm:$0xf] }
 0x3a9   : > { %4457 = vmatpush.bf16.msrb.mxu3 %v5655_v32  ;;  %v5807_v32 = vor.u32 %v6605_v38, %v5804_v27  ;;  %v5623_v39 = vor.u32 %v6559_v21, %v5620_v54  ;;  %v6597_v27 = vld [vmem:[%s6909_s19 + $0x234] sm:$0xf]  ;;  %v5836_v21 = vld [vmem:[%s6909_s19 + $0x2b8] sm:$0xf0]  ;;  %v5812_v42 = vld [vmem:[%s6909_s19 + $0x288] sm:$0xf0] }
 0x3aa   : > { %4419 = vmatpush.bf16.msrb.mxu0 %v6283_v34  ;;  %v6587_v34 = vld [vmem:[%s6909_s19 + $0x1e4] sm:$0xf]  ;;  %v5900_v54 = vld [vmem:[%s6909_s19 + $0x338] sm:$0xf0]  ;;  %v5839_v33 = vor.u32 %v6613_v28, %v5836_v21  ;;  %v5988_v21 = vld [vmem:[%s6909_s19 + $0x3e8] sm:$0xf0] }
 0x3ab   : > { %4432 = vmatpush.bf16.msrb.mxu1 %v5519_v37  ;;  %v5732_v37 = vld [vmem:[%s6909_s19 + $0x1e8] sm:$0xf0]  ;;  %v6651_v28 = vld [vmem:[%s6909_s19 + $0x3e4] sm:$0xf] }
 0x3ac   : > { %4445 = vmatpush.bf16.msrb.mxu2 %v5583_v46  ;;  %v6603_v46 = vld [vmem:[%s6909_s19 + $0x264] sm:$0xf] }
 0x3ad   : > { %4458 = vmatpush.bf16.msrb.mxu3 %v5647_v52  ;;  %v5924_v52 = vld [vmem:[%s6909_s19 + $0x368] sm:$0xf0]  ;;  %v5799_v58 = vor.u32 %v6603_v46, %v5796_v48 }
 0x3ae   : > { %4420 = vmatpush.bf16.msrb.mxu0 %v6275_v15  ;;  %v5735_v15 = vor.u32 %v6587_v34, %v5732_v37  ;;  %v5927_v13 = vor.u32 %v6635_v10, %v5924_v52  ;;  %v6627_v37 = vld [vmem:[%s6909_s19 + $0x324] sm:$0xf]  ;;  %v5892_v46 = vld [vmem:[%s6909_s19 + $0x328] sm:$0xf0]  ;;  %v5692_v10 = vld [vmem:[%s6909_s19 + $0x198] sm:$0xf0] }
 0x3af   : > { %4433 = vmatpush.bf16.msrb.mxu1 %v5511_v59  ;;  %v5863_v59 = vor.u32 %v6619_v20, %v5860_v50  ;;  %v6577_v20 = vld [vmem:[%s6909_s19 + $0x194] sm:$0xf] }
 0x3b0   : > { %4446 = vmatpush.bf16.msrb.mxu2 %v5575_v24  ;;  %v5724_v24 = vld [vmem:[%s6909_s19 + $0x1d8] sm:$0xf0]  ;;  %v6593_v52 = vld [vmem:[%s6909_s19 + $0x214] sm:$0xf]  ;;  %v5695_v36 = vor.u32 %v6577_v20, %v5692_v10 }
 0x3b1   : > { %4459 = vmatpush.bf16.msrb.mxu3 %v5639_v41  ;;  %v5916_v41 = vld [vmem:[%s6909_s19 + $0x358] sm:$0xf0]  ;;  %v5727_v47 = vor.u32 %v6585_v44, %v5724_v24  ;;  %v6609_v44 = vld [vmem:[%s6909_s19 + $0x294] sm:$0xf] }
 0x3b2   : > { %4421 = vmatpush.bf16.msrb.mxu0 %v6267_v5  ;;  %v5855_v5 = vor.u32 %v6617_v31, %v5852_v2  ;;  %v6625_v24 = vld [vmem:[%s6909_s19 + $0x314] sm:$0xf]  ;;  %v6575_v31 = vld [vmem:[%s6909_s19 + $0x184] sm:$0xf]  ;;  %v5684_v2 = vld [vmem:[%s6909_s19 + $0x188] sm:$0xf0] }
 0x3b3   : > { %4434 = vmatpush.bf16.msrb.mxu1 %v5503_v40  ;;  %v5844_v40 = vld [vmem:[%s6909_s19 + $0x2c8] sm:$0xf0]  ;;  %v6108_v20 = vld [vmem:[%s6909_s19 + $0x4d8] sm:$0xf0] }
 0x3b4   : > { %4447 = vmatpush.bf16.msrb.mxu2 %v5567_v1  ;;  %v6631_v1 = vld [vmem:[%s6909_s19 + $0x344] sm:$0xf] }
 0x3b5   : > { %4460 = vmatpush.bf16.msrb.mxu3 %v5631_v14  ;;  %v5772_v14 = vld [vmem:[%s6909_s19 + $0x238] sm:$0xf0]  ;;  %v5911_v43 = vor.u32 %v6631_v1, %v5908_v8  ;;  %v5687_v1 = vor.u32 %v6575_v31, %v5684_v2  ;;  %v6695_v31 = vld [vmem:[%s6909_s19 + $0x544] sm:$0xf]  ;;  %v6164_v2 = vld [vmem:[%s6909_s19 + $0x548] sm:$0xf0] }
 0x3b6   : > { %4422 = vmatpush.bf16.msrb.mxu0 %v6259_v30  ;;  %v6629_v30 = vld [vmem:[%s6909_s19 + $0x334] sm:$0xf] }
 0x3b7   : > { %4435 = vmatpush.bf16.msrb.mxu1 %v5495_v16  ;;  %v5775_v16 = vor.u32 %v6597_v27, %v5772_v14  ;;  %v5903_v34 = vor.u32 %v6629_v30, %v5900_v54  ;;  %v6188_v27 = vld [vmem:[%s6909_s19 + $0x578] sm:$0xf0]  ;;  %v6667_v30 = vld [vmem:[%s6909_s19 + $0x464] sm:$0xf] }
 0x3b8   : > { %4448 = vmatpush.bf16.msrb.mxu2 %v5559_v29  ;;  %v6579_v29 = vld [vmem:[%s6909_s19 + $0x1a4] sm:$0xf] }
 0x3b9   : > { %4461 = vmatpush.bf16.msrb.mxu3 %v5623_v39  ;;  %4423 = vmatmul.bf16.vlgmr.msrb.gmra.mxu0 %v8371_v7  ;;  %v5828_v39 = vld [vmem:[%s6909_s19 + $0x2a8] sm:$0xf0]  ;;  %v5703_v48 = vor.u32 %v6579_v29, %v5700_v55  ;;  %v5991_v55 = vor.u32 %v6651_v28, %v5988_v21 }
 0x3ba   : > { %4467 = vmatpush.bf16.msra.mxu0 %v5743_v23  ;;  %4436 = vmatmul.bf16.vlgmr.msrb.gmra.mxu1 %v8175_v6  ;;  %v5919_v6 = vor.u32 %v6633_v51, %v5916_v41  ;;  %v6595_v23 = vld [vmem:[%s6909_s19 + $0x224] sm:$0xf]  ;;  %v6116_v29 = vld [vmem:[%s6909_s19 + $0x4e8] sm:$0xf0] }
 0x3bb   : > { %4480 = vmatpush.bf16.msra.mxu1 %v5807_v32  ;;  %4449 = vmatmul.bf16.vlgmr.msrb.gmra.mxu2 %v8181_v25  ;;  %v6615_v25 = vld [vmem:[%s6909_s19 + $0x2c4] sm:$0xf]  ;;  %v5764_v32 = vld [vmem:[%s6909_s19 + $0x228] sm:$0xf0] }
 0x3bc   : > { %4493 = vmatpush.bf16.msra.mxu2 %v5871_v9  ;;  %4462 = vmatmul.bf16.vlgmr.msrb.gmra.mxu3 %v8173_v11  ;;  %v5847_v38 = vor.u32 %v6615_v25, %v5844_v40  ;;  %v5708_v11 = vld [vmem:[%s6909_s19 + $0x1b8] sm:$0xf0]  ;;  %v6611_v9 = vld [vmem:[%s6909_s19 + $0x2a4] sm:$0xf]  ;;  %v6685_v25 = vld [vmem:[%s6909_s19 + $0x4f4] sm:$0xf] }
 0x3bd   : > { %4506 = vmatpush.bf16.msra.mxu3 %v5935_v49  ;;  %v5711_v35 = vor.u32 %v6581_v26, %v5708_v11  ;;  %v5767_v49 = vor.u32 %v6595_v23, %v5764_v32  ;;  %v5831_v50 = vor.u32 %v6611_v9, %v5828_v39  ;;  %v6591_v51 = vld [vmem:[%s6909_s19 + $0x204] sm:$0xf]  ;;  %v6124_v40 = vld [vmem:[%s6909_s19 + $0x4f8] sm:$0xf0]  ;;  %v6701_v11 = vld [vmem:[%s6909_s19 + $0x574] sm:$0xf] }
 0x3be   : > { %4468 = vmatpush.bf16.msra.mxu0 %v5735_v15  ;;  %v5756_v15 = vld [vmem:[%s6909_s19 + $0x218] sm:$0xf0]  ;;  %v6699_v23 = vld [vmem:[%s6909_s19 + $0x564] sm:$0xf]  ;;  %v6180_v32 = vld [vmem:[%s6909_s19 + $0x568] sm:$0xf0] }
 0x3bf   : > { %4481 = vmatpush.bf16.msra.mxu1 %v5799_v58  ;;  %v5895_v58 = vor.u32 %v6627_v37, %v5892_v46  ;;  %v6649_v39 = vld [vmem:[%s6909_s19 + $0x3d4] sm:$0xf]  ;;  %v5980_v37 = vld [vmem:[%s6909_s19 + $0x3d8] sm:$0xf0]  ;;  %v6148_v28 = vld [vmem:[%s6909_s19 + $0x528] sm:$0xf0] }
 0x3c0   : > { %4494 = vmatpush.bf16.msra.mxu2 %v5863_v59  ;;  %v5820_v59 = vld [vmem:[%s6909_s19 + $0x298] sm:$0xf0]  ;;  %v6665_v46 = vld [vmem:[%s6909_s19 + $0x454] sm:$0xf]  ;;  %v5983_v10 = vor.u32 %v6649_v39, %v5980_v37  ;;  %v6639_v39 = vld [vmem:[%s6909_s19 + $0x384] sm:$0xf] }
 0x3c1   : > { %4507 = vmatpush.bf16.msra.mxu3 %v5927_v13  ;;  %v5759_v13 = vor.u32 %v6593_v52, %v5756_v15  ;;  %v5823_v41 = vor.u32 %v6609_v44, %v5820_v59  ;;  %v6697_v52 = vld [vmem:[%s6909_s19 + $0x554] sm:$0xf]  ;;  %v6172_v15 = vld [vmem:[%s6909_s19 + $0x558] sm:$0xf0]  ;;  %v6647_v44 = vld [vmem:[%s6909_s19 + $0x3c4] sm:$0xf] }
 0x3c2   : > { %4469 = vmatpush.bf16.msra.mxu0 %v5727_v47  ;;  %v5748_v47 = vld [vmem:[%s6909_s19 + $0x208] sm:$0xf0] }
 0x3c3   : > { %4482 = vmatpush.bf16.msra.mxu1 %v5791_v12  ;;  %v6607_v12 = vld [vmem:[%s6909_s19 + $0x284] sm:$0xf]  ;;  %v5751_v8 = vor.u32 %v6591_v51, %v5748_v47  ;;  %v5972_v59 = vld [vmem:[%s6909_s19 + $0x3c8] sm:$0xf0]  ;;  %v5964_v47 = vld [vmem:[%s6909_s19 + $0x3b8] sm:$0xf0] }
 0x3c4   : > { %4495 = vmatpush.bf16.msra.mxu2 %v5855_v5  ;;  %v5887_v5 = vor.u32 %v6625_v24, %v5884_v60  ;;  %v5815_v26 = vor.u32 %v6607_v12, %v5812_v42  ;;  %v6663_v24 = vld [vmem:[%s6909_s19 + $0x444] sm:$0xf]  ;;  %v6100_v60 = vld [vmem:[%s6909_s19 + $0x4c8] sm:$0xf0]  ;;  %v6661_v12 = vld [vmem:[%s6909_s19 + $0x434] sm:$0xf] }
 0x3c5   : > { %4508 = vmatpush.bf16.msra.mxu3 %v5919_v6  ;;  %v6060_v6 = vld [vmem:[%s6909_s19 + $0x478] sm:$0xf0] }
 0x3c6   : > { %4470 = vmatpush.bf16.msra.mxu0 %v5719_v57  ;;  %v6623_v57 = vld [vmem:[%s6909_s19 + $0x304] sm:$0xf]  ;;  %v6063_v14 = vor.u32 %v6669_v17, %v6060_v6  ;;  %v6028_v42 = vld [vmem:[%s6909_s19 + $0x438] sm:$0xf0]  ;;  %v6693_v6 = vld [vmem:[%s6909_s19 + $0x534] sm:$0xf] }
 0x3c7   : > { %4483 = vmatpush.bf16.msra.mxu1 %v5783_v22  ;;  %v5876_v22 = vld [vmem:[%s6909_s19 + $0x308] sm:$0xf0] }
 0x3c8   : > { %4496 = vmatpush.bf16.msra.mxu2 %v5847_v38  ;;  %v5999_v38 = vor.u32 %v6653_v19, %v5996_v0  ;;  %v5879_v54 = vor.u32 %v6623_v57, %v5876_v22  ;;  %v6092_v19 = vld [vmem:[%s6909_s19 + $0x4b8] sm:$0xf0]  ;;  %v6167_v0 = vor.u32 %v6695_v31, %v6164_v2  ;;  %v5956_v57 = vld [vmem:[%s6909_s19 + $0x3a8] sm:$0xf0]  ;;  %v6659_v22 = vld [vmem:[%s6909_s19 + $0x424] sm:$0xf] }
 0x3c9   : > { %4509 = vmatpush.bf16.msra.mxu3 %v5911_v43  ;;  %v6127_v43 = vor.u32 %v6685_v25, %v6124_v40  ;;  %v6156_v25 = vld [vmem:[%s6909_s19 + $0x538] sm:$0xf0]  ;;  %v6031_v40 = vor.u32 %v6661_v12, %v6028_v42  ;;  %v6731_v42 = vld [vmem:[%s6909_s19 + $0x664] sm:$0xf] }
 0x3ca   : > { %4471 = vmatpush.bf16.msra.mxu0 %v5711_v35  ;;  %v6052_v35 = vld [vmem:[%s6909_s19 + $0x468] sm:$0xf0] }
 0x3cb   : > { %4484 = vmatpush.bf16.msra.mxu1 %v5775_v16  ;;  %v6683_v16 = vld [vmem:[%s6909_s19 + $0x4e4] sm:$0xf] }
 0x3cc   : > { %4497 = vmatpush.bf16.msra.mxu2 %v5839_v33  ;;  %v6191_v33 = vor.u32 %v6701_v11, %v6188_v27  ;;  %v6119_v9 = vor.u32 %v6683_v16, %v6116_v29  ;;  %v6084_v11 = vld [vmem:[%s6909_s19 + $0x4a8] sm:$0xf0]  ;;  %v6159_v27 = vor.u32 %v6693_v6, %v6156_v25  ;;  %v6657_v16 = vld [vmem:[%s6909_s19 + $0x414] sm:$0xf]  ;;  %v6012_v29 = vld [vmem:[%s6909_s19 + $0x418] sm:$0xf0] }
 0x3cd   : > { %4510 = vmatpush.bf16.msra.mxu3 %v5903_v34  ;;  %v6055_v34 = vor.u32 %v6667_v30, %v6052_v35  ;;  %v5948_v35 = vld [vmem:[%s6909_s19 + $0x398] sm:$0xf0]  ;;  %v6015_v37 = vor.u32 %v6657_v16, %v6012_v29  ;;  %v6725_v16 = vld [vmem:[%s6909_s19 + $0x634] sm:$0xf] }
 0x3ce   : > { %4472 = vmatpush.bf16.msra.mxu0 %v5703_v48  ;;  %v6044_v48 = vld [vmem:[%s6909_s19 + $0x458] sm:$0xf0] }
 0x3cf   : > { %4485 = vmatpush.bf16.msra.mxu1 %v5767_v49  ;;  %v6681_v49 = vld [vmem:[%s6909_s19 + $0x4d4] sm:$0xf]  ;;  %v6284_v29 = vld [vmem:[%s6909_s19 + $0x638] sm:$0xf0] }
 0x3d0   : > { %4498 = vmatpush.bf16.msra.mxu2 %v5831_v50  ;;  %v6183_v50 = vor.u32 %v6699_v23, %v6180_v32 }
 0x3d1   : > { %4511 = vmatpush.bf16.msra.mxu3 %v5895_v58  ;;  %v6111_v58 = vor.u32 %v6681_v49, %v6108_v20  ;;  %v6655_v49 = vld [vmem:[%s6909_s19 + $0x404] sm:$0xf]  ;;  %v6004_v20 = vld [vmem:[%s6909_s19 + $0x408] sm:$0xf0] }
 0x3d2   : > { %4473 = vmatpush.bf16.msra.mxu0 %v5695_v36  ;;  %v6175_v36 = vor.u32 %v6697_v52, %v6172_v15  ;;  %v6068_v52 = vld [vmem:[%s6909_s19 + $0x488] sm:$0xf0]  ;;  %v6717_v15 = vld [vmem:[%s6909_s19 + $0x5f4] sm:$0xf] }
 0x3d3   : > { %4486 = vmatpush.bf16.msra.mxu1 %v5759_v13  ;;  %v5975_v13 = vor.u32 %v6647_v44, %v5972_v59  ;;  %v6733_v44 = vld [vmem:[%s6909_s19 + $0x674] sm:$0xf]  ;;  %v6316_v59 = vld [vmem:[%s6909_s19 + $0x678] sm:$0xf0] }
 0x3d4   : > { %4499 = vmatpush.bf16.msra.mxu2 %v5823_v41  ;;  %v6319_v2 = vor.u32 %v6733_v44, %v6316_v59 }
 0x3d5   : > { %4512 = vmatpush.bf16.msra.mxu3 %v5887_v5  ;;  %v6677_v5 = vld [vmem:[%s6909_s19 + $0x4b4] sm:$0xf] }
 0x3d6   : > { %4474 = vmatpush.bf16.msra.mxu0 %v5687_v1  ;;  %v6095_v1 = vor.u32 %v6677_v5, %v6092_v19  ;;  %v6308_v5 = vld [vmem:[%s6909_s19 + $0x668] sm:$0xf0] }
 0x3d7   : > { %4487 = vmatpush.bf16.msra.mxu1 %v5751_v8  ;;  %v6643_v8 = vld [vmem:[%s6909_s19 + $0x3a4] sm:$0xf]  ;;  %v6311_v25 = vor.u32 %v6731_v42, %v6308_v5 }
 0x3d8   : > { %4500 = vmatpush.bf16.msra.mxu2 %v5815_v26  ;;  %v6020_v26 = vld [vmem:[%s6909_s19 + $0x428] sm:$0xf0] }
 0x3d9   : > { %4513 = vmatpush.bf16.msra.mxu3 %v5879_v54  ;;  %4475 = vmatmul.bf16.vlgmr.msra.gmra.mxu0 %v8177_v53  ;;  %v6047_v53 = vor.u32 %v6665_v46, %v6044_v48  ;;  %v6023_v21 = vor.u32 %v6659_v22, %v6020_v26  ;;  %v6641_v54 = vld [vmem:[%s6909_s19 + $0x394] sm:$0xf]  ;;  %v5940_v48 = vld [vmem:[%s6909_s19 + $0x388] sm:$0xf0]  ;;  %v6300_v22 = vld [vmem:[%s6909_s19 + $0x658] sm:$0xf0] }
 0x3da   : > { %4519 = vmatpush.bf16.msrb.mxu0 %v5999_v38  ;;  %4488 = vmatmul.bf16.vlgmr.msra.gmra.mxu1 %v8221_v4  ;;  %v6679_v4 = vld [vmem:[%s6909_s19 + $0x4c4] sm:$0xf]  ;;  %v5951_v32 = vor.u32 %v6641_v54, %v5948_v35  ;;  %v6709_v54 = vld [vmem:[%s6909_s19 + $0x5b4] sm:$0xf]  ;;  %v6220_v35 = vld [vmem:[%s6909_s19 + $0x5b8] sm:$0xf0] }
 0x3db   : > { %4532 = vmatpush.bf16.msrb.mxu1 %v6063_v14  ;;  %4501 = vmatmul.bf16.vlgmr.msra.gmra.mxu2 %v8233_v18  ;;  %v6036_v18 = vld [vmem:[%s6909_s19 + $0x448] sm:$0xf0]  ;;  %v6103_v41 = vor.u32 %v6679_v4, %v6100_v60  ;;  %v6675_v38 = vld [vmem:[%s6909_s19 + $0x4a4] sm:$0xf]  ;;  %v5959_v14 = vor.u32 %v6643_v8, %v5956_v57  ;;  %v6007_v60 = vor.u32 %v6655_v49, %v6004_v20  ;;  %v6236_v8 = vld [vmem:[%s6909_s19 + $0x5d8] sm:$0xf0] }
 0x3dc   : > { %4545 = vmatpush.bf16.msrb.mxu2 %v6127_v43  ;;  %4514 = vmatmul.bf16.vlgmr.msra.gmra.mxu3 %v8223_v56  ;;  %v6039_v51 = vor.u32 %v6663_v24, %v6036_v18  ;;  %v6645_v56 = vld [vmem:[%s6909_s19 + $0x3b4] sm:$0xf]  ;;  %v6691_v43 = vld [vmem:[%s6909_s19 + $0x524] sm:$0xf]  ;;  %v6087_v30 = vor.u32 %v6675_v38, %v6084_v11  ;;  %v5943_v24 = vor.u32 %v6639_v39, %v5940_v48  ;;  %v6132_v4 = vld [vmem:[%s6909_s19 + $0x508] sm:$0xf0] }
 0x3dd   : > { %4558 = vmatpush.bf16.msrb.mxu3 %v6191_v33  ;;  %v5967_v17 = vor.u32 %v6645_v56, %v5964_v47  ;;  %v6673_v33 = vld [vmem:[%s6909_s19 + $0x494] sm:$0xf]  ;;  %v6151_v23 = vor.u32 %v6691_v43, %v6148_v28  ;;  %v6687_v18 = vld [vmem:[%s6909_s19 + $0x504] sm:$0xf]  ;;  %v6244_v47 = vld [vmem:[%s6909_s19 + $0x5e8] sm:$0xf0] }
 0x3de   : > { %4520 = vmatpush.bf16.msrb.mxu0 %v5991_v55  ;;  %v6076_v55 = vld [vmem:[%s6909_s19 + $0x498] sm:$0xf0]  ;;  %v6715_v56 = vld [vmem:[%s6909_s19 + $0x5e4] sm:$0xf]  ;;  %v6729_v57 = vld [vmem:[%s6909_s19 + $0x654] sm:$0xf] }
 0x3df   : > { %4533 = vmatpush.bf16.msrb.mxu1 %v6055_v34  ;;  %v6689_v34 = vld [vmem:[%s6909_s19 + $0x514] sm:$0xf]  ;;  %v6079_v46 = vor.u32 %v6673_v33, %v6076_v55  ;;  %v6711_v11 = vld [vmem:[%s6909_s19 + $0x5c4] sm:$0xf]  ;;  %v6223_v33 = vor.u32 %v6709_v54, %v6220_v35 }
 0x3e0   : > { %4546 = vmatpush.bf16.msrb.mxu2 %v6119_v9  ;;  %v6140_v9 = vld [vmem:[%s6909_s19 + $0x518] sm:$0xf0]  ;;  %v6727_v43 = vld [vmem:[%s6909_s19 + $0x644] sm:$0xf] }
 0x3e1   : > { %4559 = vmatpush.bf16.msrb.mxu3 %v6183_v50  ;;  %v4268_v50 = vpop.f32.mrf.mxu0  ;;  %v6723_v39 = vld [vmem:[%s6909_s19 + $0x624] sm:$0xf] }
 0x3e2   : > { %4521 = vmatpush.bf16.msrb.mxu0 %v5983_v10  ;;  %v6671_v10 = vld [vmem:[%s6909_s19 + $0x484] sm:$0xf] }
 0x3e3   : > { %4534 = vmatpush.bf16.msrb.mxu1 %v6047_v53  ;;  %v6143_v53 = vor.u32 %v6689_v34, %v6140_v9  ;;  %v6707_v34 = vld [vmem:[%s6909_s19 + $0x5a4] sm:$0xf]  ;;  %v6212_v9 = vld [vmem:[%s6909_s19 + $0x5a8] sm:$0xf0] }
 0x3e4   : > { %4547 = vmatpush.bf16.msrb.mxu2 %v6111_v58  ;;  %v6252_v58 = vld [vmem:[%s6909_s19 + $0x5f8] sm:$0xf0]  ;;  %v4294_v12 = vpop.f32.mrf.mxu2  ;;  %v6215_v49 = vor.u32 %v6707_v34, %v6212_v9 }
 0x3e5   : > { %4560 = vmatpush.bf16.msrb.mxu3 %v6175_v36  ;;  %v6071_v36 = vor.u32 %v6671_v10, %v6068_v52  ;;  %v6255_v31 = vor.u32 %v6717_v15, %v6252_v58  ;;  %v6705_v10 = vld [vmem:[%s6909_s19 + $0x594] sm:$0xf]  ;;  %v6204_v52 = vld [vmem:[%s6909_s19 + $0x598] sm:$0xf0] }
 0x3e6   : > { %4522 = vmatpush.bf16.msrb.mxu0 %v5975_v13  ;;  %v4281_v13 = vpop.f32.mrf.mxu1  ;;  %v6268_v58 = vld [vmem:[%s6909_s19 + $0x618] sm:$0xf0]  ;;  %v6207_v59 = vor.u32 %v6705_v10, %v6204_v52 }
 0x3e7   : > { %4535 = vmatpush.bf16.msrb.mxu1 %v6039_v51  ;;  %v4282_v51 = vadd.f32 %v4281_v13, %v4268_v50  ;;  %v6260_v13 = vld [vmem:[%s6909_s19 + $0x608] sm:$0xf0] }
 0x3e8   : > { %4548 = vmatpush.bf16.msrb.mxu2 %v6103_v41  ;;  %v6135_v41 = vor.u32 %v6687_v18, %v6132_v4  ;;  %v6703_v4 = vld [vmem:[%s6909_s19 + $0x584] sm:$0xf] }
 0x3e9   : > { %4561 = vmatpush.bf16.msrb.mxu3 %v6167_v0  ;;  %v4295_v19 = vadd.f32 %v4294_v12, %v4282_v51  ;;  %v6247_v0 = vor.u32 %v6715_v56, %v6244_v47  ;;  %v4270_v6 = vpop.f32.mrf.mxu0 }
 0x3ea   : > { %4523 = vmatpush.bf16.msrb.mxu0 %v5967_v17  ;;  %v4307_v17 = vpop.f32.mrf.mxu3 }
 0x3eb   : > { %4536 = vmatpush.bf16.msrb.mxu1 %v6031_v40  ;;  %v4308_v40 = vadd.f32 %v4307_v17, %v4295_v19 }
 0x3ec   : > { %4549 = vmatpush.bf16.msrb.mxu2 %v6095_v1  ;;  %v6713_v1 = vld [vmem:[%s6909_s19 + $0x5d4] sm:$0xf] }
 0x3ed   : > { %4562 = vmatpush.bf16.msrb.mxu3 %v6159_v27  ;;  %v6239_v38 = vor.u32 %v6713_v1, %v6236_v8  ;;  %v6228_v27 = vld [vmem:[%s6909_s19 + $0x5c8] sm:$0xf0] }
 0x3ee   : > { %4524 = vmatpush.bf16.msrb.mxu0 %v5959_v14  ;;  %v4283_v26 = vpop.f32.mrf.mxu1  ;;  %v4296_v14 = vpop.f32.mrf.mxu2 }
 0x3ef   : > { %4537 = vmatpush.bf16.msrb.mxu1 %v6023_v21 }
 0x3f0   : > { %4550 = vmatpush.bf16.msrb.mxu2 %v6087_v30 }
 0x3f1   : > { %4563 = vmatpush.bf16.msrb.mxu3 %v6151_v23  ;;  %v6287_v23 = vor.u32 %v6725_v16, %v6284_v29 }
 0x3f2   : > { %4525 = vmatpush.bf16.msrb.mxu0 %v5951_v32  ;;  %v4309_v28 = vpop.f32.mrf.mxu3 }
 0x3f3   : > { %4538 = vmatpush.bf16.msrb.mxu1 %v6015_v37  ;;  %v6276_v37 = vld [vmem:[%s6909_s19 + $0x628] sm:$0xf0] }
 0x3f4   : > { %4551 = vmatpush.bf16.msrb.mxu2 %v6079_v46  ;;  %v6279_v50 = vor.u32 %v6723_v39, %v6276_v37 }
 0x3f5   : > { %4564 = vmatpush.bf16.msrb.mxu3 %v6143_v53  ;;  %v6721_v53 = vld [vmem:[%s6909_s19 + $0x614] sm:$0xf] }
 0x3f6   : > { %4526 = vmatpush.bf16.msrb.mxu0 %v5943_v24  ;;  %v4320_v21 = vpop.f32.mrf.mxu0  ;;  %v6271_v18 = vor.u32 %v6721_v53, %v6268_v58  ;;  %v2955_v58 = vld [vmem:[#allocation4] sm:$0xf] }
 0x3f7   : > { %4539 = vmatpush.bf16.msrb.mxu1 %v6007_v60  ;;  %v4321_v30 = vadd.f32 %v4320_v21, %v4308_v40  ;;  %v4333_v55 = vpop.f32.mrf.mxu1  ;;  %v6196_v60 = vld [vmem:[%s6909_s19 + $0x588] sm:$0xf0] }
 0x3f8   : > { %4552 = vmatpush.bf16.msrb.mxu2 %v6071_v36  ;;  %v6719_v36 = vld [vmem:[%s6909_s19 + $0x604] sm:$0xf] }
 0x3f9   : > { %4565 = vmatpush.bf16.msrb.mxu3 %v6135_v41  ;;  %4527 = vmatmul.bf16.vlgmr.msrb.gmra.mxu0 %v8231_v63  ;;  %v6303_v63 = vor.u32 %v6729_v57, %v6300_v22  ;;  %v4334_v32 = vadd.f32 %v4333_v55, %v4321_v30  ;;  %v6263_v51 = vor.u32 %v6719_v36, %v6260_v13 }
 0x3fa   : > { %4571 = vmatpush.bf16.msra.mxu0 %v6255_v31  ;;  %4540 = vmatmul.bf16.vlgmr.msrb.gmra.mxu1 %v8294_v45  ;;  %v6231_v45 = vor.u32 %v6711_v11, %v6228_v27 }
 0x3fb   : > { %4584 = vmatpush.bf16.msra.mxu1 %v6319_v2  ;;  %4553 = vmatmul.bf16.vlgmr.msrb.gmra.mxu2 %v8301_v61  ;;  %v6292_v61 = vld [vmem:[%s6909_s19 + $0x648] sm:$0xf0]  ;;  %v6199_v2 = vor.u32 %v6703_v4, %v6196_v60  ;;  %s6838_s19 = smov (!%p6320_p5), 122  }
 0x3fc   : > { %4566 = vmatmul.bf16.vlgmr.msrb.gmra.mxu3 %v8296_v3  ;;  %v6295_v3 = vor.u32 %v6727_v43, %v6292_v61 }
 0x3fe   : > { %4572 = vmatpush.bf16.msra.mxu0 %v6247_v0  ;;  %v4346_v46 = vpop.f32.mrf.mxu2  ;;  %v4322_v20 = vpop.f32.mrf.mxu0 }
 0x3ff   : > { %4585 = vmatpush.bf16.msra.mxu1 %v6311_v25  ;;  %v4347_v48 = vadd.f32 %v4346_v46, %v4334_v32  ;;  %v4359_v15 = vpop.f32.mrf.mxu3  ;;  %v4335_v24 = vpop.f32.mrf.mxu1 }
 0x401   : > { %v4360_v44 = vadd.f32 %v4359_v15, %v4347_v48 }
 0x402   : > { %4573 = vmatpush.bf16.msra.mxu0 %v6239_v38 }
 0x403   : > { %4586 = vmatpush.bf16.msra.mxu1 %v6303_v63 }
 0x406   : > { %4574 = vmatpush.bf16.msra.mxu0 %v6231_v45  ;;  %v4348_v31 = vpop.f32.mrf.mxu2 }
 0x407   : > { %4587 = vmatpush.bf16.msra.mxu1 %v6295_v3  ;;  %v4361_v41 = vpop.f32.mrf.mxu3 }
 0x40a   : > { %4575 = vmatpush.bf16.msra.mxu0 %v6223_v33 }
 0x40b   : > { %4588 = vmatpush.bf16.msra.mxu1 %v6287_v23 }
 0x40e   : > { %4576 = vmatpush.bf16.msra.mxu0 %v6215_v49 }
 0x40f   : > { %4589 = vmatpush.bf16.msra.mxu1 %v6279_v50 }
 0x412   : > { %4577 = vmatpush.bf16.msra.mxu0 %v6207_v59 }
 0x413   : > { %4590 = vmatpush.bf16.msra.mxu1 %v6271_v18 }
 0x416   : > { %4578 = vmatpush.bf16.msra.mxu0 %v6199_v2  ;;  %v4372_v56 = vpop.f32.mrf.mxu0 }
 0x417   : > { %4591 = vmatpush.bf16.msra.mxu1 %v6263_v51  ;;  %v4373_v47 = vadd.f32 %v4372_v56, %v4360_v44  ;;  %v4385_v12 = vpop.f32.mrf.mxu1 }
 0x419   : > { %4579 = vmatmul.bf16.vlgmr.msra.gmra.mxu0 %v8303_v62  ;;  %v4386_v42 = vadd.f32 %v4385_v12, %v4373_v47 }
 0x41a   : > { %4592 = vmatmul.bf16.vlgmr.msra.gmra.mxu1 %v8371_v7 }
 0x41e   : > { %v4398_v5 = vpop.f32.mrf.mxu2  ;;  %v4374_v17 = vpop.f32.mrf.mxu0 }
 0x41f   : > { %v4399_v19 = vadd.f32 %v4398_v5, %v4386_v42  ;;  %v4411_v0 = vpop.f32.mrf.mxu3  ;;  %v4387_v25 = vpop.f32.mrf.mxu1 }
 0x421   : > { %v4412_v6 = vadd.f32 %v4411_v0, %v4399_v19 }
 0x426   : > { %v4400_v40 = vpop.f32.mrf.mxu2 }
 0x427   : > { %v4413_v1 = vpop.f32.mrf.mxu3 }
 0x436   : > { %v4424_v8 = vpop.f32.mrf.mxu0 }
 0x437   : > { %v4425_v57 = vadd.f32 %v4424_v8, %v4412_v6  ;;  %v4437_v22 = vpop.f32.mrf.mxu1 }
 0x43e   : > { %v4450_v26 = vpop.f32.mrf.mxu2  ;;  %v4426_v38 = vpop.f32.mrf.mxu0 }
 0x43f   : > { %v4463_v62 = vpop.f32.mrf.mxu3  ;;  %v4439_v63 = vpop.f32.mrf.mxu1  ;;  %v4451_v30 = vadd.f32 %v4450_v26, %v4437_v22 }
 0x441   : > { %v4464_v35 = vadd.f32 %v4463_v62, %v4451_v30 }
 0x446   : > { %v4452_v7 = vpop.f32.mrf.mxu2 }
 0x447   : > { %v4465_v11 = vpop.f32.mrf.mxu3 }
 0x456   : > { %v4476_v27 = vpop.f32.mrf.mxu0 }
 0x457   : > { %v4489_v14 = vpop.f32.mrf.mxu1  ;;  %v4477_v29 = vadd.f32 %v4476_v27, %v4464_v35 }
 0x459   : > { %v4490_v23 = vadd.f32 %v4489_v14, %v4477_v29 }
 0x45e   : > { %v4502_v43 = vpop.f32.mrf.mxu2  ;;  %v4478_v61 = vpop.f32.mrf.mxu0 }
 0x45f   : > { %v4515_v45 = vpop.f32.mrf.mxu3  ;;  %v4491_v28 = vpop.f32.mrf.mxu1  ;;  %v4503_v9 = vadd.f32 %v4502_v43, %v4490_v23 }
 0x461   : > { %v4516_v37 = vadd.f32 %v4515_v45, %v4503_v9 }
 0x466   : > { %v4504_v21 = vpop.f32.mrf.mxu2 }
 0x467   : > { %v4517_v3 = vpop.f32.mrf.mxu3 }
 0x476   : > { %v4528_v54 = vpop.f32.mrf.mxu0 }
 0x477   : > { %v4541_v16 = vpop.f32.mrf.mxu1  ;;  %v4529_v48 = vadd.f32 %v4528_v54, %v4516_v37 }
 0x479   : > { %v4542_v49 = vadd.f32 %v4541_v16, %v4529_v48 }
 0x47e   : > { %v4554_v33 = vpop.f32.mrf.mxu2  ;;  %v4530_v55 = vpop.f32.mrf.mxu0 }
 0x47f   : > { %v4567_v32 = vpop.f32.mrf.mxu3  ;;  %v4543_v34 = vpop.f32.mrf.mxu1  ;;  %v4555_v20 = vadd.f32 %v4554_v33, %v4542_v49 }
 0x481   : > { %v4568_v50 = vadd.f32 %v4567_v32, %v4555_v20 }
 0x486   : > { %v4556_v39 = vpop.f32.mrf.mxu2 }
 0x487   : > { %v4569_v46 = vpop.f32.mrf.mxu3 }
 0x496   : > { %v4580_v10 = vpop.f32.mrf.mxu0 }
 0x497   : > { %v4581_v52 = vadd.f32 %v4580_v10, %v4568_v50  ;;  %v4593_v15 = vpop.f32.mrf.mxu1 }
 0x499   : > { %v4594_v53 = vadd.f32 %v4593_v15, %v4581_v52 }
 0x49b   : > { %v4599_v44 = vrot.slane %v4594_v53, 6 }
 0x49c   : > { %4608 = sbr.rel (%p6320_p5) target bundleno = 1602 (0x642), region = 64 }
 0x49d   : > { %v4601_v59 = vsel %vm4600_vm3, %v4425_v57, %v4599_v44 }
 0x49e   : > { %v4603_v24 = vadd.f32 %v4601_v59, %v2955_v58  ;;  %v4582_v18 = vpop.f32.mrf.mxu0 }
 0x49f   : > { %v4595_v4 = vpop.f32.mrf.mxu1 }
 0x4a0   : > { %4604 = vst [vmem:[#allocation4] sm:$0xf] %v4603_v24 }
 0x4a1   : > { %v6742_v60 = vld [vmem:[%s8612_s7 + $0x38] sm:$0xff]  ;;  %v6741_v13 = vld [vmem:[%s8612_s7 + $0x30] sm:$0xff]  ;;  %v4610_v2 = vld [vmem:[%s8611_s6] sm:$0x3]  ;;  %vm4785_vm4 = vcmask 41984   ;;  %vm4802_vm5 = vcmask 1024  }
 0x4a2   : > { %v6750_v36 = vld [vmem:[%s8612_s7 + $0x78] sm:$0xff]  ;;  %4759 = vmatpush.bf16.msra.mxu0 %v6742_v60  ;;  %v6749_v31 = vld [vmem:[%s8612_s7 + $0x70] sm:$0xff]  ;;  %v6740_v51 = vld [vmem:[%s8612_s7 + $0x28] sm:$0xff]  ;;  %v4612_v56 = vperm.slane %v4610_v2, 0  ;;  %v4613_v47 = vperm.slane %v4610_v2, 1 }
 0x4a3   : > { %4772 = vmatpush.bf16.msra.mxu1 %v6750_v36  ;;  %v6748_v41 = vld [vmem:[%s8612_s7 + $0x68] sm:$0xff]  ;;  %v6739_v5 = vld [vmem:[%s8612_s7 + $0x20] sm:$0xff]  ;;  %v6738_v25 = vld [vmem:[%s8612_s7 + $0x18] sm:$0xff] }
 0x4a4   : > { %v4614_v42 = vrot.slane %v4613_v47, 6  ;;  %v6747_v19 = vld [vmem:[%s8612_s7 + $0x60] sm:$0xff]  ;;  %v6746_v40 = vld [vmem:[%s8612_s7 + $0x58] sm:$0xff]  ;;  %v6737_v1 = vld [vmem:[%s8612_s7 + $0x10] sm:$0xff] }
 0x4a5   : > { %v6745_v8 = vld [vmem:[%s8612_s7 + $0x50] sm:$0xff]  ;;  %v6736_v57 = vld [vmem:[%s8612_s7 + $0x8] sm:$0xff]  ;;  %v6735_v26 = vld [vmem:[%s8612_s7] sm:$0xff] }
 0x4a6   : > { %4760 = vmatpush.bf16.msra.mxu0 %v6741_v13  ;;  %v4615_v0 = vsel %vm4600_vm3, %v4612_v56, %v4614_v42  ;;  %v6744_v22 = vld [vmem:[%s8612_s7 + $0x48] sm:$0xff]  ;;  %v6743_v38 = vld [vmem:[%s8612_s7 + $0x40] sm:$0xff] }
 0x4a7   : > { %4773 = vmatpush.bf16.msra.mxu1 %v6749_v31  ;;  %v4609_v12 = vld [vmem:[#allocation4] sm:$0xf]  ;;  %v6789_v27 = vld [vmem:[%s8613_s8] ss:$0 sm:$0xff] }
 0x4a8   : > { %v4617_v17 = vadd.f32 %v4615_v0, %v4609_v12 }
 0x4aa   : > { %4761 = vmatpush.bf16.msra.mxu0 %v6740_v51  ;;  %v4618_v6 = vmax.f32 %v4617_v17, 0.0 }
 0x4ab   : > { %4774 = vmatpush.bf16.msra.mxu1 %v6748_v41 }
 0x4ac   : > { %4620 = vst [vmem:[#allocation1] ss:$4 sm:$0xff] %v4618_v6 }
 0x4ae   : > { %4762 = vmatpush.bf16.msra.mxu0 %v6739_v5 }
 0x4af   : > { %4775 = vmatpush.bf16.msra.mxu1 %v6747_v19 }
 0x4b2   : > { %4763 = vmatpush.bf16.msra.mxu0 %v6738_v25 }
 0x4b3   : > { %4776 = vmatpush.bf16.msra.mxu1 %v6746_v40  ;;  %v4621_v62 = vld.sshfl [vmem:[#allocation1] sm:$0xff pattern:$0x73625140]  ;;  %v4622_v63 = vld.sshfl [vmem:[#allocation1 + $0x8] sm:$0xff pattern:$0x73625140] }
 0x4b4   : > { %v4625_v7 = vpack.c.bf16 %v4621_v62, %v4621_v62  ;;  %v4626_v11 = vpack.c.bf16 %v4622_v63, %v4622_v63 }
 0x4b6   : > { %4764 = vmatpush.bf16.msra.mxu0 %v6737_v1 }
 0x4b7   : > { %4777 = vmatpush.bf16.msra.mxu1 %v6745_v8 }
 0x4ba   : > { %4765 = vmatpush.bf16.msra.mxu0 %v6736_v57 }
 0x4bb   : > { %4778 = vmatpush.bf16.msra.mxu1 %v6744_v22 }
 0x4be   : > { %4766 = vmatpush.bf16.msra.mxu0 %v6735_v26 }
 0x4bf   : > { %4779 = vmatpush.bf16.msra.mxu1 %v6743_v38 }
 0x4c1   : > { %4767 = vmatmul.bf16.vlgmr.msra.gmra.mxu0 %v4625_v7 }
 0x4c2   : > { %4780 = vmatmul.bf16.vlgmr.msra.gmra.mxu1 %v4626_v11 }
 0x53e   : > { %v4768_v14 = vpop.f32.mrf.mxu0 }
 0x53f   : > { %v4781_v43 = vpop.f32.mrf.mxu1  ;;  %v4769_v61 = vadd.f32 %v6789_v27, %v4768_v14 }
 0x541   : > { %v4782_v45 = vadd.f32 %v4781_v43, %v4769_v61 }
 0x543   : > { %4799 = vrot.lane.b32.xlu1 %v4782_v45, %s6838_s19  ;;  %v4786_v28 = vsel %vm4785_vm4, %v4782_v45, -inf }
 0x544   : > { %4787 = vmax.xlane.f32.xlu0 %v4786_v28 }
 0x546   : > { %v4770_v21 = vpop.f32.mrf.mxu0 }
 0x547   : > { %v4783_v3 = vpop.f32.mrf.mxu1 }
 0x5b5   : > { %v4800_v30 = vpop.permute.xlu1 %4799 }
 0x5b6   : > { %4803 = vst.msk [vmem:[%s8615_s10] sm:$0x3] %vm4802_vm5, %v4800_v30 }
 0x5b7   : > { %v4788_v54 = vpop.xlane.xlu0 %4787 }
 0x5b8   : > { %v4789_v35 = vsub.f32 %v4782_v45, %v4788_v54 }
 0x5ba   : > { %v4790_v16 = vmul.f32 1.442695, %v4789_v35 }
 0x5bc   : > { %6790 = vpow2.f32 %v4790_v16 }
 0x5c2   : > { %v6791_v29 = vpop.eup %6790 }
 0x5c3   : > { %v4792_v33 = vsel %vm4785_vm4, %v6791_v29, 0.0 }
 0x5c4   : > { %4793 = vadd.xlane.f32.xlu0 %v4792_v33 }
 0x637   : > { %v4794_v55 = vpop.xlane.xlu0 %4793 }
 0x638   : > { %6792 = vrcp.f32 %v4794_v55 }
 0x63e   : > { %v6793_v23 = vpop.eup %6792 }
 0x63f   : > { %v4796_v32 = vmul.f32 %v6793_v23, %v6791_v29 }
 0x641   : > { %4797 = vst.msk [vmem:[#allocation5] sm:$0x3] %vm4785_vm4, %v4796_v32 }
 0x642 PF: > { %p6771_p6 = scmp.eq.s32.totalorder %s6901_s14, 1  ;;  %s6839_s28 = smov [#allocation5]  }
 0x643   : > { %s4810_s29 = sshll.u32 %s6839_s28, 4  ;;  %s4812_s12 = sshll.u32 %s8614_s9, 4  ;;  %s4811_s29 = int_to_ptr.vmem [resolvable:$true] %s4810_s29  ;;  %s4813_s12 = int_to_ptr.hbm [resolvable:$true] %s4812_s12 }
 0x644   : > { %6768 = dma.vmem_to_hbm [thread:$0]  (%p6771_p6), %s4811_s29, 32, %s4813_s12, [#allocation6]  }
 0x645   : > { %6827 = dma.done.wait (%p6771_p6), [#allocation6], 32  }
 0x646   : > { %6829 = vsyncadd (%p6771_p6), [#allocation6], 4294967264 }
 0x647 PF: > { %s22_s13 = sadd.s32 1, %s6832_s13  }
 0x648   : > { %p19_p7 = scmp.ge.s32.totalorder %s22_s13, 4  }
 0x64a   :  { %21 = sbr.rel (!%p19_p7) target bundleno = 1 (0x1), region = 105 }
 0x64f   :  { %4832 = vsyncpa [#allocation6], 1 }
 0x650   :  { %4834 = vsyncpa [#allocation6 + $0x1], 1 }

</bundles_post_ra>
